<compile_context>
chip_gen: v5e
topology: v5e:2x2
jax: 0.10.0
libtpu: 0.0.40
codegen_flags: <defaults>
</compile_context>

<pallas_src>
import functools

import jax
import jax.numpy as jnp
from jax import lax
from jax.experimental import pallas as pl
from jax.experimental.pallas import tpu as pltpu

LANES = 128  # TPU lane width; the segment dim K is padded to this.


# --------------------------------------------------------------------------- #
# Kernel 1: segment predictor (linear layer) + softmax, lane-dense output.
# Emits both an f32 copy (returned assignments) and a bf16 copy (kernel-2 feed).
# --------------------------------------------------------------------------- #
def _predictor_kernel(f_ref, wp_ref, b_ref, p_ref, pb_ref):
    f = f_ref[...]                                   # (TP, D)   f32
    logits = jnp.dot(f, wp_ref[...], preferred_element_type=jnp.float32)
    logits = logits + b_ref[...]                     # pad lanes get -1e30 bias
    m = jnp.max(logits, axis=1, keepdims=True)
    e = jnp.exp(logits - m)                          # pad lanes underflow to 0
    denom = jnp.sum(e, axis=1, keepdims=True)        # >= 1, approx recip is safe
    p = e * pl.reciprocal(denom, approx=True)
    p_ref[...] = p
    pb_ref[...] = p.astype(jnp.bfloat16)


# --------------------------------------------------------------------------- #
# Kernel 2: tiled Normalized-Cut partial sums.
#   w_ij    = A_ij * exp(-||f_i - f_j||^2 / 2)
#   assoc_k = sum_ij w_ij p_ik           (== sum_i p_ik * deg_i)
#   quad_k  = sum_ij w_ij p_ik p_jk      (cut_k = assoc_k - quad_k)
# accumulated per row-block over the col-block (reduction) grid axis into
# full-vreg (8, 128) accumulators.
# --------------------------------------------------------------------------- #
def _ncut_kernel(occ_ref, fridx_ref, fcidx_ref,
                 fr_ref, sqr_ref, pr_ref,
                 fc_ref, sqc_ref, pc_ref, a_ref,
                 assoc_ref, quad_ref):
    r = pl.program_id(0)
    c = pl.program_id(1)
    ncols = pl.num_programs(1)
    lin = r * ncols + c

    @pl.when(c == 0)
    def _init():
        assoc_ref[...] = jnp.zeros_like(assoc_ref)
        quad_ref[...] = jnp.zeros_like(quad_ref)

    # Empty adjacency blocks skip both the compute and (via the clamped
    # index_maps below) the A / fc / pc DMAs.
    @pl.when(occ_ref[lin] > 0)
    def _compute():
        fr = fr_ref[...]                              # (TN, D)  f32
        fc = fc_ref[...]                              # (TN, D)  f32
        pr = pr_ref[...].astype(jnp.float32)          # (TN, Kp) bf16 -> f32
        pc = pc_ref[...]                              # (TN, Kp) bf16 (MXU feed)
        a = a_ref[...].astype(jnp.float32)            # (TN, TN) bf16 -> f32

        # Squared pairwise distances from hoisted row norms + f32 gram matrix.
        g = lax.dot_general(                          # (TN, TN) = fr @ fc^T
            fr, fc,
            dimension_numbers=(((1,), (1,)), ((), ())),
            preferred_element_type=jnp.float32)
        dist_sq = jnp.maximum(sqr_ref[...] + sqc_ref[...] - 2.0 * g, 0.0)
        w = a * jnp.exp(-0.5 * dist_sq)               # (TN, TN) f32

        # assoc partial: sum_i p_r[i,k] * (sum_j w_ij)
        rowsum = jnp.sum(w, axis=1, keepdims=True)    # (TN, 1)
        # quad partial: sum_{i,j} w_ij p_r[i,k] p_c[j,k]  (bf16 MXU, f32 acc)
        wp_prod = jnp.dot(w.astype(jnp.bfloat16), pc,
                          preferred_element_type=jnp.float32)   # (TN, Kp)

        tn = pr.shape[0]
        kp = pr.shape[1]
        # Fold TN rows into 8 sublanes (full-vreg accumulate, no masked stores).
        assoc_part = jnp.sum((pr * rowsum).reshape(tn // 8, 8, kp), axis=0)
        quad_part = jnp.sum((pr * wp_prod).reshape(tn // 8, 8, kp), axis=0)

        assoc_ref[...] += assoc_part
        quad_ref[...] += quad_part


# --------------------------------------------------------------------------- #
# Wrapper
# --------------------------------------------------------------------------- #
def _pick_row_tile(n_pad):
    for cand in (2048, 1024, 512, 256, 128):
        if n_pad % cand == 0:
            return cand
    return n_pad


@functools.partial(jax.jit, static_argnames=("num_segments", "tile_n"))
def mincut_refinement_forward(features, adjacency, wp, b, *, num_segments,
                              tile_n=512):
    """Returns (ncut_loss, soft_segment_assignments (N, K)).

    tile_n: ncut block size; sweep 256/512/1024. Keep <= 512 on v7x (64 MiB
    VMEM); 512 is the all-generation default.
    """
    n, d = features.shape
    k = num_segments
    kp = LANES
    if k > kp:
        # TODO(synk): tile the segment axis for K > 128.
        raise NotImplementedError("num_segments > 128 not supported")
    if tile_n % LANES != 0:
        raise ValueError("tile_n must be a multiple of 128")

    tn = tile_n
    n_pad = pl.cdiv(n, tn) * tn
    rb = n_pad // tn                                      # row/col block count
    f32 = jnp.float32

    f_pad = jnp.zeros((n_pad, d), f32).at[:n, :].set(features.astype(f32))
    # Single fused pad+cast pass over A. bf16 is exact for 0/1 adjacency;
    # for general weighted adjacency it adds ~2^-9 relative error in w.
    a_bf = jnp.zeros((n_pad, n_pad), jnp.bfloat16).at[:n, :n].set(
        adjacency.astype(jnp.bfloat16))
    wp_pad = jnp.zeros((d, kp), f32).at[:, :k].set(wp.astype(f32))
    b_pad = jnp.full((1, kp), -1e30, f32).at[:, :k].set(
        b.astype(f32).reshape(1, k))

    # Squared row norms hoisted out of kernel 2 (row-major and lane-major views).
    sq = jnp.sum(f_pad * f_pad, axis=1)
    sq_row = sq.reshape(n_pad, 1)
    sq_col = sq.reshape(1, n_pad)

    # Per-block edge occupancy (1D SMEM table) + "clamp-to-last-fetched" block
    # indices: for empty blocks the A/fc/pc index_maps return the previously
    # fetched block's index, so Pallas skips the re-DMA entirely.
    # TODO(synk): derive occ from an upstream edge list (or fuse into the cast)
    # to avoid this extra bf16 pass over A.
    occ = jnp.any((a_bf != 0).reshape(rb, tn, rb, tn), axis=(1, 3))
    occ_flat = occ.reshape(-1).astype(jnp.int32)
    lin_idx = jnp.arange(rb * rb, dtype=jnp.int32)
    fetch_lin = jnp.maximum(
        lax.cummax(jnp.where(occ_flat > 0, lin_idx, -1), axis=0), 0)
    fetch_r = (fetch_lin // rb).astype(jnp.int32)
    fetch_c = (fetch_lin % rb).astype(jnp.int32)

    # ---- kernel 1: soft segment assignments (lane-dense Kp, large row tile) --
    pred_tn = _pick_row_tile(n_pad)
    p_f32, p_bf16 = pl.pallas_call(
        _predictor_kernel,
        grid_spec=pltpu.PrefetchScalarGridSpec(
            num_scalar_prefetch=0,
            grid=(n_pad // pred_tn,),
            in_specs=[
                pl.BlockSpec((pred_tn, d), lambda i: (i, 0)),
                pl.BlockSpec((d, kp), lambda i: (0, 0)),
                pl.BlockSpec((1, kp), lambda i: (0, 0)),
            ],
            out_specs=(
                pl.BlockSpec((pred_tn, kp), lambda i: (i, 0)),
                pl.BlockSpec((pred_tn, kp), lambda i: (i, 0)),
            ),
        ),
        out_shape=(
            jax.ShapeDtypeStruct((n_pad, kp), f32),
            jax.ShapeDtypeStruct((n_pad, kp), jnp.bfloat16),
        ),
        compiler_params=pltpu.CompilerParams(
            dimension_semantics=("parallel",),
            vmem_limit_bytes=32 * 1024 * 1024,
        ),
    )(f_pad, wp_pad, b_pad)

    # ---- kernel 2: tiled Ncut partial sums -----------------------------------
    def _row_map(r, c, occ_s, fr_s, fc_s):
        return (r, 0)

    def _col_f_map(r, c, occ_s, fr_s, fc_s):
        return (fc_s[r * rb + c], 0)

    def _col_sq_map(r, c, occ_s, fr_s, fc_s):
        return (0, fc_s[r * rb + c])

    def _a_map(r, c, occ_s, fr_s, fc_s):
        lin = r * rb + c
        return (fr_s[lin], fc_s[lin])

    def _out_map(r, c, occ_s, fr_s, fc_s):
        return (r, 0)

    flops = int(2 * n_pad * n_pad * (d + kp) + 10 * n_pad * n_pad)
    transcendentals = int(n_pad * n_pad)
    bytes_accessed = int(2 * n_pad * n_pad                  # A (bf16)
                         + 4 * n_pad * d * (rb + 1)         # f row + col streams
                         + 2 * n_pad * kp * (rb + 1)        # p (bf16) streams
                         + 4 * 2 * 8 * rb * kp)             # partial outputs

    assoc_p, quad_p = pl.pallas_call(
        _ncut_kernel,
        grid_spec=pltpu.PrefetchScalarGridSpec(
            num_scalar_prefetch=3,     # occ_flat, fetch_r, fetch_c (SMEM)
            grid=(rb, rb),
            in_specs=[
                pl.BlockSpec((tn, d), _row_map),        # f   (rows)
                pl.BlockSpec((tn, 1), _row_map),        # |f|^2 (rows)
                pl.BlockSpec((tn, kp), _row_map),       # p   (rows, bf16)
                pl.BlockSpec((tn, d), _col_f_map),      # f   (cols)
                pl.BlockSpec((1, tn), _col_sq_map),     # |f|^2 (cols)
                pl.BlockSpec((tn, kp), _col_f_map),     # p   (cols, bf16)
                # On v5e (lowest HBM BW) consider pipeline_mode=pl.Buffered(3)
                # for this A stream to hide the exposed (tn,tn) bf16 DMA.
                pl.BlockSpec((tn, tn), _a_map),         # A block (bf16)
            ],
            out_specs=(
                pl.BlockSpec((8, kp), _out_map),        # assoc partials
                pl.BlockSpec((8, kp), _out_map),        # quad partials
            ),
        ),
        out_shape=(
            jax.ShapeDtypeStruct((8 * rb, kp), f32),
            jax.ShapeDtypeStruct((8 * rb, kp), f32),
        ),
        compiler_params=pltpu.CompilerParams(
            # TODO(synk): with a compacted occupied-block grid, split the block
            # list evenly across the two v7x TensorCores instead of row-sharding.
            dimension_semantics=("parallel", "arbitrary"),
            vmem_limit_bytes=48 * 1024 * 1024,   # <= v7x 64 MiB; ~8 MiB live @ TN=512
        ),
        cost_estimate=pl.CostEstimate(
            flops=flops,
            transcendentals=transcendentals,
            bytes_accessed=bytes_accessed,
        ),
    )(occ_flat, fetch_r, fetch_c,
      f_pad, sq_row, p_bf16,
      f_pad, sq_col, p_bf16, a_bf)

    # ---- tiny (K-element) finalize in plain JAX ------------------------------
    assoc = jnp.sum(assoc_p, axis=0)[:k]
    quad = jnp.sum(quad_p, axis=0)[:k]
    cut = assoc - quad
    eps = 1e-8
    safe = jnp.where(assoc > eps, assoc, 1.0)
    loss = jnp.sum(jnp.where(assoc > eps, cut / safe, 0.0))
    assignments = p_f32[:n, :k]
    return loss, assignments


# --------------------------------------------------------------------------- #
# Pure-JAX reference (mirrors the PyTorch edge/gather formulation) + test data
# --------------------------------------------------------------------------- #
def _ref_forward(features, src, tgt, wp, b, num_segments):
    logits = features @ wp + b
    p = jax.nn.softmax(logits, axis=1)
    diff = features[src] - features[tgt]
    w = jnp.exp(-jnp.sum(diff * diff, axis=1) / 2.0)
    deg = jnp.zeros(features.shape[0], jnp.float32).at[src].add(w)
    loss = jnp.float32(0.0)
    for kk in range(num_segments):
        pk = p[:, kk]
        assoc = jnp.sum(pk * deg)
        cut = jnp.sum(w * pk[src] * (1.0 - pk[tgt]))
        loss = loss + jnp.where(assoc > 1e-8, cut / assoc, 0.0)
    return loss, p


def _grid_edges(h, w, offset=0):
    """Directed 4-neighborhood edges of an h x w patch grid."""
    src, tgt = [], []
    for y in range(h):
        for x in range(w):
            i = y * w + x
            for dy, dx in ((0, 1), (1, 0), (0, -1), (-1, 0)):
                ny, nx = y + dy, x + dx
                if 0 <= ny < h and 0 <= nx < w:
                    src.append(i + offset)
                    tgt.append(ny * w + nx + offset)
    return src, tgt


if __name__ == "__main__":
    # Two disconnected 16x16 patch grids -> N = 512 nodes, D = 32, K = 8 segments.
    # With tile_n = 256 this is a 2x2 block grid whose off-diagonal adjacency
    # blocks are empty, exercising the occupancy-based compute + DMA skip.
    GRID_H, GRID_W, N_COMP = 16, 16, 2
    N = GRID_H * GRID_W * N_COMP
    D = 32
    K = 8

    key = jax.random.PRNGKey(0)
    k_feat, k_wp, k_b = jax.random.split(key, 3)
    # Scale features so edge weights exp(-d^2/2) are O(0.1), keeping assoc well
    # above the 1e-8 epsilon on both the kernel and the reference path.
    features = jax.random.normal(k_feat, (N, D), jnp.float32) * 0.25
    # Deterministic "segment_predictor_network" parameters (linear layer D -> K).
    wp = jax.random.normal(k_wp, (D, K), jnp.float32) * 0.1
    b = jax.random.normal(k_b, (1, K), jnp.float32) * 0.1

    src_l, tgt_l = [], []
    for comp in range(N_COMP):
        s, t = _grid_edges(GRID_H, GRID_W, offset=comp * GRID_H * GRID_W)
        src_l += s
        tgt_l += t
    src = jnp.array(src_l, jnp.int32)
    tgt = jnp.array(tgt_l, jnp.int32)

    adjacency = jnp.zeros((N, N), jnp.float32).at[src, tgt].add(1.0)

    loss, assignments = mincut_refinement_forward(
        features, adjacency, wp, b, num_segments=K, tile_n=256)
    jax.block_until_ready((loss, assignments))

    # Sanity-check against the gather-based (PyTorch-equivalent) reference.
    ref_loss, ref_assign = _ref_forward(features, src, tgt, wp, b, K)
    assert jnp.allclose(assignments, ref_assign, rtol=1e-3, atol=1e-3), (
        "max |dp| =", float(jnp.max(jnp.abs(assignments - ref_assign))))
    assert jnp.allclose(loss, ref_loss, rtol=1e-3, atol=1e-3), (
        float(loss), float(ref_loss))

    print("KERNEL_OK")
</pallas_src>

<mosaic_0001>
module attributes {stable_mosaic.version = 11 : i64} {
  func.func @_ncut_kernel(%arg0: i32, %arg1: i32, %arg2: memref<4xi32, #tpu.memory_space<smem>>, %arg3: memref<4xi32, #tpu.memory_space<smem>>, %arg4: memref<4xi32, #tpu.memory_space<smem>>, %arg5: memref<256x32xf32, #tpu.memory_space<vmem>>, %arg6: memref<256x1xf32, #tpu.memory_space<vmem>>, %arg7: memref<256x128xbf16, #tpu.memory_space<vmem>>, %arg8: memref<256x32xf32, #tpu.memory_space<vmem>>, %arg9: memref<1x256xf32, #tpu.memory_space<vmem>>, %arg10: memref<256x128xbf16, #tpu.memory_space<vmem>>, %arg11: memref<256x256xbf16, #tpu.memory_space<vmem>>, %arg12: memref<8x128xf32, #tpu.memory_space<vmem>>, %arg13: memref<8x128xf32, #tpu.memory_space<vmem>>) attributes {dimension_semantics = [#tpu.dimension_semantics<parallel>, #tpu.dimension_semantics<arbitrary>], iteration_bounds = array<i64: 2, 2>, scalar_prefetch = 3 : i64, scratch_operands = 0 : i64, tpu.core_type = #tpu.core_type<tc>, window_params = [{transform_indices = @transform_0, window_bounds = array<i64: 256, 32>}, {transform_indices = @transform_1, window_bounds = array<i64: 256, 1>}, {transform_indices = @transform_2, window_bounds = array<i64: 256, 128>}, {transform_indices = @transform_3, window_bounds = array<i64: 256, 32>}, {transform_indices = @transform_4, window_bounds = array<i64: 1, 256>}, {transform_indices = @transform_5, window_bounds = array<i64: 256, 128>}, {transform_indices = @transform_6, window_bounds = array<i64: 256, 256>}, {transform_indices = @transform_7, window_bounds = array<i64: 8, 128>}, {transform_indices = @transform_8, window_bounds = array<i64: 8, 128>}]} {
    %c2_i32 = arith.constant 2 : i32
    %0 = arith.muli %arg0, %c2_i32 : i32
    %1 = arith.addi %0, %arg1 : i32
    %c0_i32 = arith.constant 0 : i32
    %2 = arith.cmpi eq, %arg1, %c0_i32 : i32
    %3 = arith.extui %2 : i1 to i32
    %c0_i32_0 = arith.constant 0 : i32
    %4 = arith.cmpi ne, %3, %c0_i32_0 : i32
    scf.if %4 {
      %cst = arith.constant 0.000000e+00 : f32
      %10 = vector.broadcast %cst : f32 to vector<8x128xf32>
      %c0 = arith.constant 0 : index
      %c0_3 = arith.constant 0 : index
      %11 = vector.load %arg12[%c0, %c0_3] : memref<8x128xf32, #tpu.memory_space<vmem>>, vector<8x128xf32>
      tpu.vector_store %arg12[%c0, %c0_3], %10 {strides = array<i32>} : memref<8x128xf32, #tpu.memory_space<vmem>>, vector<8x128xf32>,
      %cst_4 = arith.constant 0.000000e+00 : f32
      %12 = vector.broadcast %cst_4 : f32 to vector<8x128xf32>
      %c0_5 = arith.constant 0 : index
      %c0_6 = arith.constant 0 : index
      %13 = vector.load %arg13[%c0_5, %c0_6] : memref<8x128xf32, #tpu.memory_space<vmem>>, vector<8x128xf32>
      tpu.vector_store %arg13[%c0_5, %c0_6], %12 {strides = array<i32>} : memref<8x128xf32, #tpu.memory_space<vmem>>, vector<8x128xf32>,
    } else {
    }
    %5 = arith.index_cast %1 : i32 to index
    %6 = memref.load %arg2[%5] : memref<4xi32, #tpu.memory_space<smem>>
    %c0_i32_1 = arith.constant 0 : i32
    %7 = arith.cmpi sgt, %6, %c0_i32_1 : i32
    %8 = arith.extui %7 : i1 to i32
    %c0_i32_2 = arith.constant 0 : i32
    %9 = arith.cmpi ne, %8, %c0_i32_2 : i32
    scf.if %9 {
      %c0 = arith.constant 0 : index
      %c0_3 = arith.constant 0 : index
      %10 = vector.load %arg5[%c0, %c0_3] : memref<256x32xf32, #tpu.memory_space<vmem>>, vector<256x32xf32>
      %c0_4 = arith.constant 0 : index
      %c0_5 = arith.constant 0 : index
      %11 = vector.load %arg8[%c0_4, %c0_5] : memref<256x32xf32, #tpu.memory_space<vmem>>, vector<256x32xf32>
      %c0_6 = arith.constant 0 : index
      %c0_7 = arith.constant 0 : index
      %12 = vector.load %arg7[%c0_6, %c0_7] : memref<256x128xbf16, #tpu.memory_space<vmem>>, vector<256x128xbf16>
      %13 = arith.extf %12 : vector<256x128xbf16> to vector<256x128xf32>
      %c0_8 = arith.constant 0 : index
      %c0_9 = arith.constant 0 : index
      %14 = vector.load %arg10[%c0_8, %c0_9] : memref<256x128xbf16, #tpu.memory_space<vmem>>, vector<256x128xbf16>
      %c0_10 = arith.constant 0 : index
      %c0_11 = arith.constant 0 : index
      %15 = vector.load %arg11[%c0_10, %c0_11] : memref<256x256xbf16, #tpu.memory_space<vmem>>, vector<256x256xbf16>
      %16 = arith.extf %15 : vector<256x256xbf16> to vector<256x256xf32>
      %cst = arith.constant dense<0.000000e+00> : vector<256x256xf32>
      %17 = tpu.matmul %10, %11, %cst {dimension_numbers = #tpu.dot_dimension_numbers<[1], [1], [0], [0], [0, 0, 1, 0], [], []>} : vector<256x32xf32>, vector<256x32xf32>, vector<256x256xf32> -> vector<256x256xf32>
      %c0_12 = arith.constant 0 : index
      %c0_13 = arith.constant 0 : index
      %18 = vector.load %arg6[%c0_12, %c0_13] : memref<256x1xf32, #tpu.memory_space<vmem>>, vector<256x1xf32>
      %c0_14 = arith.constant 0 : index
      %c0_15 = arith.constant 0 : index
      %19 = vector.load %arg9[%c0_14, %c0_15] : memref<1x256xf32, #tpu.memory_space<vmem>>, vector<1x256xf32>
      %20 = vector.broadcast %18 : vector<256x1xf32> to vector<256x256xf32>
      %21 = vector.broadcast %19 : vector<1x256xf32> to vector<256x256xf32>
      %22 = arith.addf %20, %21 : vector<256x256xf32>
      %cst_16 = arith.constant 2.000000e+00 : f32
      %23 = vector.broadcast %cst_16 : f32 to vector<256x256xf32>
      %24 = arith.mulf %23, %17 : vector<256x256xf32>
      %25 = arith.subf %22, %24 : vector<256x256xf32>
      %cst_17 = arith.constant 0.000000e+00 : f32
      %26 = vector.broadcast %cst_17 : f32 to vector<256x256xf32>
      %27 = arith.maximumf %25, %26 : vector<256x256xf32>
      %cst_18 = arith.constant -5.000000e-01 : f32
      %28 = vector.broadcast %cst_18 : f32 to vector<256x256xf32>
      %29 = arith.mulf %28, %27 : vector<256x256xf32>
      %30 = math.exp %29 : vector<256x256xf32>
      %31 = arith.mulf %16, %30 : vector<256x256xf32>
      %cst_19 = arith.constant dense<0.000000e+00> : vector<256xf32>
      %32 = vector.multi_reduction <add>, %31, %cst_19 [1] : vector<256x256xf32> to vector<256xf32>
      %33 = vector.shape_cast %32 : vector<256xf32> to vector<256x1xf32>
      %34 = arith.truncf %31 : vector<256x256xf32> to vector<256x256xbf16>
      %cst_20 = arith.constant dense<0.000000e+00> : vector<256x128xf32>
      %35 = tpu.matmul %34, %14, %cst_20 {dimension_numbers = #tpu.dot_dimension_numbers<[1], [0], [0], [1], [0, 0, 1, 1], [], []>} : vector<256x256xbf16>, vector<256x128xbf16>, vector<256x128xf32> -> vector<256x128xf32>
      %36 = vector.broadcast %33 : vector<256x1xf32> to vector<256x128xf32>
      %37 = arith.mulf %13, %36 : vector<256x128xf32>
      %38 = vector.shape_cast %37 : vector<256x128xf32> to vector<32x8x128xf32>
      %cst_21 = arith.constant dense<0.000000e+00> : vector<8x128xf32>
      %39 = vector.multi_reduction <add>, %38, %cst_21 [0] : vector<32x8x128xf32> to vector<8x128xf32>
      %40 = arith.mulf %13, %35 : vector<256x128xf32>
      %41 = vector.shape_cast %40 : vector<256x128xf32> to vector<32x8x128xf32>
      %cst_22 = arith.constant dense<0.000000e+00> : vector<8x128xf32>
      %42 = vector.multi_reduction <add>, %41, %cst_22 [0] : vector<32x8x128xf32> to vector<8x128xf32>
      %c0_23 = arith.constant 0 : index
      %c0_24 = arith.constant 0 : index
      %43 = vector.load %arg12[%c0_23, %c0_24] : memref<8x128xf32, #tpu.memory_space<vmem>>, vector<8x128xf32>
      %44 = arith.addf %43, %39 : vector<8x128xf32>
      %c0_25 = arith.constant 0 : index
      %c0_26 = arith.constant 0 : index
      %45 = vector.load %arg12[%c0_25, %c0_26] : memref<8x128xf32, #tpu.memory_space<vmem>>, vector<8x128xf32>
      tpu.vector_store %arg12[%c0_25, %c0_26], %44 {strides = array<i32>} : memref<8x128xf32, #tpu.memory_space<vmem>>, vector<8x128xf32>,
      %c0_27 = arith.constant 0 : index
      %c0_28 = arith.constant 0 : index
      %46 = vector.load %arg13[%c0_27, %c0_28] : memref<8x128xf32, #tpu.memory_space<vmem>>, vector<8x128xf32>
      %47 = arith.addf %46, %42 : vector<8x128xf32>
      %c0_29 = arith.constant 0 : index
      %c0_30 = arith.constant 0 : index
      %48 = vector.load %arg13[%c0_29, %c0_30] : memref<8x128xf32, #tpu.memory_space<vmem>>, vector<8x128xf32>
      tpu.vector_store %arg13[%c0_29, %c0_30], %47 {strides = array<i32>} : memref<8x128xf32, #tpu.memory_space<vmem>>, vector<8x128xf32>,
    } else {
    }
    return
  }
  func.func @transform_0(%arg0: i32, %arg1: i32, %arg2: memref<4xi32, #tpu.memory_space<smem>>, %arg3: memref<4xi32, #tpu.memory_space<smem>>, %arg4: memref<4xi32, #tpu.memory_space<smem>>) -> (i32, i32) {
    %c0_i32 = arith.constant 0 : i32
    %c0_i32_0 = arith.constant 0 : i32
    return %arg0, %c0_i32 : i32, i32
  }
  func.func @transform_1(%arg0: i32, %arg1: i32, %arg2: memref<4xi32, #tpu.memory_space<smem>>, %arg3: memref<4xi32, #tpu.memory_space<smem>>, %arg4: memref<4xi32, #tpu.memory_space<smem>>) -> (i32, i32) {
    %c0_i32 = arith.constant 0 : i32
    %c0_i32_0 = arith.constant 0 : i32
    return %arg0, %c0_i32 : i32, i32
  }
  func.func @transform_2(%arg0: i32, %arg1: i32, %arg2: memref<4xi32, #tpu.memory_space<smem>>, %arg3: memref<4xi32, #tpu.memory_space<smem>>, %arg4: memref<4xi32, #tpu.memory_space<smem>>) -> (i32, i32) {
    %c0_i32 = arith.constant 0 : i32
    %c0_i32_0 = arith.constant 0 : i32
    return %arg0, %c0_i32 : i32, i32
  }
  func.func @transform_3(%arg0: i32, %arg1: i32, %arg2: memref<4xi32, #tpu.memory_space<smem>>, %arg3: memref<4xi32, #tpu.memory_space<smem>>, %arg4: memref<4xi32, #tpu.memory_space<smem>>) -> (i32, i32) {
    %c2_i32 = arith.constant 2 : i32
    %0 = arith.muli %arg0, %c2_i32 : i32
    %1 = arith.addi %0, %arg1 : i32
    %2 = arith.index_cast %1 : i32 to index
    %3 = memref.load %arg4[%2] : memref<4xi32, #tpu.memory_space<smem>>
    %c0_i32 = arith.constant 0 : i32
    %c0_i32_0 = arith.constant 0 : i32
    return %3, %c0_i32 : i32, i32
  }
  func.func @transform_4(%arg0: i32, %arg1: i32, %arg2: memref<4xi32, #tpu.memory_space<smem>>, %arg3: memref<4xi32, #tpu.memory_space<smem>>, %arg4: memref<4xi32, #tpu.memory_space<smem>>) -> (i32, i32) {
    %c2_i32 = arith.constant 2 : i32
    %0 = arith.muli %arg0, %c2_i32 : i32
    %1 = arith.addi %0, %arg1 : i32
    %2 = arith.index_cast %1 : i32 to index
    %3 = memref.load %arg4[%2] : memref<4xi32, #tpu.memory_space<smem>>
    %c0_i32 = arith.constant 0 : i32
    %c0_i32_0 = arith.constant 0 : i32
    return %c0_i32, %3 : i32, i32
  }
  func.func @transform_5(%arg0: i32, %arg1: i32, %arg2: memref<4xi32, #tpu.memory_space<smem>>, %arg3: memref<4xi32, #tpu.memory_space<smem>>, %arg4: memref<4xi32, #tpu.memory_space<smem>>) -> (i32, i32) {
    %c2_i32 = arith.constant 2 : i32
    %0 = arith.muli %arg0, %c2_i32 : i32
    %1 = arith.addi %0, %arg1 : i32
    %2 = arith.index_cast %1 : i32 to index
    %3 = memref.load %arg4[%2] : memref<4xi32, #tpu.memory_space<smem>>
    %c0_i32 = arith.constant 0 : i32
    %c0_i32_0 = arith.constant 0 : i32
    return %3, %c0_i32 : i32, i32
  }
  func.func @transform_6(%arg0: i32, %arg1: i32, %arg2: memref<4xi32, #tpu.memory_space<smem>>, %arg3: memref<4xi32, #tpu.memory_space<smem>>, %arg4: memref<4xi32, #tpu.memory_space<smem>>) -> (i32, i32) {
    %c2_i32 = arith.constant 2 : i32
    %0 = arith.muli %arg0, %c2_i32 : i32
    %1 = arith.addi %0, %arg1 : i32
    %2 = arith.index_cast %1 : i32 to index
    %3 = memref.load %arg3[%2] : memref<4xi32, #tpu.memory_space<smem>>
    %4 = arith.index_cast %1 : i32 to index
    %5 = memref.load %arg4[%4] : memref<4xi32, #tpu.memory_space<smem>>
    %c0_i32 = arith.constant 0 : i32
    return %3, %5 : i32, i32
  }
  func.func @transform_7(%arg0: i32, %arg1: i32, %arg2: memref<4xi32, #tpu.memory_space<smem>>, %arg3: memref<4xi32, #tpu.memory_space<smem>>, %arg4: memref<4xi32, #tpu.memory_space<smem>>) -> (i32, i32) {
    %c0_i32 = arith.constant 0 : i32
    %c0_i32_0 = arith.constant 0 : i32
    return %arg0, %c0_i32 : i32, i32
  }
  func.func @transform_8(%arg0: i32, %arg1: i32, %arg2: memref<4xi32, #tpu.memory_space<smem>>, %arg3: memref<4xi32, #tpu.memory_space<smem>>, %arg4: memref<4xi32, #tpu.memory_space<smem>>) -> (i32, i32) {
    %c0_i32 = arith.constant 0 : i32
    %c0_i32_0 = arith.constant 0 : i32
    return %arg0, %c0_i32 : i32, i32
  }
}

module attributes {stable_mosaic.version = 11 : i64} {
  func.func @_predictor_kernel(%arg0: i32, %arg1: memref<512x32xf32, #tpu.memory_space<vmem>>, %arg2: memref<32x128xf32, #tpu.memory_space<vmem>>, %arg3: memref<1x128xf32, #tpu.memory_space<vmem>>, %arg4: memref<512x128xf32, #tpu.memory_space<vmem>>, %arg5: memref<512x128xbf16, #tpu.memory_space<vmem>>) attributes {dimension_semantics = [#tpu.dimension_semantics<parallel>], iteration_bounds = array<i64: 1>, scalar_prefetch = 0 : i64, scratch_operands = 0 : i64, tpu.core_type = #tpu.core_type<tc>, window_params = [{transform_indices = @transform_0, window_bounds = array<i64: 512, 32>}, {pipeline_mode = #tpu.pipeline_mode<synchronous>, transform_indices = @transform_1, window_bounds = array<i64: 32, 128>}, {pipeline_mode = #tpu.pipeline_mode<synchronous>, transform_indices = @transform_2, window_bounds = array<i64: 1, 128>}, {transform_indices = @transform_3, window_bounds = array<i64: 512, 128>}, {transform_indices = @transform_4, window_bounds = array<i64: 512, 128>}]} {
    %c0 = arith.constant 0 : index
    %c0_0 = arith.constant 0 : index
    %0 = vector.load %arg1[%c0, %c0_0] : memref<512x32xf32, #tpu.memory_space<vmem>>, vector<512x32xf32>
    %c0_1 = arith.constant 0 : index
    %c0_2 = arith.constant 0 : index
    %1 = vector.load %arg2[%c0_1, %c0_2] : memref<32x128xf32, #tpu.memory_space<vmem>>, vector<32x128xf32>
    %cst = arith.constant dense<0.000000e+00> : vector<512x128xf32>
    %2 = tpu.matmul %0, %1, %cst {dimension_numbers = #tpu.dot_dimension_numbers<[1], [0], [0], [1], [0, 0, 1, 1], [], []>} : vector<512x32xf32>, vector<32x128xf32>, vector<512x128xf32> -> vector<512x128xf32>
    %c0_3 = arith.constant 0 : index
    %c0_4 = arith.constant 0 : index
    %3 = vector.load %arg3[%c0_3, %c0_4] : memref<1x128xf32, #tpu.memory_space<vmem>>, vector<1x128xf32>
    %4 = vector.broadcast %3 : vector<1x128xf32> to vector<512x128xf32>
    %5 = arith.addf %2, %4 : vector<512x128xf32>
    %cst_5 = arith.constant dense<0xFF800000> : vector<512xf32>
    %6 = vector.multi_reduction <maximumf>, %5, %cst_5 [1] : vector<512x128xf32> to vector<512xf32>
    %7 = vector.shape_cast %6 : vector<512xf32> to vector<512x1xf32>
    %8 = vector.broadcast %7 : vector<512x1xf32> to vector<512x128xf32>
    %9 = arith.subf %5, %8 : vector<512x128xf32>
    %10 = math.exp %9 : vector<512x128xf32>
    %cst_6 = arith.constant dense<0.000000e+00> : vector<512xf32>
    %11 = vector.multi_reduction <add>, %10, %cst_6 [1] : vector<512x128xf32> to vector<512xf32>
    %12 = vector.shape_cast %11 : vector<512xf32> to vector<512x1xf32>
    %13 = tpu.reciprocal %12 {approx = true} : vector<512x1xf32> -> vector<512x1xf32>
    %14 = vector.broadcast %13 : vector<512x1xf32> to vector<512x128xf32>
    %15 = arith.mulf %10, %14 : vector<512x128xf32>
    %c0_7 = arith.constant 0 : index
    %c0_8 = arith.constant 0 : index
    %16 = vector.load %arg4[%c0_7, %c0_8] : memref<512x128xf32, #tpu.memory_space<vmem>>, vector<512x128xf32>
    tpu.vector_store %arg4[%c0_7, %c0_8], %15 {strides = array<i32>} : memref<512x128xf32, #tpu.memory_space<vmem>>, vector<512x128xf32>,
    %17 = arith.truncf %15 : vector<512x128xf32> to vector<512x128xbf16>
    %c0_9 = arith.constant 0 : index
    %c0_10 = arith.constant 0 : index
    %18 = vector.load %arg5[%c0_9, %c0_10] : memref<512x128xbf16, #tpu.memory_space<vmem>>, vector<512x128xbf16>
    tpu.vector_store %arg5[%c0_9, %c0_10], %17 {strides = array<i32>} : memref<512x128xbf16, #tpu.memory_space<vmem>>, vector<512x128xbf16>,
    return
  }
  func.func @transform_0(%arg0: i32) -> (i32, i32) {
    %c0_i32 = arith.constant 0 : i32
    %c0_i32_0 = arith.constant 0 : i32
    return %arg0, %c0_i32 : i32, i32
  }
  func.func @transform_1(%arg0: i32) -> (i32, i32) {
    %c0_i32 = arith.constant 0 : i32
    %c0_i32_0 = arith.constant 0 : i32
    %c0_i32_1 = arith.constant 0 : i32
    return %c0_i32, %c0_i32_0 : i32, i32
  }
  func.func @transform_2(%arg0: i32) -> (i32, i32) {
    %c0_i32 = arith.constant 0 : i32
    %c0_i32_0 = arith.constant 0 : i32
    %c0_i32_1 = arith.constant 0 : i32
    return %c0_i32, %c0_i32_0 : i32, i32
  }
  func.func @transform_3(%arg0: i32) -> (i32, i32) {
    %c0_i32 = arith.constant 0 : i32
    %c0_i32_0 = arith.constant 0 : i32
    return %arg0, %c0_i32 : i32, i32
  }
  func.func @transform_4(%arg0: i32) -> (i32, i32) {
    %c0_i32 = arith.constant 0 : i32
    %c0_i32_0 = arith.constant 0 : i32
    return %arg0, %c0_i32 : i32, i32
  }
}

</mosaic_0001>

<bundles_post_ra>
// kernel: mincut_refinement_forward.2
= control target key start
LH: loop header
LB: loop body
LE: loop exit
PB: predicated region body
PF: predicated region fallthrough
CT: control target
= control target key end

     0   :  { %vm88_vm0 = vcmask 261120   ;;  %s3152_s1 = inlined_call_operand.vmem [shape: f32[32,128], index: 1, kind: input, shape index: {}]   ;;  %s3153_s0 = inlined_call_operand.vmem [shape: f32[512,32], index: 0, kind: input, shape index: {}]   ;;  %s3154_s2 = inlined_call_operand.vmem [shape: f32[1,128], index: 2, kind: input, shape index: {}]   ;;  %s3155_s3 = inlined_call_operand.vmem [shape: f32[512,128], index: 3, kind: output, shape index: {0}]   ;;  %s3156_s4 = inlined_call_operand.vmem [shape: bf16[512,128], index: 4, kind: output, shape index: {1}]  }
   0x1   :  { %v83_v0 = vld [vmem:[%s3152_s1 + $0x18] sm:$0xff]  ;;  %v82_v1 = vld [vmem:[%s3152_s1 + $0x10] sm:$0xff]  ;;  %v81_v2 = vld [vmem:[%s3152_s1 + $0x8] sm:$0xff] }
   0x2   :  { %293 = vmatpush.msra.mxu0 %v83_v0  ;;  %1521 = vmatpush.msra.mxu1 %v83_v0  ;;  %v80_v3 = vld [vmem:[%s3152_s1] sm:$0xff]  ;;  %v17_v8 = vld [vmem:[%s3153_s0 + $0x8] sm:$0xff]  ;;  %v18_v12 = vld [vmem:[%s3153_s0 + $0x10] sm:$0xff] }
   0x3   :  { %1522 = vmatpush.msra.mxu2 %v83_v0  ;;  %1523 = vmatpush.msra.mxu3 %v83_v0  ;;  %v16_v4 = vld [vmem:[%s3153_s0] sm:$0xff]  ;;  %v33_v9 = vld [vmem:[%s3153_s0 + $0x88] sm:$0xff]  ;;  %v34_v13 = vld [vmem:[%s3153_s0 + $0x90] sm:$0xff] }
   0x4   :  { %294 = vmatpush.msra.mxu0 %v82_v1  ;;  %1524 = vmatpush.msra.mxu1 %v82_v1  ;;  %v32_v5 = vld [vmem:[%s3153_s0 + $0x80] sm:$0xff]  ;;  %v49_v10 = vld [vmem:[%s3153_s0 + $0x108] sm:$0xff]  ;;  %v50_v14 = vld [vmem:[%s3153_s0 + $0x110] sm:$0xff] }
   0x5   :  { %1525 = vmatpush.msra.mxu2 %v82_v1  ;;  %1526 = vmatpush.msra.mxu3 %v82_v1  ;;  %v48_v6 = vld [vmem:[%s3153_s0 + $0x100] sm:$0xff]  ;;  %v65_v11 = vld [vmem:[%s3153_s0 + $0x188] sm:$0xff]  ;;  %v66_v15 = vld [vmem:[%s3153_s0 + $0x190] sm:$0xff] }
   0x6   :  { %295 = vmatpush.msra.mxu0 %v81_v2  ;;  %1527 = vmatpush.msra.mxu1 %v81_v2  ;;  %v64_v7 = vld [vmem:[%s3153_s0 + $0x180] sm:$0xff]  ;;  %v19_v16 = vld [vmem:[%s3153_s0 + $0x18] sm:$0xff]  ;;  %v21_v24 = vld [vmem:[%s3153_s0 + $0x28] sm:$0xff] }
   0x7   :  { %1528 = vmatpush.msra.mxu2 %v81_v2  ;;  %1529 = vmatpush.msra.mxu3 %v81_v2  ;;  %v35_v17 = vld [vmem:[%s3153_s0 + $0x98] sm:$0xff]  ;;  %v20_v20 = vld [vmem:[%s3153_s0 + $0x20] sm:$0xff]  ;;  %v37_v25 = vld [vmem:[%s3153_s0 + $0xa8] sm:$0xff] }
   0x8   :  { %296 = vmatpush.msra.mxu0 %v80_v3  ;;  %1530 = vmatpush.msra.mxu1 %v80_v3  ;;  %v51_v18 = vld [vmem:[%s3153_s0 + $0x118] sm:$0xff]  ;;  %v36_v21 = vld [vmem:[%s3153_s0 + $0xa0] sm:$0xff]  ;;  %v53_v26 = vld [vmem:[%s3153_s0 + $0x128] sm:$0xff] }
   0x9   :  { %1531 = vmatpush.msra.mxu2 %v80_v3  ;;  %1532 = vmatpush.msra.mxu3 %v80_v3  ;;  %v67_v19 = vld [vmem:[%s3153_s0 + $0x198] sm:$0xff]  ;;  %v52_v22 = vld [vmem:[%s3153_s0 + $0x120] sm:$0xff]  ;;  %v69_v27 = vld [vmem:[%s3153_s0 + $0x1a8] sm:$0xff] }
   0xa   :  { %1266 = vmatmul.msk.f32.vlgmr.msra.gmra.mxu0 %vm88_vm0, %v16_v4  ;;  %1282 = vmatmul.msk.f32.vlgmr.msra.gmra.mxu1 %vm88_vm0, %v32_v5  ;;  %v68_v23 = vld [vmem:[%s3153_s0 + $0x1a0] sm:$0xff]  ;;  %v22_v28 = vld [vmem:[%s3153_s0 + $0x30] sm:$0xff]  ;;  %v23_v32 = vld [vmem:[%s3153_s0 + $0x38] sm:$0xff] }
   0xb   :  { %1298 = vmatmul.msk.f32.vlgmr.msra.gmra.mxu2 %vm88_vm0, %v48_v6  ;;  %1314 = vmatmul.msk.f32.vlgmr.msra.gmra.mxu3 %vm88_vm0, %v64_v7  ;;  %v38_v29 = vld [vmem:[%s3153_s0 + $0xb0] sm:$0xff]  ;;  %v39_v33 = vld [vmem:[%s3153_s0 + $0xb8] sm:$0xff]  ;;  %v24_v36 = vld [vmem:[%s3153_s0 + $0x40] sm:$0xff] }
   0xc   :  { %v54_v30 = vld [vmem:[%s3153_s0 + $0x130] sm:$0xff]  ;;  %v55_v34 = vld [vmem:[%s3153_s0 + $0x138] sm:$0xff]  ;;  %v40_v37 = vld [vmem:[%s3153_s0 + $0xc0] sm:$0xff] }
   0xd   :  { %v70_v31 = vld [vmem:[%s3153_s0 + $0x1b0] sm:$0xff]  ;;  %v71_v35 = vld [vmem:[%s3153_s0 + $0x1b8] sm:$0xff]  ;;  %v56_v38 = vld [vmem:[%s3153_s0 + $0x140] sm:$0xff] }
   0xe   :  { %v72_v39 = vld [vmem:[%s3153_s0 + $0x1c0] sm:$0xff]  ;;  %v25_v40 = vld [vmem:[%s3153_s0 + $0x48] sm:$0xff]  ;;  %v26_v44 = vld [vmem:[%s3153_s0 + $0x50] sm:$0xff] }
   0xf   :  { %v41_v41 = vld [vmem:[%s3153_s0 + $0xc8] sm:$0xff]  ;;  %v42_v45 = vld [vmem:[%s3153_s0 + $0xd0] sm:$0xff]  ;;  %v27_v48 = vld [vmem:[%s3153_s0 + $0x58] sm:$0xff] }
  0x10   :  { %v57_v42 = vld [vmem:[%s3153_s0 + $0x148] sm:$0xff]  ;;  %v58_v46 = vld [vmem:[%s3153_s0 + $0x150] sm:$0xff]  ;;  %v43_v49 = vld [vmem:[%s3153_s0 + $0xd8] sm:$0xff] }
  0x11   :  { %v73_v43 = vld [vmem:[%s3153_s0 + $0x1c8] sm:$0xff]  ;;  %v74_v47 = vld [vmem:[%s3153_s0 + $0x1d0] sm:$0xff]  ;;  %v59_v50 = vld [vmem:[%s3153_s0 + $0x158] sm:$0xff] }
  0x12   :  { %1267 = vmatmul.msk.f32.gmra.mxu0 %vm88_vm0, %v17_v8  ;;  %1283 = vmatmul.msk.f32.gmra.mxu1 %vm88_vm0, %v33_v9  ;;  %v75_v51 = vld [vmem:[%s3153_s0 + $0x1d8] sm:$0xff]  ;;  %v60_v52 = vld [vmem:[%s3153_s0 + $0x160] sm:$0xff]  ;;  %v61_v56 = vld [vmem:[%s3153_s0 + $0x168] sm:$0xff] }
  0x13   :  { %1299 = vmatmul.msk.f32.gmra.mxu2 %vm88_vm0, %v49_v10  ;;  %1315 = vmatmul.msk.f32.gmra.mxu3 %vm88_vm0, %v65_v11  ;;  %v28_v53 = vld [vmem:[%s3153_s0 + $0x60] sm:$0xff]  ;;  %v45_v57 = vld [vmem:[%s3153_s0 + $0xe8] sm:$0xff]  ;;  %v30_v60 = vld [vmem:[%s3153_s0 + $0x70] sm:$0xff] }
  0x14   :  { %v76_v54 = vld [vmem:[%s3153_s0 + $0x1e0] sm:$0xff]  ;;  %v29_v58 = vld [vmem:[%s3153_s0 + $0x68] sm:$0xff]  ;;  %v46_v61 = vld [vmem:[%s3153_s0 + $0xf0] sm:$0xff] }
  0x15   :  { %v44_v55 = vld [vmem:[%s3153_s0 + $0xe0] sm:$0xff]  ;;  %v77_v59 = vld [vmem:[%s3153_s0 + $0x1e8] sm:$0xff]  ;;  %v62_v62 = vld [vmem:[%s3153_s0 + $0x170] sm:$0xff] }
  0x16   :  { %v78_v63 = vld [vmem:[%s3153_s0 + $0x1f0] sm:$0xff]  ;;  %v2070_v0 = vld [vmem:[%s3154_s2] ss:$0 sm:$0xff]  ;;  %v31_v5 = vld [vmem:[%s3153_s0 + $0x78] sm:$0xff] }
  0x17   :  { %v63_v6 = vld [vmem:[%s3153_s0 + $0x178] sm:$0xff] }
  0x18   :  { %v79_v7 = vld [vmem:[%s3153_s0 + $0x1f8] sm:$0xff] }
  0x19   :  { %v47_v8 = vld [vmem:[%s3153_s0 + $0xf8] sm:$0xff] }
  0x1a   :  { %1268 = vmatmul.msk.f32.gmra.mxu0 %vm88_vm0, %v18_v12  ;;  %1284 = vmatmul.msk.f32.gmra.mxu1 %vm88_vm0, %v34_v13 }
  0x1b   :  { %1300 = vmatmul.msk.f32.gmra.mxu2 %vm88_vm0, %v50_v14  ;;  %1316 = vmatmul.msk.f32.gmra.mxu3 %vm88_vm0, %v66_v15 }
  0x22   :  { %1269 = vmatmul.msk.f32.gmra.mxu0 %vm88_vm0, %v19_v16  ;;  %1285 = vmatmul.msk.f32.gmra.mxu1 %vm88_vm0, %v35_v17 }
  0x23   :  { %1301 = vmatmul.msk.f32.gmra.mxu2 %vm88_vm0, %v51_v18  ;;  %1317 = vmatmul.msk.f32.gmra.mxu3 %vm88_vm0, %v67_v19 }
  0x2a   :  { %1270 = vmatmul.msk.f32.gmra.mxu0 %vm88_vm0, %v20_v20  ;;  %1286 = vmatmul.msk.f32.gmra.mxu1 %vm88_vm0, %v36_v21 }
  0x2b   :  { %1302 = vmatmul.msk.f32.gmra.mxu2 %vm88_vm0, %v52_v22  ;;  %1318 = vmatmul.msk.f32.gmra.mxu3 %vm88_vm0, %v68_v23 }
  0x32   :  { %1271 = vmatmul.msk.f32.gmra.mxu0 %vm88_vm0, %v21_v24  ;;  %1287 = vmatmul.msk.f32.gmra.mxu1 %vm88_vm0, %v37_v25 }
  0x33   :  { %1303 = vmatmul.msk.f32.gmra.mxu2 %vm88_vm0, %v53_v26  ;;  %1319 = vmatmul.msk.f32.gmra.mxu3 %vm88_vm0, %v69_v27 }
  0x3a   :  { %1272 = vmatmul.msk.f32.gmra.mxu0 %vm88_vm0, %v22_v28  ;;  %1288 = vmatmul.msk.f32.gmra.mxu1 %vm88_vm0, %v38_v29 }
  0x3b   :  { %1304 = vmatmul.msk.f32.gmra.mxu2 %vm88_vm0, %v54_v30  ;;  %1320 = vmatmul.msk.f32.gmra.mxu3 %vm88_vm0, %v70_v31 }
  0x42   :  { %1273 = vmatmul.msk.f32.gmra.mxu0 %vm88_vm0, %v23_v32  ;;  %1289 = vmatmul.msk.f32.gmra.mxu1 %vm88_vm0, %v39_v33 }
  0x43   :  { %1305 = vmatmul.msk.f32.gmra.mxu2 %vm88_vm0, %v55_v34  ;;  %1321 = vmatmul.msk.f32.gmra.mxu3 %vm88_vm0, %v71_v35 }
  0x4a   :  { %1274 = vmatmul.msk.f32.gmra.mxu0 %vm88_vm0, %v24_v36  ;;  %1290 = vmatmul.msk.f32.gmra.mxu1 %vm88_vm0, %v40_v37 }
  0x4b   :  { %1306 = vmatmul.msk.f32.gmra.mxu2 %vm88_vm0, %v56_v38  ;;  %1322 = vmatmul.msk.f32.gmra.mxu3 %vm88_vm0, %v72_v39 }
  0x52   :  { %1275 = vmatmul.msk.f32.gmra.mxu0 %vm88_vm0, %v25_v40  ;;  %1291 = vmatmul.msk.f32.gmra.mxu1 %vm88_vm0, %v41_v41 }
  0x53   :  { %1307 = vmatmul.msk.f32.gmra.mxu2 %vm88_vm0, %v57_v42  ;;  %1323 = vmatmul.msk.f32.gmra.mxu3 %vm88_vm0, %v73_v43 }
  0x5a   :  { %1276 = vmatmul.msk.f32.gmra.mxu0 %vm88_vm0, %v26_v44  ;;  %1292 = vmatmul.msk.f32.gmra.mxu1 %vm88_vm0, %v42_v45 }
  0x5b   :  { %1308 = vmatmul.msk.f32.gmra.mxu2 %vm88_vm0, %v58_v46  ;;  %1324 = vmatmul.msk.f32.gmra.mxu3 %vm88_vm0, %v74_v47 }
  0x62   :  { %1277 = vmatmul.msk.f32.gmra.mxu0 %vm88_vm0, %v27_v48  ;;  %1293 = vmatmul.msk.f32.gmra.mxu1 %vm88_vm0, %v43_v49 }
  0x63   :  { %1309 = vmatmul.msk.f32.gmra.mxu2 %vm88_vm0, %v59_v50  ;;  %1325 = vmatmul.msk.f32.gmra.mxu3 %vm88_vm0, %v75_v51 }
  0x6a   :  { %1278 = vmatmul.msk.f32.gmra.mxu0 %vm88_vm0, %v28_v53  ;;  %1294 = vmatmul.msk.f32.gmra.mxu1 %vm88_vm0, %v44_v55 }
  0x6b   :  { %1310 = vmatmul.msk.f32.gmra.mxu2 %vm88_vm0, %v60_v52  ;;  %1326 = vmatmul.msk.f32.gmra.mxu3 %vm88_vm0, %v76_v54 }
  0x72   :  { %1295 = vmatmul.msk.f32.gmra.mxu1 %vm88_vm0, %v45_v57  ;;  %1279 = vmatmul.msk.f32.gmra.mxu0 %vm88_vm0, %v29_v58 }
  0x73   :  { %1311 = vmatmul.msk.f32.gmra.mxu2 %vm88_vm0, %v61_v56  ;;  %1327 = vmatmul.msk.f32.gmra.mxu3 %vm88_vm0, %v77_v59 }
  0x7a   :  { %1280 = vmatmul.msk.f32.gmra.mxu0 %vm88_vm0, %v30_v60  ;;  %1296 = vmatmul.msk.f32.gmra.mxu1 %vm88_vm0, %v46_v61 }
  0x7b   :  { %1312 = vmatmul.msk.f32.gmra.mxu2 %vm88_vm0, %v62_v62  ;;  %1328 = vmatmul.msk.f32.gmra.mxu3 %vm88_vm0, %v78_v63 }
  0x82   :  { %1281 = vmatmul.msk.f32.gmra.mxu0 %vm88_vm0, %v31_v5  ;;  %1297 = vmatmul.msk.f32.gmra.mxu1 %vm88_vm0, %v47_v8 }
  0x83   :  { %1313 = vmatmul.msk.f32.gmra.mxu2 %vm88_vm0, %v63_v6  ;;  %1329 = vmatmul.msk.f32.gmra.mxu3 %vm88_vm0, %v79_v7 }
  0x87   :  { %v298_v1 = vpop.f32.mrf.mxu0  ;;  %v346_v2 = vpop.f32.mrf.mxu1 }
  0x88   :  { %v2073_v3 = vadd.f32 %v2070_v0, %v298_v1  ;;  %v2076_v4 = vadd.f32 %v2070_v0, %v346_v2 }
  0x8a   :  { %522 = vmax.xlane.f32.xlu1 %v2076_v4  ;;  %490 = vmax.xlane.f32.xlu0 %v2073_v3 }
  0x8e   :  { %v394_v9 = vpop.f32.mrf.mxu2  ;;  %v442_v10 = vpop.f32.mrf.mxu3 }
  0x8f   :  { %v2097_v11 = vadd.f32 %v2070_v0, %v394_v9  ;;  %v301_v12 = vpop.f32.mrf.mxu0  ;;  %v2100_v13 = vadd.f32 %v2070_v0, %v442_v10  ;;  %v349_v14 = vpop.f32.mrf.mxu1 }
  0x90   :  { %v2105_v15 = vadd.f32 %v2070_v0, %v349_v14  ;;  %v2111_v20 = vadd.f32 %v2070_v0, %v301_v12 }
  0x91   :  { %554 = vmax.xlane.f32.xlu2 %v2097_v11 }
  0x92   :  { %586 = vmax.xlane.f32.xlu0 %v2100_v13 }
  0x96   :  { %v397_v16 = vpop.f32.mrf.mxu2  ;;  %v445_v17 = vpop.f32.mrf.mxu3 }
  0x97   :  { %v2108_v18 = vadd.f32 %v2070_v0, %v445_v17  ;;  %v304_v19 = vpop.f32.mrf.mxu0  ;;  %v352_v22 = vpop.f32.mrf.mxu1  ;;  %v2123_v26 = vadd.f32 %v2070_v0, %v397_v16 }
  0x98   :  { %v2117_v21 = vadd.f32 %v2070_v0, %v304_v19  ;;  %v2132_v29 = vadd.f32 %v2070_v0, %v352_v22 }
  0x99   :  { %524 = vmax.xlane.f32.xlu2 %v2105_v15  ;;  %588 = vmax.xlane.f32.xlu1 %v2108_v18 }
  0x9a   :  { %492 = vmax.xlane.f32.xlu0 %v2111_v20 }
  0x9e   :  { %v400_v23 = vpop.f32.mrf.mxu2  ;;  %v448_v24 = vpop.f32.mrf.mxu3 }
  0x9f   :  { %v2120_v25 = vadd.f32 %v2070_v0, %v448_v24  ;;  %v307_v27 = vpop.f32.mrf.mxu0  ;;  %v2129_v28 = vadd.f32 %v2070_v0, %v400_v23  ;;  %v355_v32 = vpop.f32.mrf.mxu1 }
  0xa0   :  { %v2141_v35 = vadd.f32 %v2070_v0, %v307_v27  ;;  %v2153_v40 = vadd.f32 %v2070_v0, %v355_v32 }
  0xa1   :  { %590 = vmax.xlane.f32.xlu2 %v2120_v25  ;;  %494 = vmax.xlane.f32.xlu1 %v2117_v21 }
  0xa2   :  { %556 = vmax.xlane.f32.xlu0 %v2123_v26 }
  0xa6   :  { %v403_v30 = vpop.f32.mrf.mxu2  ;;  %v451_v34 = vpop.f32.mrf.mxu3 }
  0xa7   :  { %v2135_v31 = vadd.f32 %v2070_v0, %v403_v30  ;;  %v310_v33 = vpop.f32.mrf.mxu0  ;;  %v2147_v37 = vadd.f32 %v2070_v0, %v451_v34  ;;  %v358_v38 = vpop.f32.mrf.mxu1 }
  0xa8   :  { %v2144_v36 = vadd.f32 %v2070_v0, %v310_v33  ;;  %v2156_v41 = vadd.f32 %v2070_v0, %v358_v38 }
  0xa9   :  { %560 = vmax.xlane.f32.xlu2 %v2135_v31  ;;  %558 = vmax.xlane.f32.xlu1 %v2129_v28 }
  0xaa   :  { %526 = vmax.xlane.f32.xlu0 %v2132_v29 }
  0xae   :  { %v406_v39 = vpop.f32.mrf.mxu2  ;;  %v454_v43 = vpop.f32.mrf.mxu3 }
  0xaf   :  { %v2159_v42 = vadd.f32 %v2070_v0, %v406_v39  ;;  %v313_v44 = vpop.f32.mrf.mxu0  ;;  %v361_v45 = vpop.f32.mrf.mxu1  ;;  %v2168_v47 = vadd.f32 %v2070_v0, %v454_v43 }
  0xb0   :  { %v2165_v46 = vadd.f32 %v2070_v0, %v313_v44  ;;  %v2171_v48 = vadd.f32 %v2070_v0, %v361_v45 }
  0xb1   :  { %498 = vmax.xlane.f32.xlu2 %v2144_v36  ;;  %496 = vmax.xlane.f32.xlu1 %v2141_v35 }
  0xb2   :  { %592 = vmax.xlane.f32.xlu0 %v2147_v37 }
  0xb6   :  { %v409_v49 = vpop.f32.mrf.mxu2  ;;  %v457_v50 = vpop.f32.mrf.mxu3 }
  0xb7   :  { %v316_v51 = vpop.f32.mrf.mxu0  ;;  %v2177_v52 = vadd.f32 %v2070_v0, %v409_v49  ;;  %v2180_v53 = vadd.f32 %v2070_v0, %v457_v50  ;;  %v364_v55 = vpop.f32.mrf.mxu1 }
  0xb8   :  { %v2183_v54 = vadd.f32 %v2070_v0, %v316_v51  ;;  %v2189_v58 = vadd.f32 %v2070_v0, %v364_v55 }
  0xb9   :  { %530 = vmax.xlane.f32.xlu2 %v2156_v41  ;;  %528 = vmax.xlane.f32.xlu1 %v2153_v40 }
  0xba   :  { %562 = vmax.xlane.f32.xlu0 %v2159_v42 }
  0xbe   :  { %v412_v56 = vpop.f32.mrf.mxu2  ;;  %v460_v57 = vpop.f32.mrf.mxu3 }
  0xbf   :  { %v2192_v59 = vadd.f32 %v2070_v0, %v412_v56  ;;  %v2195_v60 = vadd.f32 %v2070_v0, %v460_v57  ;;  %v319_v61 = vpop.f32.mrf.mxu0  ;;  %v367_v62 = vpop.f32.mrf.mxu1 }
  0xc0   :  { %v2201_v1 = vadd.f32 %v2070_v0, %v319_v61  ;;  %v2204_v2 = vadd.f32 %v2070_v0, %v367_v62 }
  0xc1   :  { %500 = vmax.xlane.f32.xlu2 %v2165_v46  ;;  %594 = vmax.xlane.f32.xlu1 %v2168_v47 }
  0xc2   :  { %532 = vmax.xlane.f32.xlu0 %v2171_v48 }
  0xc6   :  { %v415_v63 = vpop.f32.mrf.mxu2  ;;  %v463_v6 = vpop.f32.mrf.mxu3 }
  0xc7   :  { %v2207_v5 = vadd.f32 %v2070_v0, %v415_v63  ;;  %v322_v7 = vpop.f32.mrf.mxu0  ;;  %v370_v8 = vpop.f32.mrf.mxu1  ;;  %v2216_v10 = vadd.f32 %v2070_v0, %v463_v6 }
  0xc8   :  { %v2213_v9 = vadd.f32 %v2070_v0, %v322_v7  ;;  %v2219_v12 = vadd.f32 %v2070_v0, %v370_v8 }
  0xc9   :  { %596 = vmax.xlane.f32.xlu2 %v2180_v53  ;;  %564 = vmax.xlane.f32.xlu1 %v2177_v52 }
  0xca   :  { %502 = vmax.xlane.f32.xlu0 %v2183_v54 }
  0xce   :  { %v418_v14 = vpop.f32.mrf.mxu2  ;;  %v466_v16 = vpop.f32.mrf.mxu3 }
  0xcf   :  { %v325_v17 = vpop.f32.mrf.mxu0  ;;  %v2225_v19 = vadd.f32 %v2070_v0, %v418_v14  ;;  %v2228_v22 = vadd.f32 %v2070_v0, %v466_v16  ;;  %v373_v24 = vpop.f32.mrf.mxu1 }
  0xd0   :  { %v2231_v23 = vadd.f32 %v2070_v0, %v325_v17  ;;  %v2237_v32 = vadd.f32 %v2070_v0, %v373_v24 }
  0xd1   :  { %566 = vmax.xlane.f32.xlu2 %v2192_v59  ;;  %534 = vmax.xlane.f32.xlu1 %v2189_v58 }
  0xd2   :  { %598 = vmax.xlane.f32.xlu0 %v2195_v60  ;;  %3197 = vst [vmem:[#allocation2_spill] sm:$0xff] %v2231_v23 }
  0xd3   :  { %3198 = vst [vmem:[#allocation3_spill] sm:$0xff] %v2237_v32 }
  0xd6   :  { %v421_v27 = vpop.f32.mrf.mxu2  ;;  %v469_v30 = vpop.f32.mrf.mxu3 }
  0xd7   :  { %v2240_v33 = vadd.f32 %v2070_v0, %v421_v27  ;;  %v2243_v34 = vadd.f32 %v2070_v0, %v469_v30  ;;  %v328_v38 = vpop.f32.mrf.mxu0  ;;  %v376_v39 = vpop.f32.mrf.mxu1 }
  0xd8   :  { %v2249_v44 = vadd.f32 %v2070_v0, %v328_v38  ;;  %v2252_v45 = vadd.f32 %v2070_v0, %v376_v39 }
  0xd9   :  { %536 = vmax.xlane.f32.xlu2 %v2204_v2  ;;  %504 = vmax.xlane.f32.xlu1 %v2201_v1  ;;  %3199 = vst [vmem:[#allocation4_spill] sm:$0xff] %v2240_v33 }
  0xda   :  { %568 = vmax.xlane.f32.xlu0 %v2207_v5  ;;  %3200 = vst [vmem:[#allocation5_spill] sm:$0xff] %v2243_v34 }
  0xdb   :  { %3201 = vst [vmem:[#allocation6_spill] sm:$0xff] %v2249_v44 }
  0xdc   :  { %3202 = vst [vmem:[#allocation7_spill] sm:$0xff] %v2252_v45 }
  0xde   :  { %v424_v43 = vpop.f32.mrf.mxu2  ;;  %v472_v50 = vpop.f32.mrf.mxu3 }
  0xdf   :  { %v2255_v49 = vadd.f32 %v2070_v0, %v424_v43  ;;  %v331_v51 = vpop.f32.mrf.mxu0  ;;  %v379_v55 = vpop.f32.mrf.mxu1  ;;  %v2261_v56 = vadd.f32 %v2070_v0, %v472_v50 }
  0xe0   :  { %v2264_v57 = vadd.f32 %v2070_v0, %v331_v51  ;;  %v2269_v62 = vadd.f32 %v2070_v0, %v379_v55 }
  0xe1   :  { %506 = vmax.xlane.f32.xlu2 %v2213_v9  ;;  %600 = vmax.xlane.f32.xlu1 %v2216_v10  ;;  %3203 = vst [vmem:[#allocation8_spill] sm:$0xff] %v2255_v49 }
  0xe2   :  { %538 = vmax.xlane.f32.xlu0 %v2219_v12  ;;  %3204 = vst [vmem:[#allocation9_spill] sm:$0xff] %v2261_v56 }
  0xe3   :  { %3205 = vst [vmem:[#allocation10_spill] sm:$0xff] %v2264_v57 }
  0xe4   :  { %3206 = vst [vmem:[#allocation11_spill] sm:$0xff] %v2269_v62 }
  0xe6   :  { %v427_v63 = vpop.f32.mrf.mxu2  ;;  %v475_v6 = vpop.f32.mrf.mxu3 }
  0xe7   :  { %v334_v7 = vpop.f32.mrf.mxu0  ;;  %v2279_v16 = vadd.f32 %v2070_v0, %v427_v63  ;;  %v2282_v17 = vadd.f32 %v2070_v0, %v475_v6  ;;  %v382_v30 = vpop.f32.mrf.mxu1 }
  0xe8   :  { %v2287_v27 = vadd.f32 %v2070_v0, %v334_v7  ;;  %v2297_v51 = vadd.f32 %v2070_v0, %v382_v30 }
  0xe9   :  { %602 = vmax.xlane.f32.xlu2 %v2228_v22  ;;  %570 = vmax.xlane.f32.xlu1 %v2225_v19  ;;  %3207 = vst [vmem:[#allocation12_spill] sm:$0xff] %v2279_v16 }
  0xea   :  { %508 = vmax.xlane.f32.xlu0 %v2231_v23  ;;  %3208 = vst [vmem:[#allocation13_spill] sm:$0xff] %v2282_v17 }
  0xeb   :  { %3209 = vst [vmem:[#allocation14_spill] sm:$0xff] %v2287_v27 }
  0xec   :  { %3210 = vst [vmem:[#allocation15_spill] sm:$0xff] %v2297_v51 }
  0xee   :  { %v430_v38 = vpop.f32.mrf.mxu2  ;;  %v478_v39 = vpop.f32.mrf.mxu3 }
  0xef   :  { %v2300_v55 = vadd.f32 %v2070_v0, %v430_v38  ;;  %v2305_v6 = vadd.f32 %v2070_v0, %v478_v39  ;;  %v337_v7 = vpop.f32.mrf.mxu0 }
  0xf0   :  { %v2315_v38 = vadd.f32 %v2070_v0, %v337_v7 }
  0xf1   :  { %572 = vmax.xlane.f32.xlu2 %v2240_v33  ;;  %540 = vmax.xlane.f32.xlu1 %v2237_v32  ;;  %3211 = vst [vmem:[#allocation16_spill] sm:$0xff] %v2300_v55 }
  0xf2   :  { %604 = vmax.xlane.f32.xlu0 %v2243_v34  ;;  %3212 = vst [vmem:[#allocation17_spill] sm:$0xff] %v2305_v6 }
  0xf3   :  { %3213 = vst [vmem:[#allocation18_spill] sm:$0xff] %v2315_v38 }
  0xf9   :  { %542 = vmax.xlane.f32.xlu2 %v2252_v45  ;;  %510 = vmax.xlane.f32.xlu1 %v2249_v44 }
  0xfa   :  { %574 = vmax.xlane.f32.xlu0 %v2255_v49 }
  0xfd   :  { %v2266_v61 = vpop.xlane.xlu0 %490  ;;  %v2274_v8 = vpop.xlane.xlu1 %522 }
 0x101   :  { %512 = vmax.xlane.f32.xlu2 %v2264_v57  ;;  %606 = vmax.xlane.f32.xlu1 %v2261_v56 }
 0x102   :  { %544 = vmax.xlane.f32.xlu0 %v2269_v62 }
 0x104   :  { %v2276_v14 = vpop.xlane.xlu2 %554 }
 0x105   :  { %v2284_v24 = vpop.xlane.xlu0 %586  ;;  %v650_v33 = vsub.f32 %v2097_v11, %v2276_v14 }
 0x106   :  { %v666_v11 = vsub.f32 %v2100_v13, %v2284_v24 }
 0x109   :  { %608 = vmax.xlane.f32.xlu2 %v2282_v17  ;;  %576 = vmax.xlane.f32.xlu1 %v2279_v16  ;;  %v433_v17 = vpop.f32.mrf.mxu2 }
 0x10a   :  { %514 = vmax.xlane.f32.xlu0 %v2287_v27  ;;  %v385_v27 = vpop.f32.mrf.mxu1 }
 0x10b   :  { %v2318_v62 = vadd.f32 %v2070_v0, %v385_v27 }
 0x10c   :  { %v2292_v43 = vpop.xlane.xlu2 %524  ;;  %v2294_v50 = vpop.xlane.xlu1 %588 }
 0x10d   :  { %v2302_v63 = vpop.xlane.xlu0 %492  ;;  %3214 = vst [vmem:[#allocation19_spill] sm:$0xff] %v2318_v62 }
 0x111   :  { %578 = vmax.xlane.f32.xlu2 %v2300_v55  ;;  %546 = vmax.xlane.f32.xlu1 %v2297_v51  ;;  %v2323_v55 = vadd.f32 %v2070_v0, %v433_v17  ;;  %v481_v51 = vpop.f32.mrf.mxu3 }
 0x112   :  { %610 = vmax.xlane.f32.xlu0 %v2305_v6  ;;  %v340_v6 = vpop.f32.mrf.mxu0  ;;  %v388_v57 = vpop.f32.mrf.mxu1  ;;  %v2336_v49 = vadd.f32 %v2070_v0, %v481_v51 }
 0x113   :  { %3215 = vst [vmem:[#allocation20_spill] sm:$0xff] %v2323_v55  ;;  %v2333_v27 = vadd.f32 %v2070_v0, %v340_v6 }
 0x114   :  { %v2310_v16 = vpop.xlane.xlu2 %590  ;;  %v2312_v30 = vpop.xlane.xlu1 %494  ;;  %3217 = vst [vmem:[#allocation22_spill] sm:$0xff] %v2336_v49 }
 0x115   :  { %v2320_v39 = vpop.xlane.xlu0 %556  ;;  %3216 = vst [vmem:[#allocation21_spill] sm:$0xff] %v2333_v27 }
 0x119   :  { %548 = vmax.xlane.f32.xlu2 %v2318_v62  ;;  %516 = vmax.xlane.f32.xlu1 %v2315_v38  ;;  %v2341_v62 = vadd.f32 %v2070_v0, %v388_v57  ;;  %v436_v38 = vpop.f32.mrf.mxu2 }
 0x11a   :  { %580 = vmax.xlane.f32.xlu0 %v2323_v55  ;;  %v484_v55 = vpop.f32.mrf.mxu3  ;;  %v343_v45 = vpop.f32.mrf.mxu0  ;;  %v2351_v51 = vadd.f32 %v2070_v0, %v436_v38 }
 0x11b   :  { %3218 = vst [vmem:[#allocation23_spill] sm:$0xff] %v2341_v62  ;;  %v2354_v34 = vadd.f32 %v2070_v0, %v484_v55  ;;  %v391_v38 = vpop.f32.mrf.mxu1 }
 0x11c   :  { %v2328_v56 = vpop.xlane.xlu2 %560  ;;  %v2330_v7 = vpop.xlane.xlu1 %558  ;;  %3219 = vst [vmem:[#allocation24_spill] sm:$0xff] %v2351_v51 }
 0x11d   :  { %v2338_v17 = vpop.xlane.xlu0 %526  ;;  %3220 = vst [vmem:[#allocation25_spill] sm:$0xff] %v2354_v34 }
 0x121   :  { %518 = vmax.xlane.f32.xlu2 %v2333_v27  ;;  %612 = vmax.xlane.f32.xlu1 %v2336_v49  ;;  %v2359_v27 = vadd.f32 %v2070_v0, %v343_v45  ;;  %v634_v49 = vsub.f32 %v2076_v4, %v2274_v8  ;;  %v439_v55 = vpop.f32.mrf.mxu2  ;;  %v2375_v8 = vadd.f32 %v2070_v0, %v391_v38 }
 0x122   :  { %550 = vmax.xlane.f32.xlu0 %v2341_v62  ;;  %v618_v62 = vsub.f32 %v2073_v3, %v2266_v61  ;;  %v487_v32 = vpop.f32.mrf.mxu3 }
 0x123   :  { %3221 = vst [vmem:[#allocation26_spill] sm:$0xff] %v2359_v27  ;;  %v714_v4 = vmul.f32 1.442695, %v634_v49  ;;  %v619_v49 = vsub.f32 %v2111_v20, %v2302_v63  ;;  %v667_v63 = vsub.f32 %v2108_v18, %v2294_v50 }
 0x124   :  { %v2346_v44 = vpop.xlane.xlu2 %498  ;;  %v2348_v6 = vpop.xlane.xlu1 %496  ;;  %v682_v61 = vmul.f32 1.442695, %v618_v62  ;;  %v778_v62 = vmul.f32 1.442695, %v666_v11 }
 0x125   :  { %v2356_v57 = vpop.xlane.xlu0 %592  ;;  %1534 = vpow2.f32 %v714_v4  ;;  %v684_v14 = vmul.f32 1.442695, %v619_v49 }
 0x126   :  { %1536 = vpow2.f32 %v682_v61  ;;  %v780_v61 = vmul.f32 1.442695, %v667_v63 }
 0x129   :  { %614 = vmax.xlane.f32.xlu2 %v2354_v34  ;;  %582 = vmax.xlane.f32.xlu1 %v2351_v51  ;;  %v2378_v34 = vadd.f32 %v2070_v0, %v439_v55  ;;  %v746_v51 = vmul.f32 1.442695, %v650_v33 }
 0x12a   :  { %520 = vmax.xlane.f32.xlu0 %v2359_v27  ;;  %v2383_v27 = vadd.f32 %v2070_v0, %v487_v32  ;;  %v635_v0 = vsub.f32 %v2105_v15, %v2292_v43  ;;  %v651_v15 = vsub.f32 %v2123_v26, %v2320_v39  ;;  %v620_v43 = vsub.f32 %v2117_v21, %v2312_v30 }
 0x12b   :  { %1538 = vpow2.f32 %v746_v51  ;;  %v2400_v24 = vpop.eup %1534  ;;  %v652_v39 = vsub.f32 %v2129_v28, %v2330_v7  ;;  %v636_v21 = vsub.f32 %v2132_v29, %v2338_v17  ;;  %v668_v30 = vsub.f32 %v2120_v25, %v2310_v16 }
 0x12c   :  { %v2370_v45 = vpop.xlane.xlu2 %530  ;;  %v2372_v23 = vpop.xlane.xlu1 %528  ;;  %v716_v38 = vmul.f32 1.442695, %v635_v0  ;;  %1540 = vpow2.f32 %v778_v62  ;;  %v748_v50 = vmul.f32 1.442695, %v651_v15  ;;  %v686_v49 = vmul.f32 1.442695, %v620_v43 }
 0x12d   :  { %v2380_v3 = vpop.xlane.xlu0 %562  ;;  %v2402_v55 = vpop.eup %1536  ;;  %1542 = vpow2.f32 %v684_v14  ;;  %v718_v7 = vmul.f32 1.442695, %v636_v21  ;;  %v782_v15 = vmul.f32 1.442695, %v668_v30  ;;  %v621_v25 = vsub.f32 %v2141_v35, %v2348_v6 }
 0x12e   :  { %1544 = vpow2.f32 %v716_v38  ;;  %v750_v38 = vmul.f32 1.442695, %v652_v39  ;;  %v637_v16 = vsub.f32 %v2153_v40, %v2372_v23  ;;  %v653_v17 = vsub.f32 %v2135_v31, %v2328_v56 }
 0x12f   :  { %1546 = vpow2.f32 %v780_v61  ;;  %v622_v23 = vsub.f32 %v2144_v36, %v2346_v44  ;;  %v669_v31 = vsub.f32 %v2147_v37, %v2356_v57  ;;  %v638_v56 = vsub.f32 %v2156_v41, %v2370_v45 }
 0x130   :  { %1548 = vpow2.f32 %v748_v50  ;;  %v720_v6 = vmul.f32 1.442695, %v637_v16  ;;  %v752_v21 = vmul.f32 1.442695, %v653_v17  ;;  %v654_v57 = vsub.f32 %v2159_v42, %v2380_v3 }
 0x131   :  { %584 = vmax.xlane.f32.xlu2 %v2378_v34  ;;  %552 = vmax.xlane.f32.xlu1 %v2375_v8  ;;  %v2404_v20 = vpop.eup %1538  ;;  %1550 = vpow2.f32 %v686_v49  ;;  %v688_v49 = vmul.f32 1.442695, %v621_v25  ;;  %v690_v36 = vmul.f32 1.442695, %v622_v23  ;;  %v722_v16 = vmul.f32 1.442695, %v638_v56 }
 0x132   :  { %616 = vmax.xlane.f32.xlu0 %v2383_v27  ;;  %v2421_v11 = vpop.eup %1540  ;;  %1552 = vpow2.f32 %v750_v38 }
 0x133   :  { %v2423_v0 = vpop.eup %1542  ;;  %1554 = vpow2.f32 %v718_v7 }
 0x134   :  { %v2394_v32 = vpop.xlane.xlu2 %500  ;;  %v2396_v33 = vpop.xlane.xlu1 %594  ;;  %1556 = vpow2.f32 %v782_v15  ;;  %v784_v15 = vmul.f32 1.442695, %v669_v31 }
 0x135   :  { %v2398_v13 = vpop.xlane.xlu0 %532  ;;  %v2425_v26 = vpop.eup %1544  ;;  %1558 = vpow2.f32 %v688_v49  ;;  %v670_v41 = vsub.f32 %v2168_v47, %v2396_v33  ;;  %v623_v45 = vsub.f32 %v2165_v46, %v2394_v32 }
 0x136   :  { %v2442_v63 = vpop.eup %1546  ;;  %1560 = vpow2.f32 %v720_v6  ;;  %v639_v33 = vsub.f32 %v2171_v48, %v2398_v13 }
 0x137   :  { %v2444_v43 = vpop.eup %1548  ;;  %1562 = vpow2.f32 %v752_v21  ;;  %v754_v21 = vmul.f32 1.442695, %v654_v57  ;;  %v786_v3 = vmul.f32 1.442695, %v670_v41  ;;  %v692_v31 = vmul.f32 1.442695, %v623_v45 }
 0x138   :  { %v2446_v29 = vpop.eup %1550  ;;  %1564 = vpow2.f32 %v690_v36 }
 0x139   :  { %842 = vadd.xlane.f32.xlu2 %v2400_v24  ;;  %810 = vadd.xlane.f32.xlu1 %v2402_v55  ;;  %v2463_v39 = vpop.eup %1552  ;;  %1566 = vpow2.f32 %v784_v15 }
 0x13a   :  { %874 = vadd.xlane.f32.xlu0 %v2404_v20  ;;  %v2465_v30 = vpop.eup %1554  ;;  %1568 = vpow2.f32 %v722_v16  ;;  %v724_v16 = vmul.f32 1.442695, %v639_v33 }
 0x13b   :  { %v2467_v40 = vpop.eup %1556  ;;  %1570 = vpow2.f32 %v754_v21 }
 0x13c   :  { %v2415_v51 = vpop.xlane.xlu2 %596  ;;  %v2417_v4 = vpop.xlane.xlu1 %564  ;;  %1572 = vpow2.f32 %v786_v3 }
 0x13d   :  { %v2419_v18 = vpop.xlane.xlu0 %502  ;;  %v2484_v25 = vpop.eup %1558  ;;  %v655_v46 = vsub.f32 %v2177_v52, %v2417_v4  ;;  %1574 = vpow2.f32 %v692_v31  ;;  %v671_v32 = vsub.f32 %v2180_v53, %v2415_v51 }
 0x13e   :  { %v2486_v17 = vpop.eup %1560  ;;  %1576 = vpow2.f32 %v724_v16  ;;  %v624_v4 = vsub.f32 %v2183_v54, %v2419_v18 }
 0x13f   :  { %v2488_v37 = vpop.eup %1562  ;;  %v756_v13 = vmul.f32 1.442695, %v655_v46  ;;  %v788_v41 = vmul.f32 1.442695, %v671_v32 }
 0x140   :  { %v2505_v23 = vpop.eup %1564  ;;  %v694_v31 = vmul.f32 1.442695, %v624_v4 }
 0x141   :  { %906 = vadd.xlane.f32.xlu1 %v2421_v11  ;;  %812 = vadd.xlane.f32.xlu2 %v2423_v0  ;;  %v2507_v56 = vpop.eup %1566  ;;  %1578 = vpow2.f32 %v756_v13 }
 0x142   :  { %844 = vadd.xlane.f32.xlu0 %v2425_v26  ;;  %v2509_v47 = vpop.eup %1568  ;;  %1580 = vpow2.f32 %v788_v41 }
 0x143   :  { %v2526_v57 = vpop.eup %1570  ;;  %1582 = vpow2.f32 %v694_v31 }
 0x144   :  { %v2436_v62 = vpop.xlane.xlu2 %566  ;;  %v2438_v14 = vpop.xlane.xlu1 %534 }
 0x145   :  { %v2440_v28 = vpop.xlane.xlu0 %598  ;;  %v2528_v45 = vpop.eup %1572  ;;  %v640_v53 = vsub.f32 %v2189_v58, %v2438_v14  ;;  %v656_v51 = vsub.f32 %v2192_v59, %v2436_v62 }
 0x146   :  { %v2530_v52 = vpop.eup %1574  ;;  %v672_v14 = vsub.f32 %v2195_v60, %v2440_v28 }
 0x147   :  { %v726_v18 = vmul.f32 1.442695, %v640_v53  ;;  %v2547_v33 = vpop.eup %1576  ;;  %v758_v46 = vmul.f32 1.442695, %v656_v51 }
 0x148   :  { %v2549_v32 = vpop.eup %1578  ;;  %v790_v41 = vmul.f32 1.442695, %v672_v14 }
 0x149   :  { %908 = vadd.xlane.f32.xlu2 %v2442_v63  ;;  %876 = vadd.xlane.f32.xlu1 %v2444_v43  ;;  %v2551_v58 = vpop.eup %1580  ;;  %1584 = vpow2.f32 %v726_v18 }
 0x14a   :  { %814 = vadd.xlane.f32.xlu0 %v2446_v29  ;;  %1586 = vpow2.f32 %v758_v46  ;;  %v2568_v4 = vpop.eup %1582 }
 0x14b   :  { %1588 = vpow2.f32 %v790_v41 }
 0x14c   :  { %v2457_v61 = vpop.xlane.xlu2 %536  ;;  %v2459_v50 = vpop.xlane.xlu1 %504 }
 0x14d   :  { %v2461_v35 = vpop.xlane.xlu0 %568  ;;  %v625_v59 = vsub.f32 %v2201_v1, %v2459_v50  ;;  %v641_v62 = vsub.f32 %v2204_v2, %v2457_v61 }
 0x14e   :  { %v657_v50 = vsub.f32 %v2207_v5, %v2461_v35 }
 0x14f   :  { %v696_v28 = vmul.f32 1.442695, %v625_v59  ;;  %v728_v53 = vmul.f32 1.442695, %v641_v62  ;;  %v2570_v51 = vpop.eup %1584 }
 0x150   :  { %v2572_v1 = vpop.eup %1586  ;;  %v760_v46 = vmul.f32 1.442695, %v657_v50 }
 0x151   :  { %878 = vadd.xlane.f32.xlu2 %v2463_v39  ;;  %846 = vadd.xlane.f32.xlu1 %v2465_v30  ;;  %1590 = vpow2.f32 %v696_v28  ;;  %v2589_v14 = vpop.eup %1588 }
 0x152   :  { %910 = vadd.xlane.f32.xlu0 %v2467_v40  ;;  %1592 = vpow2.f32 %v728_v53 }
 0x153   :  { %1594 = vpow2.f32 %v760_v46 }
 0x154   :  { %v2478_v38 = vpop.xlane.xlu2 %506  ;;  %v2480_v7 = vpop.xlane.xlu1 %600 }
 0x155   :  { %v2482_v44 = vpop.xlane.xlu0 %538  ;;  %v673_v2 = vsub.f32 %v2216_v10, %v2480_v7  ;;  %v626_v61 = vsub.f32 %v2213_v9, %v2478_v38 }
 0x156   :  { %v642_v7 = vsub.f32 %v2219_v12, %v2482_v44 }
 0x157   :  { %v792_v35 = vmul.f32 1.442695, %v673_v2  ;;  %v698_v59 = vmul.f32 1.442695, %v626_v61  ;;  %v2591_v62 = vpop.eup %1590 }
 0x158   :  { %v2593_v10 = vpop.eup %1592  ;;  %v730_v53 = vmul.f32 1.442695, %v642_v7 }
 0x159   :  { %848 = vadd.xlane.f32.xlu2 %v2486_v17  ;;  %816 = vadd.xlane.f32.xlu1 %v2484_v25  ;;  %1596 = vpow2.f32 %v792_v35  ;;  %v2610_v50 = vpop.eup %1594  ;;  %v3227_v35 = vld [vmem:[#allocation4_spill] sm:$0xff] }
 0x15a   :  { %880 = vadd.xlane.f32.xlu0 %v2488_v37  ;;  %1598 = vpow2.f32 %v698_v59  ;;  %3222 = vst [vmem:[#allocation27_spill] sm:$0xff] %v2610_v50 }
 0x15b   :  { %1600 = vpow2.f32 %v730_v53 }
 0x15c   :  { %v2499_v49 = vpop.xlane.xlu2 %602  ;;  %v2501_v6 = vpop.xlane.xlu1 %570 }
 0x15d   :  { %v2503_v42 = vpop.xlane.xlu0 %508  ;;  %v658_v9 = vsub.f32 %v2225_v19, %v2501_v6  ;;  %v674_v38 = vsub.f32 %v2228_v22, %v2499_v49  ;;  %v3225_v6 = vld [vmem:[#allocation2_spill] sm:$0xff]  ;;  %v3226_v22 = vld [vmem:[#allocation3_spill] sm:$0xff] }
 0x15e   :  { %v627_v46 = vsub.f32 %v3225_v6, %v2503_v42 }
 0x15f   :  { %v762_v44 = vmul.f32 1.442695, %v658_v9  ;;  %v794_v2 = vmul.f32 1.442695, %v674_v38  ;;  %v2612_v61 = vpop.eup %1596 }
 0x160   :  { %3223 = vst [vmem:[#allocation28_spill] sm:$0xff] %v2612_v61  ;;  %v2614_v19 = vpop.eup %1598  ;;  %v700_v38 = vmul.f32 1.442695, %v627_v46 }
 0x161   :  { %818 = vadd.xlane.f32.xlu2 %v2505_v23  ;;  %912 = vadd.xlane.f32.xlu1 %v2507_v56  ;;  %3224 = vst [vmem:[#allocation29_spill] sm:$0xff] %v2614_v19  ;;  %1602 = vpow2.f32 %v762_v44  ;;  %v2631_v6 = vpop.eup %1600 }
 0x162   :  { %850 = vadd.xlane.f32.xlu0 %v2509_v47  ;;  %1604 = vpow2.f32 %v794_v2  ;;  %3228 = vst [vmem:[#allocation2_spill] sm:$0xff] %v2631_v6  ;;  %v3231_v2 = vld [vmem:[#allocation5_spill] sm:$0xff] }
 0x163   :  { %1606 = vpow2.f32 %v700_v38 }
 0x164   :  { %v2520_v36 = vpop.xlane.xlu2 %572  ;;  %v2522_v15 = vpop.xlane.xlu1 %540 }
 0x165   :  { %v2524_v48 = vpop.xlane.xlu0 %604  ;;  %v643_v49 = vsub.f32 %v3226_v22, %v2522_v15  ;;  %v659_v59 = vsub.f32 %v3227_v35, %v2520_v36  ;;  %v3232_v36 = vld [vmem:[#allocation6_spill] sm:$0xff] }
 0x166   :  { %v675_v22 = vsub.f32 %v3231_v2, %v2524_v48 }
 0x167   :  { %v732_v53 = vmul.f32 1.442695, %v643_v49  ;;  %v764_v44 = vmul.f32 1.442695, %v659_v59  ;;  %v3233_v49 = vld [vmem:[#allocation7_spill] sm:$0xff] }
 0x169   :  { %914 = vadd.xlane.f32.xlu2 %v2528_v45  ;;  %882 = vadd.xlane.f32.xlu1 %v2526_v57  ;;  %1608 = vpow2.f32 %v732_v53 }
 0x16a   :  { %820 = vadd.xlane.f32.xlu0 %v2530_v52  ;;  %1610 = vpow2.f32 %v764_v44  ;;  %v3237_v44 = vld [vmem:[#allocation8_spill] sm:$0xff] }
 0x16c   :  { %v2541_v21 = vpop.xlane.xlu2 %542  ;;  %v2543_v3 = vpop.xlane.xlu1 %510 }
 0x16d   :  { %v2545_v54 = vpop.xlane.xlu0 %574  ;;  %v628_v46 = vsub.f32 %v3232_v36, %v2543_v3  ;;  %v644_v35 = vsub.f32 %v3233_v49, %v2541_v21  ;;  %v3238_v21 = vld [vmem:[#allocation9_spill] sm:$0xff] }
 0x16e   :  { %v660_v36 = vsub.f32 %v3237_v44, %v2545_v54 }
 0x16f   :  { %v702_v2 = vmul.f32 1.442695, %v628_v46  ;;  %v734_v53 = vmul.f32 1.442695, %v644_v35  ;;  %v3239_v46 = vld [vmem:[#allocation10_spill] sm:$0xff] }
 0x171   :  { %884 = vadd.xlane.f32.xlu2 %v2549_v32  ;;  %852 = vadd.xlane.f32.xlu1 %v2547_v33 }
 0x172   :  { %916 = vadd.xlane.f32.xlu0 %v2551_v58 }
 0x174   :  { %v2562_v16 = vpop.xlane.xlu2 %512  ;;  %v2564_v13 = vpop.xlane.xlu1 %606 }
 0x175   :  { %v2566_v60 = vpop.xlane.xlu0 %544  ;;  %v629_v49 = vsub.f32 %v3239_v46, %v2562_v16  ;;  %v3244_v16 = vld [vmem:[#allocation12_spill] sm:$0xff] }
 0x179   :  { %854 = vadd.xlane.f32.xlu2 %v2570_v51  ;;  %822 = vadd.xlane.f32.xlu1 %v2568_v4 }
 0x17a   :  { %886 = vadd.xlane.f32.xlu0 %v2572_v1 }
 0x17c   :  { %v2583_v31 = vpop.xlane.xlu2 %608  ;;  %v2585_v18 = vpop.xlane.xlu1 %576 }
 0x17d   :  { %v2587_v5 = vpop.xlane.xlu0 %514 }
 0x181   :  { %824 = vadd.xlane.f32.xlu2 %v2591_v62  ;;  %918 = vadd.xlane.f32.xlu1 %v2589_v14 }
 0x182   :  { %856 = vadd.xlane.f32.xlu0 %v2593_v10 }
 0x184   :  { %v2604_v41 = vpop.xlane.xlu2 %578  ;;  %v2606_v28 = vpop.xlane.xlu1 %546 }
 0x185   :  { %v2608_v12 = vpop.xlane.xlu0 %610 }
 0x189   :  { %920 = vadd.xlane.f32.xlu2 %v2612_v61  ;;  %888 = vadd.xlane.f32.xlu1 %v2610_v50  ;;  %v2633_v50 = vpop.eup %1602 }
 0x18a   :  { %826 = vadd.xlane.f32.xlu0 %v2614_v19  ;;  %3229 = vst [vmem:[#allocation3_spill] sm:$0xff] %v2633_v50  ;;  %v2635_v15 = vpop.eup %1604  ;;  %v796_v19 = vmul.f32 1.442695, %v675_v22  ;;  %v676_v22 = vsub.f32 %v3238_v21, %v2564_v13 }
 0x18b   :  { %3230 = vst [vmem:[#allocation4_spill] sm:$0xff] %v2635_v15 }
 0x18c   :  { %v2625_v7 = vpop.xlane.xlu2 %548  ;;  %v2627_v9 = vpop.xlane.xlu1 %516  ;;  %1612 = vpow2.f32 %v796_v19  ;;  %v798_v44 = vmul.f32 1.442695, %v676_v22  ;;  %v3245_v22 = vld [vmem:[#allocation13_spill] sm:$0xff] }
 0x18d   :  { %v2629_v42 = vpop.xlane.xlu0 %580  ;;  %1614 = vpow2.f32 %v702_v2  ;;  %v704_v2 = vmul.f32 1.442695, %v629_v49  ;;  %v677_v46 = vsub.f32 %v3245_v22, %v2583_v31  ;;  %v3248_v31 = vld [vmem:[#allocation15_spill] sm:$0xff] }
 0x18e   :  { %1616 = vpow2.f32 %v734_v53  ;;  %v3243_v53 = vld [vmem:[#allocation11_spill] sm:$0xff] }
 0x18f   :  { %v645_v21 = vsub.f32 %v3243_v53, %v2566_v60 }
 0x191   :  { %890 = vadd.xlane.f32.xlu2 %v2633_v50  ;;  %858 = vadd.xlane.f32.xlu1 %v2631_v6  ;;  %v2652_v50 = vpop.eup %1606 }
 0x192   :  { %922 = vadd.xlane.f32.xlu0 %v2635_v15  ;;  %3234 = vst [vmem:[#allocation5_spill] sm:$0xff] %v2652_v50  ;;  %v2654_v6 = vpop.eup %1608  ;;  %v766_v15 = vmul.f32 1.442695, %v660_v36  ;;  %v661_v36 = vsub.f32 %v3244_v16, %v2585_v18 }
 0x193   :  { %3235 = vst [vmem:[#allocation6_spill] sm:$0xff] %v2654_v6  ;;  %v2656_v3 = vpop.eup %1610 }
 0x194   :  { %v2646_v59 = vpop.xlane.xlu2 %518  ;;  %v2648_v38 = vpop.xlane.xlu1 %612  ;;  %3236 = vst [vmem:[#allocation7_spill] sm:$0xff] %v2656_v3  ;;  %1618 = vpow2.f32 %v766_v15  ;;  %v768_v53 = vmul.f32 1.442695, %v661_v36  ;;  %v3249_v36 = vld [vmem:[#allocation16_spill] sm:$0xff] }
 0x195   :  { %v2650_v48 = vpop.xlane.xlu0 %550  ;;  %1620 = vpow2.f32 %v798_v44  ;;  %v800_v44 = vmul.f32 1.442695, %v677_v46  ;;  %v662_v22 = vsub.f32 %v3249_v36, %v2604_v41  ;;  %v3253_v41 = vld [vmem:[#allocation18_spill] sm:$0xff] }
 0x196   :  { %1622 = vpow2.f32 %v704_v2  ;;  %v3247_v2 = vld [vmem:[#allocation14_spill] sm:$0xff] }
 0x197   :  { %v630_v16 = vsub.f32 %v3247_v2, %v2587_v5 }
 0x199   :  { %860 = vadd.xlane.f32.xlu2 %v2654_v6  ;;  %828 = vadd.xlane.f32.xlu1 %v2652_v50  ;;  %v2673_v6 = vpop.eup %1612 }
 0x19a   :  { %892 = vadd.xlane.f32.xlu0 %v2656_v3  ;;  %3240 = vst [vmem:[#allocation8_spill] sm:$0xff] %v2673_v6  ;;  %v2675_v50 = vpop.eup %1614  ;;  %v736_v3 = vmul.f32 1.442695, %v645_v21  ;;  %v646_v21 = vsub.f32 %v3248_v31, %v2606_v28 }
 0x19b   :  { %3241 = vst [vmem:[#allocation9_spill] sm:$0xff] %v2675_v50  ;;  %v2677_v13 = vpop.eup %1616 }
 0x19c   :  { %v2667_v35 = vpop.xlane.xlu2 %614  ;;  %v2669_v19 = vpop.xlane.xlu1 %582  ;;  %3242 = vst [vmem:[#allocation10_spill] sm:$0xff] %v2677_v13  ;;  %1624 = vpow2.f32 %v736_v3  ;;  %v706_v3 = vmul.f32 1.442695, %v630_v16  ;;  %v738_v5 = vmul.f32 1.442695, %v646_v21 }
 0x19d   :  { %v2671_v54 = vpop.xlane.xlu0 %520  ;;  %1626 = vpow2.f32 %v768_v53 }
 0x19e   :  { %1628 = vpow2.f32 %v800_v44  ;;  %v3252_v44 = vld [vmem:[#allocation17_spill] sm:$0xff] }
 0x19f   :  { %v678_v31 = vsub.f32 %v3252_v44, %v2608_v12 }
 0x1a1   :  { %830 = vadd.xlane.f32.xlu2 %v2675_v50  ;;  %924 = vadd.xlane.f32.xlu1 %v2673_v6  ;;  %v2694_v50 = vpop.eup %1618  ;;  %v802_v44 = vmul.f32 1.442695, %v678_v31 }
 0x1a2   :  { %862 = vadd.xlane.f32.xlu0 %v2677_v13  ;;  %3246 = vst [vmem:[#allocation11_spill] sm:$0xff] %v2694_v50  ;;  %v2696_v6 = vpop.eup %1620 }
 0x1a3   :  { %v2698_v18 = vpop.eup %1622 }
 0x1a4   :  { %v2688_v49 = vpop.xlane.xlu2 %584  ;;  %v2690_v15 = vpop.xlane.xlu1 %552 }
 0x1a5   :  { %v2692_v60 = vpop.xlane.xlu0 %616  ;;  %v2709_v2 = vpop.eup %1624 }
 0x1a6   :  { %3250 = vst [vmem:[#allocation12_spill] sm:$0xff] %v2709_v2  ;;  %v2711_v53 = vpop.eup %1626 }
 0x1a7   :  { %3251 = vst [vmem:[#allocation13_spill] sm:$0xff] %v2711_v53  ;;  %v2713_v28 = vpop.eup %1628 }
 0x1a9   :  { %926 = vadd.xlane.f32.xlu2 %v2696_v6  ;;  %894 = vadd.xlane.f32.xlu1 %v2694_v50  ;;  %v770_v50 = vmul.f32 1.442695, %v662_v22 }
 0x1aa   :  { %832 = vadd.xlane.f32.xlu0 %v2698_v18 }
 0x1ac   :  { %v843_v46 = vpop.xlane.xlu2 %842  ;;  %v811_v13 = vpop.xlane.xlu1 %810 }
 0x1ad   :  { %1630 = vrcp.f32 %v843_v46  ;;  %v875_v61 = vpop.xlane.xlu0 %874 }
 0x1ae   :  { %1632 = vrcp.f32 %v811_v13  ;;  %v631_v13 = vsub.f32 %v3253_v41, %v2627_v9  ;;  %v3256_v41 = vld [vmem:[#allocation24_spill] sm:$0xff] }
 0x1af   :  { %1634 = vrcp.f32 %v875_v61  ;;  %v3254_v61 = vld [vmem:[#allocation19_spill] sm:$0xff] }
 0x1b0   :  { %1636 = vpow2.f32 %v706_v3  ;;  %v647_v21 = vsub.f32 %v3254_v61, %v2625_v7  ;;  %v3257_v61 = vld [vmem:[#allocation21_spill] sm:$0xff] }
 0x1b1   :  { %896 = vadd.xlane.f32.xlu2 %v2711_v53  ;;  %864 = vadd.xlane.f32.xlu1 %v2709_v2  ;;  %1638 = vpow2.f32 %v738_v5  ;;  %v708_v53 = vmul.f32 1.442695, %v631_v13  ;;  %v664_v13 = vsub.f32 %v3256_v41, %v2669_v19 }
 0x1b2   :  { %928 = vadd.xlane.f32.xlu0 %v2713_v28  ;;  %1640 = vpow2.f32 %v770_v50 }
 0x1b3   :  { %v1631_v16 = vpop.eup %1630 }
 0x1b4   :  { %v1633_v36 = vpop.eup %1632  ;;  %v1018_v22 = vmul.f32 %v1631_v16, %v2400_v24  ;;  %v907_v46 = vpop.xlane.xlu1 %906  ;;  %v740_v24 = vmul.f32 1.442695, %v647_v21  ;;  %v632_v21 = vsub.f32 %v3257_v61, %v2646_v59 }
 0x1b5   :  { %v813_v12 = vpop.xlane.xlu2 %812  ;;  %v1635_v3 = vpop.eup %1634  ;;  %v1002_v2 = vmul.f32 %v1633_v36, %v2402_v55  ;;  %1642 = vrcp.f32 %v907_v46 }
 0x1b6   :  { %v845_v5 = vpop.xlane.xlu0 %844  ;;  %1082 = vst [vmem:[%s3155_s3 + $0x80] sm:$0xff] %v1018_v22  ;;  %v2730_v50 = vmul.f32 %v1635_v3, %v2404_v20  ;;  %1644 = vrcp.f32 %v813_v12  ;;  %v2732_v7 = vpop.eup %1636  ;;  %v3255_v20 = vld [vmem:[#allocation20_spill] sm:$0xff] }
 0x1b7   :  { %1066 = vst [vmem:[%s3155_s3] sm:$0xff] %v1002_v2  ;;  %1646 = vrcp.f32 %v845_v5  ;;  %v2737_v55 = vpop.eup %1638  ;;  %v663_v31 = vsub.f32 %v3255_v20, %v2629_v42  ;;  %v774_v20 = vmul.f32 1.442695, %v664_v13 }
 0x1b8   :  { %1098 = vst [vmem:[%s3155_s3 + $0x100] sm:$0xff] %v2730_v50  ;;  %v2743_v9 = vpop.eup %1640  ;;  %1648 = vpow2.f32 %v802_v44 }
 0x1b9   :  { %866 = vadd.xlane.f32.xlu2 %v2737_v55  ;;  %834 = vadd.xlane.f32.xlu1 %v2732_v7  ;;  %1650 = vpow2.f32 %v708_v53  ;;  %v772_v44 = vmul.f32 1.442695, %v663_v31 }
 0x1ba   :  { %898 = vadd.xlane.f32.xlu0 %v2743_v9  ;;  %1652 = vpow2.f32 %v740_v24  ;;  %v710_v24 = vmul.f32 1.442695, %v632_v21 }
 0x1bb   :  { %v1643_v16 = vpop.eup %1642 }
 0x1bc   :  { %v1645_v36 = vpop.eup %1644  ;;  %v1050_v46 = vmul.f32 %v1643_v16, %v2421_v11  ;;  %v877_v42 = vpop.xlane.xlu1 %876 }
 0x1bd   :  { %v909_v12 = vpop.xlane.xlu2 %908  ;;  %v1647_v3 = vpop.eup %1646  ;;  %v1003_v5 = vmul.f32 %v1645_v36, %v2423_v0 }
 0x1be   :  { %1654 = vrcp.f32 %v909_v12  ;;  %v815_v53 = vpop.xlane.xlu0 %814  ;;  %1114 = vst [vmem:[%s3155_s3 + $0x180] sm:$0xff] %v1050_v46  ;;  %v1019_v19 = vmul.f32 %v1647_v3, %v2425_v26  ;;  %v2760_v59 = vpop.eup %1648  ;;  %v3258_v26 = vld [vmem:[#allocation23_spill] sm:$0xff] }
 0x1bf   :  { %1656 = vrcp.f32 %v877_v42  ;;  %1067 = vst [vmem:[%s3155_s3 + $0x8] sm:$0xff] %v1003_v5  ;;  %v1333_v11 = vpack.c.bf16 %v1003_v5, %v1002_v2  ;;  %v2765_v0 = vpop.eup %1650  ;;  %v648_v13 = vsub.f32 %v3258_v26, %v2650_v48  ;;  %v649_v2 = vsub.f32 %v2375_v8, %v2690_v15 }
 0x1c0   :  { %1658 = vrcp.f32 %v815_v53  ;;  %1083 = vst [vmem:[%s3155_s3 + $0x88] sm:$0xff] %v1019_v19  ;;  %v1373_v31 = vpack.c.bf16 %v1019_v19, %v1018_v22  ;;  %v2770_v41 = vpop.eup %1652  ;;  %v665_v48 = vsub.f32 %v2378_v34, %v2688_v49  ;;  %v3261_v19 = vld [vmem:[#allocation25_spill] sm:$0xff] }
 0x1c1   :  { %1660 = vpow2.f32 %v772_v44  ;;  %1334 = vst [vmem:[%s3156_s4] sm:$0xff] %v1333_v11   ;;  %836 = vadd.xlane.f32.xlu2 %v2765_v0  ;;  %930 = vadd.xlane.f32.xlu1 %v2760_v59  ;;  %v742_v42 = vmul.f32 1.442695, %v648_v13  ;;  %v744_v3 = vmul.f32 1.442695, %v649_v2 }
 0x1c2   :  { %1662 = vpow2.f32 %v774_v20  ;;  %1497 = vst [vmem:[%s3156_s4 + $0x40] sm:$0xff] %v1373_v31   ;;  %868 = vadd.xlane.f32.xlu0 %v2770_v41 }
 0x1c3   :  { %1664 = vpow2.f32 %v710_v24  ;;  %v680_v24 = vsub.f32 %v3261_v19, %v2667_v35 }
 0x1c4   :  { %v1655_v22 = vpop.eup %1654  ;;  %v847_v36 = vpop.xlane.xlu1 %846 }
 0x1c5   :  { %v1657_v16 = vpop.eup %1656  ;;  %v1051_v61 = vmul.f32 %v1655_v22, %v2442_v63  ;;  %v879_v21 = vpop.xlane.xlu2 %878  ;;  %v776_v63 = vmul.f32 1.442695, %v665_v48 }
 0x1c6   :  { %v1659_v12 = vpop.eup %1658  ;;  %v1035_v8 = vmul.f32 %v1657_v16, %v2444_v43  ;;  %1666 = vrcp.f32 %v879_v21  ;;  %v911_v15 = vpop.xlane.xlu0 %910  ;;  %v806_v21 = vmul.f32 1.442695, %v680_v24 }
 0x1c7   :  { %1115 = vst [vmem:[%s3155_s3 + $0x188] sm:$0xff] %v1051_v61  ;;  %v1453_v44 = vpack.c.bf16 %v1051_v61, %v1050_v46  ;;  %v2793_v5 = vmul.f32 %v1659_v12, %v2446_v29  ;;  %1668 = vrcp.f32 %v847_v36  ;;  %v2795_v34 = vpop.eup %1660  ;;  %v3259_v29 = vld [vmem:[#allocation22_spill] sm:$0xff] }
 0x1c8   :  { %1099 = vst [vmem:[%s3155_s3 + $0x108] sm:$0xff] %v1035_v8  ;;  %v1413_v43 = vpack.c.bf16 %v1035_v8, %v2730_v50  ;;  %1670 = vrcp.f32 %v911_v15  ;;  %v2801_v49 = vpop.eup %1662  ;;  %v679_v53 = vsub.f32 %v3259_v29, %v2648_v38  ;;  %v3260_v50 = vld [vmem:[#allocation26_spill] sm:$0xff] }
 0x1c9   :  { %1513 = vst [vmem:[%s3156_s4 + $0xc0] sm:$0xff] %v1453_v44   ;;  %v2806_v46 = vpop.eup %1664  ;;  %1672 = vpow2.f32 %v742_v42  ;;  %902 = vadd.xlane.f32.xlu2 %v2801_v49  ;;  %900 = vadd.xlane.f32.xlu1 %v2795_v34  ;;  %v633_v20 = vsub.f32 %v3260_v50, %v2671_v54 }
 0x1ca   :  { %1505 = vst [vmem:[%s3156_s4 + $0x80] sm:$0xff] %v1413_v43   ;;  %1674 = vpow2.f32 %v744_v3  ;;  %838 = vadd.xlane.f32.xlu0 %v2806_v46  ;;  %v804_v54 = vmul.f32 1.442695, %v679_v53 }
 0x1cb   :  { %1068 = vst [vmem:[%s3155_s3 + $0x10] sm:$0xff] %v2793_v5  ;;  %1676 = vpow2.f32 %v776_v63  ;;  %v712_v16 = vmul.f32 1.442695, %v633_v20 }
 0x1cc   :  { %v1667_v38 = vpop.eup %1666  ;;  %v817_v13 = vpop.xlane.xlu1 %816 }
 0x1cd   :  { %v1669_v11 = vpop.eup %1668  ;;  %v1036_v31 = vmul.f32 %v1667_v38, %v2463_v39  ;;  %v849_v26 = vpop.xlane.xlu2 %848 }
 0x1ce   :  { %v1671_v2 = vpop.eup %1670  ;;  %v1020_v22 = vmul.f32 %v1669_v11, %v2465_v30  ;;  %1678 = vrcp.f32 %v849_v26  ;;  %v881_v48 = vpop.xlane.xlu0 %880 }
 0x1cf   :  { %1100 = vst [vmem:[%s3155_s3 + $0x110] sm:$0xff] %v1036_v31  ;;  %v1052_v61 = vmul.f32 %v1671_v2, %v2467_v40  ;;  %1680 = vrcp.f32 %v817_v13  ;;  %v2830_v35 = vpop.eup %1672  ;;  %v681_v40 = vsub.f32 %v2383_v27, %v2692_v60 }
 0x1d0   :  { %1084 = vst [vmem:[%s3155_s3 + $0x90] sm:$0xff] %v1020_v22  ;;  %1682 = vrcp.f32 %v881_v48  ;;  %v2835_v39 = vpop.eup %1674 }
 0x1d1   :  { %1116 = vst [vmem:[%s3155_s3 + $0x190] sm:$0xff] %v1052_v61  ;;  %v2840_v30 = vpop.eup %1676  ;;  %1684 = vpow2.f32 %v804_v54  ;;  %872 = vadd.xlane.f32.xlu2 %v2835_v39  ;;  %870 = vadd.xlane.f32.xlu1 %v2830_v35  ;;  %v808_v43 = vmul.f32 1.442695, %v681_v40 }
 0x1d2   :  { %1686 = vpow2.f32 %v712_v16  ;;  %904 = vadd.xlane.f32.xlu0 %v2840_v30 }
 0x1d3   :  { %1688 = vpow2.f32 %v806_v21 }
 0x1d4   :  { %v1679_v36 = vpop.eup %1678  ;;  %v913_v15 = vpop.xlane.xlu1 %912 }
 0x1d5   :  { %v1681_v12 = vpop.eup %1680  ;;  %v1021_v42 = vmul.f32 %v1679_v36, %v2486_v17  ;;  %v819_v8 = vpop.xlane.xlu2 %818 }
 0x1d6   :  { %v1683_v3 = vpop.eup %1682  ;;  %v1005_v44 = vmul.f32 %v1681_v12, %v2484_v25  ;;  %1690 = vrcp.f32 %v819_v8  ;;  %v851_v63 = vpop.xlane.xlu0 %850 }
 0x1d7   :  { %1085 = vst [vmem:[%s3155_s3 + $0x98] sm:$0xff] %v1021_v42  ;;  %v1378_v27 = vpack.c.bf16 %v1021_v42, %v1020_v22  ;;  %v1037_v60 = vmul.f32 %v1683_v3, %v2488_v37  ;;  %1692 = vrcp.f32 %v913_v15  ;;  %v2853_v29 = vpop.eup %1684 }
 0x1d8   :  { %1069 = vst [vmem:[%s3155_s3 + $0x18] sm:$0xff] %v1005_v44  ;;  %v1338_v17 = vpack.c.bf16 %v1005_v44, %v2793_v5  ;;  %1694 = vrcp.f32 %v851_v63  ;;  %v2859_v25 = vpop.eup %1686 }
 0x1d9   :  { %1498 = vst [vmem:[%s3156_s4 + $0x48] sm:$0xff] %v1378_v27   ;;  %v1418_v53 = vpack.c.bf16 %v1037_v60, %v1036_v31  ;;  %v2864_v50 = vpop.eup %1688  ;;  %932 = vadd.xlane.f32.xlu2 %v2853_v29  ;;  %840 = vadd.xlane.f32.xlu1 %v2859_v25  ;;  %1696 = vpow2.f32 %v808_v43 }
 0x1da   :  { %1490 = vst [vmem:[%s3156_s4 + $0x8] sm:$0xff] %v1338_v17   ;;  %934 = vadd.xlane.f32.xlu0 %v2864_v50 }
 0x1db   :  { %1101 = vst [vmem:[%s3155_s3 + $0x118] sm:$0xff] %v1037_v60 }
 0x1dc   :  { %v1691_v37 = vpop.eup %1690  ;;  %1506 = vst [vmem:[%s3156_s4 + $0x88] sm:$0xff] %v1418_v53   ;;  %v883_v19 = vpop.xlane.xlu1 %882 }
 0x1dd   :  { %v1693_v5 = vpop.eup %1692  ;;  %v1006_v20 = vmul.f32 %v1691_v37, %v2505_v23  ;;  %v915_v38 = vpop.xlane.xlu2 %914 }
 0x1de   :  { %v1695_v24 = vpop.eup %1694  ;;  %v1053_v11 = vmul.f32 %v1693_v5, %v2507_v56  ;;  %1698 = vrcp.f32 %v915_v38  ;;  %v821_v31 = vpop.xlane.xlu0 %820 }
 0x1df   :  { %1070 = vst [vmem:[%s3155_s3 + $0x20] sm:$0xff] %v1006_v20  ;;  %v1022_v26 = vmul.f32 %v1695_v24, %v2509_v47  ;;  %1700 = vrcp.f32 %v883_v19  ;;  %v2887_v23 = vpop.eup %1696 }
 0x1e0   :  { %1117 = vst [vmem:[%s3155_s3 + $0x198] sm:$0xff] %v1053_v11  ;;  %v1458_v13 = vpack.c.bf16 %v1053_v11, %v1052_v61  ;;  %1702 = vrcp.f32 %v821_v31 }
 0x1e1   :  { %1086 = vst [vmem:[%s3155_s3 + $0xa0] sm:$0xff] %v1022_v26  ;;  %936 = vadd.xlane.f32.xlu1 %v2887_v23 }
 0x1e2   :  { %1514 = vst [vmem:[%s3156_s4 + $0xc8] sm:$0xff] %v1458_v13   ;;  %v3262_v13 = vld [vmem:[#allocation28_spill] sm:$0xff] }
 0x1e4   :  { %v1699_v56 = vpop.eup %1698  ;;  %v853_v22 = vpop.xlane.xlu1 %852 }
 0x1e5   :  { %v1701_v47 = vpop.eup %1700  ;;  %v1054_v2 = vmul.f32 %v1699_v56, %v2528_v45  ;;  %v885_v54 = vpop.xlane.xlu2 %884 }
 0x1e6   :  { %v1703_v48 = vpop.eup %1702  ;;  %v1038_v16 = vmul.f32 %v1701_v47, %v2526_v57  ;;  %1704 = vrcp.f32 %v885_v54  ;;  %v917_v61 = vpop.xlane.xlu0 %916 }
 0x1e7   :  { %1118 = vst [vmem:[%s3155_s3 + $0x1a0] sm:$0xff] %v1054_v2  ;;  %v1007_v21 = vmul.f32 %v1703_v48, %v2530_v52  ;;  %1706 = vrcp.f32 %v853_v22  ;;  %v3263_v22 = vld [vmem:[#allocation27_spill] sm:$0xff] }
 0x1e8   :  { %1102 = vst [vmem:[%s3155_s3 + $0x120] sm:$0xff] %v1038_v16  ;;  %1708 = vrcp.f32 %v917_v61 }
 0x1e9   :  { %1071 = vst [vmem:[%s3155_s3 + $0x28] sm:$0xff] %v1007_v21  ;;  %v1343_v45 = vpack.c.bf16 %v1007_v21, %v1006_v20  ;;  %v3264_v21 = vld [vmem:[#allocation29_spill] sm:$0xff] }
 0x1eb   :  { %1491 = vst [vmem:[%s3156_s4 + $0x10] sm:$0xff] %v1343_v45  }
 0x1ec   :  { %v1705_v57 = vpop.eup %1704  ;;  %v823_v12 = vpop.xlane.xlu1 %822 }
 0x1ed   :  { %v1707_v40 = vpop.eup %1706  ;;  %v1039_v36 = vmul.f32 %v1705_v57, %v2549_v32  ;;  %v855_v52 = vpop.xlane.xlu2 %854 }
 0x1ee   :  { %v1709_v42 = vpop.eup %1708  ;;  %v1023_v8 = vmul.f32 %v1707_v40, %v2547_v33  ;;  %1710 = vrcp.f32 %v855_v52  ;;  %v887_v15 = vpop.xlane.xlu0 %886  ;;  %v3265_v52 = vld [vmem:[#allocation3_spill] sm:$0xff] }
 0x1ef   :  { %1103 = vst [vmem:[%s3155_s3 + $0x128] sm:$0xff] %v1039_v36  ;;  %v1423_v3 = vpack.c.bf16 %v1039_v36, %v1038_v16  ;;  %v1055_v44 = vmul.f32 %v1709_v42, %v2551_v58  ;;  %1712 = vrcp.f32 %v823_v12 }
 0x1f0   :  { %1087 = vst [vmem:[%s3155_s3 + $0xa8] sm:$0xff] %v1023_v8  ;;  %v1383_v32 = vpack.c.bf16 %v1023_v8, %v1022_v26  ;;  %1714 = vrcp.f32 %v887_v15 }
 0x1f1   :  { %1507 = vst [vmem:[%s3156_s4 + $0x90] sm:$0xff] %v1423_v3   ;;  %v1463_v33 = vpack.c.bf16 %v1055_v44, %v1054_v2  ;;  %v3266_v3 = vld [vmem:[#allocation2_spill] sm:$0xff] }
 0x1f2   :  { %1499 = vst [vmem:[%s3156_s4 + $0x50] sm:$0xff] %v1383_v32  }
 0x1f3   :  { %1119 = vst [vmem:[%s3155_s3 + $0x1a8] sm:$0xff] %v1055_v44 }
 0x1f4   :  { %v1711_v58 = vpop.eup %1710  ;;  %1515 = vst [vmem:[%s3156_s4 + $0xd0] sm:$0xff] %v1463_v33   ;;  %v919_v60 = vpop.xlane.xlu1 %918  ;;  %v3267_v33 = vld [vmem:[#allocation4_spill] sm:$0xff] }
 0x1f5   :  { %v1713_v63 = vpop.eup %1712  ;;  %v1024_v43 = vmul.f32 %v1711_v58, %v2570_v51  ;;  %v825_v27 = vpop.xlane.xlu2 %824 }
 0x1f6   :  { %v1715_v17 = vpop.eup %1714  ;;  %v1008_v53 = vmul.f32 %v1713_v63, %v2568_v4  ;;  %1716 = vrcp.f32 %v825_v27  ;;  %v857_v37 = vpop.xlane.xlu0 %856  ;;  %v3268_v27 = vld [vmem:[#allocation6_spill] sm:$0xff] }
 0x1f7   :  { %1088 = vst [vmem:[%s3155_s3 + $0xb0] sm:$0xff] %v1024_v43  ;;  %v1040_v5 = vmul.f32 %v1715_v17, %v2572_v1  ;;  %1718 = vrcp.f32 %v919_v60 }
 0x1f8   :  { %1072 = vst [vmem:[%s3155_s3 + $0x30] sm:$0xff] %v1008_v53  ;;  %1720 = vrcp.f32 %v857_v37 }
 0x1f9   :  { %1104 = vst [vmem:[%s3155_s3 + $0x130] sm:$0xff] %v1040_v5 }
 0x1fc   :  { %v1717_v51 = vpop.eup %1716  ;;  %v889_v19 = vpop.xlane.xlu1 %888 }
 0x1fd   :  { %v1719_v4 = vpop.eup %1718  ;;  %v1009_v20 = vmul.f32 %v1717_v51, %v2591_v62  ;;  %v921_v38 = vpop.xlane.xlu2 %920 }
 0x1fe   :  { %v1721_v24 = vpop.eup %1720  ;;  %v1056_v11 = vmul.f32 %v1719_v4, %v2589_v14  ;;  %1722 = vrcp.f32 %v921_v38  ;;  %v827_v1 = vpop.xlane.xlu0 %826  ;;  %v3270_v38 = vld [vmem:[#allocation7_spill] sm:$0xff] }
 0x1ff   :  { %1073 = vst [vmem:[%s3155_s3 + $0x38] sm:$0xff] %v1009_v20  ;;  %v1348_v31 = vpack.c.bf16 %v1009_v20, %v1008_v53  ;;  %v1025_v26 = vmul.f32 %v1721_v24, %v2593_v10  ;;  %1724 = vrcp.f32 %v889_v19 }
 0x200   :  { %1120 = vst [vmem:[%s3155_s3 + $0x1b0] sm:$0xff] %v1056_v11  ;;  %1726 = vrcp.f32 %v827_v1 }
 0x201   :  { %1492 = vst [vmem:[%s3156_s4 + $0x18] sm:$0xff] %v1348_v31   ;;  %v1388_v14 = vpack.c.bf16 %v1025_v26, %v1024_v43 }
 0x202   :  { %1089 = vst [vmem:[%s3155_s3 + $0xb8] sm:$0xff] %v1025_v26  ;;  %v3271_v26 = vld [vmem:[#allocation9_spill] sm:$0xff] }
 0x203   :  { %1500 = vst [vmem:[%s3156_s4 + $0x58] sm:$0xff] %v1388_v14  }
 0x204   :  { %v1723_v62 = vpop.eup %1722  ;;  %v859_v2 = vpop.xlane.xlu1 %858 }
 0x205   :  { %v1725_v10 = vpop.eup %1724  ;;  %v1057_v56 = vmul.f32 %v1723_v62, %v3262_v13  ;;  %v891_v47 = vpop.xlane.xlu2 %890 }
 0x206   :  { %v1727_v54 = vpop.eup %1726  ;;  %v1041_v48 = vmul.f32 %v1725_v10, %v3263_v22  ;;  %1728 = vrcp.f32 %v891_v47  ;;  %v923_v16 = vpop.xlane.xlu0 %922 }
 0x207   :  { %1121 = vst [vmem:[%s3155_s3 + $0x1b8] sm:$0xff] %v1057_v56  ;;  %v1468_v61 = vpack.c.bf16 %v1057_v56, %v1056_v11  ;;  %v1010_v45 = vmul.f32 %v1727_v54, %v3264_v21  ;;  %1730 = vrcp.f32 %v859_v2  ;;  %v3272_v56 = vld [vmem:[#allocation8_spill] sm:$0xff]  ;;  %v3273_v54 = vld [vmem:[#allocation10_spill] sm:$0xff] }
 0x208   :  { %1105 = vst [vmem:[%s3155_s3 + $0x138] sm:$0xff] %v1041_v48  ;;  %v1428_v57 = vpack.c.bf16 %v1041_v48, %v1040_v5  ;;  %1732 = vrcp.f32 %v923_v16  ;;  %v3269_v5 = vld [vmem:[#allocation5_spill] sm:$0xff] }
 0x209   :  { %1516 = vst [vmem:[%s3156_s4 + $0xd8] sm:$0xff] %v1468_v61  }
 0x20a   :  { %1508 = vst [vmem:[%s3156_s4 + $0x98] sm:$0xff] %v1428_v57  }
 0x20b   :  { %1074 = vst [vmem:[%s3155_s3 + $0x40] sm:$0xff] %v1010_v45 }
 0x20c   :  { %v1729_v40 = vpop.eup %1728  ;;  %v829_v8 = vpop.xlane.xlu1 %828 }
 0x20d   :  { %v1731_v36 = vpop.eup %1730  ;;  %v1042_v12 = vmul.f32 %v1729_v40, %v3265_v52  ;;  %v861_v42 = vpop.xlane.xlu2 %860 }
 0x20e   :  { %v1733_v15 = vpop.eup %1732  ;;  %v1026_v44 = vmul.f32 %v1731_v36, %v3266_v3  ;;  %1734 = vrcp.f32 %v861_v42  ;;  %v893_v32 = vpop.xlane.xlu0 %892  ;;  %v3274_v36 = vld [vmem:[#allocation11_spill] sm:$0xff]  ;;  %v3275_v3 = vld [vmem:[#allocation13_spill] sm:$0xff] }
 0x20f   :  { %1106 = vst [vmem:[%s3155_s3 + $0x140] sm:$0xff] %v1042_v12  ;;  %v1058_v58 = vmul.f32 %v1733_v15, %v3267_v33  ;;  %1736 = vrcp.f32 %v829_v8 }
 0x210   :  { %1090 = vst [vmem:[%s3155_s3 + $0xc0] sm:$0xff] %v1026_v44  ;;  %1738 = vrcp.f32 %v893_v32 }
 0x211   :  { %1122 = vst [vmem:[%s3155_s3 + $0x1c0] sm:$0xff] %v1058_v58 }
 0x214   :  { %v1735_v63 = vpop.eup %1734  ;;  %v925_v53 = vpop.xlane.xlu1 %924 }
 0x215   :  { %v1737_v43 = vpop.eup %1736  ;;  %v1027_v60 = vmul.f32 %v1735_v63, %v3268_v27  ;;  %v831_v17 = vpop.xlane.xlu2 %830 }
 0x216   :  { %v1739_v37 = vpop.eup %1738  ;;  %v1011_v51 = vmul.f32 %v1737_v43, %v3269_v5  ;;  %1740 = vrcp.f32 %v831_v17  ;;  %v863_v4 = vpop.xlane.xlu0 %862 }
 0x217   :  { %1091 = vst [vmem:[%s3155_s3 + $0xc8] sm:$0xff] %v1027_v60  ;;  %v1393_v20 = vpack.c.bf16 %v1027_v60, %v1026_v44  ;;  %v1043_v19 = vmul.f32 %v1739_v37, %v3270_v38  ;;  %1742 = vrcp.f32 %v925_v53 }
 0x218   :  { %1075 = vst [vmem:[%s3155_s3 + $0x48] sm:$0xff] %v1011_v51  ;;  %v1353_v24 = vpack.c.bf16 %v1011_v51, %v1010_v45  ;;  %1744 = vrcp.f32 %v863_v4 }
 0x219   :  { %1501 = vst [vmem:[%s3156_s4 + $0x60] sm:$0xff] %v1393_v20   ;;  %v1433_v11 = vpack.c.bf16 %v1043_v19, %v1042_v12 }
 0x21a   :  { %1493 = vst [vmem:[%s3156_s4 + $0x20] sm:$0xff] %v1353_v24  }
 0x21b   :  { %1107 = vst [vmem:[%s3155_s3 + $0x148] sm:$0xff] %v1043_v19 }
 0x21c   :  { %v1741_v1 = vpop.eup %1740  ;;  %1509 = vst [vmem:[%s3156_s4 + $0xa0] sm:$0xff] %v1433_v11   ;;  %v895_v10 = vpop.xlane.xlu1 %894 }
 0x21d   :  { %v1743_v31 = vpop.eup %1742  ;;  %v1012_v14 = vmul.f32 %v1741_v1, %v3271_v26  ;;  %v927_v62 = vpop.xlane.xlu2 %926 }
 0x21e   :  { %v1745_v13 = vpop.eup %1744  ;;  %v1059_v47 = vmul.f32 %v1743_v31, %v3272_v56  ;;  %1746 = vrcp.f32 %v927_v62  ;;  %v833_v2 = vpop.xlane.xlu0 %832 }
 0x21f   :  { %1076 = vst [vmem:[%s3155_s3 + $0x50] sm:$0xff] %v1012_v14  ;;  %v1028_v22 = vmul.f32 %v1745_v13, %v3273_v54  ;;  %1748 = vrcp.f32 %v895_v10 }
 0x220   :  { %1123 = vst [vmem:[%s3155_s3 + $0x1c8] sm:$0xff] %v1059_v47  ;;  %v1473_v48 = vpack.c.bf16 %v1059_v47, %v1058_v58  ;;  %1750 = vrcp.f32 %v833_v2  ;;  %v3276_v58 = vld [vmem:[#allocation12_spill] sm:$0xff] }
 0x221   :  { %1092 = vst [vmem:[%s3155_s3 + $0xd0] sm:$0xff] %v1028_v22 }
 0x222   :  { %1517 = vst [vmem:[%s3156_s4 + $0xe0] sm:$0xff] %v1473_v48  }
 0x224   :  { %v1747_v16 = vpop.eup %1746  ;;  %v865_v57 = vpop.xlane.xlu1 %864 }
 0x225   :  { %v1749_v61 = vpop.eup %1748  ;;  %v1060_v21 = vmul.f32 %v1747_v16, %v2696_v6  ;;  %v897_v45 = vpop.xlane.xlu2 %896 }
 0x226   :  { %v1751_v40 = vpop.eup %1750  ;;  %v1044_v52 = vmul.f32 %v1749_v61, %v3274_v36  ;;  %1752 = vrcp.f32 %v897_v45  ;;  %v929_v12 = vpop.xlane.xlu0 %928 }
 0x227   :  { %1124 = vst [vmem:[%s3155_s3 + $0x1d0] sm:$0xff] %v1060_v21  ;;  %v1013_v42 = vmul.f32 %v1751_v40, %v2698_v18  ;;  %1754 = vrcp.f32 %v865_v57 }
 0x228   :  { %1108 = vst [vmem:[%s3155_s3 + $0x150] sm:$0xff] %v1044_v52  ;;  %1756 = vrcp.f32 %v929_v12 }
 0x229   :  { %1077 = vst [vmem:[%s3155_s3 + $0x58] sm:$0xff] %v1013_v42  ;;  %v1358_v6 = vpack.c.bf16 %v1013_v42, %v1012_v14 }
 0x22b   :  { %1494 = vst [vmem:[%s3156_s4 + $0x28] sm:$0xff] %v1358_v6  }
 0x22c   :  { %v1753_v8 = vpop.eup %1752  ;;  %v835_v32 = vpop.xlane.xlu1 %834 }
 0x22d   :  { %v1755_v15 = vpop.eup %1754  ;;  %v1045_v44 = vmul.f32 %v1753_v8, %v3275_v3  ;;  %v867_v18 = vpop.xlane.xlu2 %866 }
 0x22e   :  { %v1757_v33 = vpop.eup %1756  ;;  %v1029_v63 = vmul.f32 %v1755_v15, %v3276_v58  ;;  %1758 = vrcp.f32 %v867_v18  ;;  %v899_v43 = vpop.xlane.xlu0 %898 }
 0x22f   :  { %1109 = vst [vmem:[%s3155_s3 + $0x158] sm:$0xff] %v1045_v44  ;;  %v1438_v27 = vpack.c.bf16 %v1045_v44, %v1044_v52  ;;  %v1061_v60 = vmul.f32 %v1757_v33, %v2713_v28  ;;  %1760 = vrcp.f32 %v835_v32 }
 0x230   :  { %1093 = vst [vmem:[%s3155_s3 + $0xd8] sm:$0xff] %v1029_v63  ;;  %v1398_v17 = vpack.c.bf16 %v1029_v63, %v1028_v22  ;;  %1762 = vrcp.f32 %v899_v43 }
 0x231   :  { %1510 = vst [vmem:[%s3156_s4 + $0xa8] sm:$0xff] %v1438_v27   ;;  %v1478_v53 = vpack.c.bf16 %v1061_v60, %v1060_v21 }
 0x232   :  { %1502 = vst [vmem:[%s3156_s4 + $0x68] sm:$0xff] %v1398_v17  }
 0x233   :  { %1125 = vst [vmem:[%s3155_s3 + $0x1d8] sm:$0xff] %v1061_v60 }
 0x234   :  { %v1759_v28 = vpop.eup %1758  ;;  %1518 = vst [vmem:[%s3156_s4 + $0xe8] sm:$0xff] %v1478_v53   ;;  %v931_v4 = vpop.xlane.xlu1 %930 }
 0x235   :  { %v1761_v37 = vpop.eup %1760  ;;  %v1030_v5 = vmul.f32 %v1759_v28, %v2737_v55  ;;  %v837_v51 = vpop.xlane.xlu2 %836 }
 0x236   :  { %v1763_v20 = vpop.eup %1762  ;;  %v1014_v38 = vmul.f32 %v1761_v37, %v2732_v7  ;;  %1764 = vrcp.f32 %v837_v51  ;;  %v869_v19 = vpop.xlane.xlu0 %868 }
 0x237   :  { %1094 = vst [vmem:[%s3155_s3 + $0xe0] sm:$0xff] %v1030_v5  ;;  %v1046_v24 = vmul.f32 %v1763_v20, %v2743_v9  ;;  %1766 = vrcp.f32 %v931_v4 }
 0x238   :  { %1078 = vst [vmem:[%s3155_s3 + $0x60] sm:$0xff] %v1014_v38  ;;  %1768 = vrcp.f32 %v869_v19 }
 0x239   :  { %1110 = vst [vmem:[%s3155_s3 + $0x160] sm:$0xff] %v1046_v24 }
 0x23c   :  { %v1765_v55 = vpop.eup %1764  ;;  %v901_v31 = vpop.xlane.xlu1 %900 }
 0x23d   :  { %v1767_v7 = vpop.eup %1766  ;;  %v1015_v11 = vmul.f32 %v1765_v55, %v2765_v0  ;;  %v903_v1 = vpop.xlane.xlu2 %902 }
 0x23e   :  { %v1769_v26 = vpop.eup %1768  ;;  %v1062_v14 = vmul.f32 %v1767_v7, %v2760_v59  ;;  %1770 = vrcp.f32 %v903_v1  ;;  %v839_v9 = vpop.xlane.xlu0 %838 }
 0x23f   :  { %1079 = vst [vmem:[%s3155_s3 + $0x68] sm:$0xff] %v1015_v11  ;;  %v1363_v62 = vpack.c.bf16 %v1015_v11, %v1014_v38  ;;  %v1031_v10 = vmul.f32 %v1769_v26, %v2770_v41  ;;  %1772 = vrcp.f32 %v901_v31 }
 0x240   :  { %1126 = vst [vmem:[%s3155_s3 + $0x1e0] sm:$0xff] %v1062_v14  ;;  %1774 = vrcp.f32 %v839_v9 }
 0x241   :  { %1495 = vst [vmem:[%s3156_s4 + $0x30] sm:$0xff] %v1363_v62   ;;  %v1403_v59 = vpack.c.bf16 %v1031_v10, %v1030_v5 }
 0x242   :  { %1095 = vst [vmem:[%s3155_s3 + $0xe8] sm:$0xff] %v1031_v10 }
 0x243   :  { %1503 = vst [vmem:[%s3156_s4 + $0x70] sm:$0xff] %v1403_v59  }
 0x244   :  { %v1771_v0 = vpop.eup %1770  ;;  %v871_v47 = vpop.xlane.xlu1 %870 }
 0x245   :  { %v1773_v41 = vpop.eup %1772  ;;  %v1048_v13 = vmul.f32 %v1771_v0, %v2801_v49  ;;  %v873_v56 = vpop.xlane.xlu2 %872 }
 0x246   :  { %v1775_v2 = vpop.eup %1774  ;;  %v1047_v54 = vmul.f32 %v1773_v41, %v2795_v34  ;;  %1776 = vrcp.f32 %v873_v56  ;;  %v905_v22 = vpop.xlane.xlu0 %904 }
 0x247   :  { %1112 = vst [vmem:[%s3155_s3 + $0x170] sm:$0xff] %v1048_v13  ;;  %v1016_v48 = vmul.f32 %v1775_v2, %v2806_v46  ;;  %1778 = vrcp.f32 %v871_v47 }
 0x248   :  { %1111 = vst [vmem:[%s3155_s3 + $0x168] sm:$0xff] %v1047_v54  ;;  %v1443_v16 = vpack.c.bf16 %v1047_v54, %v1046_v24  ;;  %1780 = vrcp.f32 %v905_v22 }
 0x249   :  { %1080 = vst [vmem:[%s3155_s3 + $0x70] sm:$0xff] %v1016_v48 }
 0x24a   :  { %1511 = vst [vmem:[%s3156_s4 + $0xb0] sm:$0xff] %v1443_v16  }
 0x24c   :  { %v1777_v34 = vpop.eup %1776  ;;  %v841_v21 = vpop.xlane.xlu1 %840 }
 0x24d   :  { %v1779_v49 = vpop.eup %1778  ;;  %v1033_v61 = vmul.f32 %v1777_v34, %v2835_v39  ;;  %v933_v46 = vpop.xlane.xlu2 %932 }
 0x24e   :  { %v1781_v45 = vpop.eup %1780  ;;  %v1032_v57 = vmul.f32 %v1779_v49, %v2830_v35  ;;  %1782 = vrcp.f32 %v933_v46  ;;  %v935_v40 = vpop.xlane.xlu0 %934 }
 0x24f   :  { %1097 = vst [vmem:[%s3155_s3 + $0xf8] sm:$0xff] %v1033_v61  ;;  %v1049_v36 = vmul.f32 %v1781_v45, %v2840_v30  ;;  %1784 = vrcp.f32 %v841_v21 }
 0x250   :  { %1096 = vst [vmem:[%s3155_s3 + $0xf0] sm:$0xff] %v1032_v57  ;;  %v1408_v52 = vpack.c.bf16 %v1033_v61, %v1032_v57  ;;  %1786 = vrcp.f32 %v935_v40 }
 0x251   :  { %1113 = vst [vmem:[%s3155_s3 + $0x178] sm:$0xff] %v1049_v36  ;;  %v1448_v35 = vpack.c.bf16 %v1049_v36, %v1048_v13 }
 0x252   :  { %1504 = vst [vmem:[%s3156_s4 + $0x78] sm:$0xff] %v1408_v52  }
 0x253   :  { %1512 = vst [vmem:[%s3156_s4 + $0xb8] sm:$0xff] %v1448_v35  }
 0x254   :  { %v1783_v39 = vpop.eup %1782  ;;  %v937_v42 = vpop.xlane.xlu1 %936 }
 0x255   :  { %v1785_v30 = vpop.eup %1784  ;;  %v1063_v12 = vmul.f32 %v1783_v39, %v2853_v29  ;;  %1788 = vrcp.f32 %v937_v42 }
 0x256   :  { %v1787_v6 = vpop.eup %1786  ;;  %v1017_v8 = vmul.f32 %v1785_v30, %v2859_v25 }
 0x257   :  { %1127 = vst [vmem:[%s3155_s3 + $0x1e8] sm:$0xff] %v1063_v12  ;;  %v1483_v15 = vpack.c.bf16 %v1063_v12, %v1062_v14  ;;  %v1064_v3 = vmul.f32 %v1787_v6, %v2864_v50 }
 0x258   :  { %1081 = vst [vmem:[%s3155_s3 + $0x78] sm:$0xff] %v1017_v8  ;;  %v1368_v44 = vpack.c.bf16 %v1017_v8, %v1016_v48 }
 0x259   :  { %1519 = vst [vmem:[%s3156_s4 + $0xf0] sm:$0xff] %v1483_v15  }
 0x25a   :  { %1496 = vst [vmem:[%s3156_s4 + $0x38] sm:$0xff] %v1368_v44  }
 0x25b   :  { %1128 = vst [vmem:[%s3155_s3 + $0x1f0] sm:$0xff] %v1064_v3  ;;  %v1789_v29 = vpop.eup %1788 }
 0x25c   :  { %v1065_v25 = vmul.f32 %v1789_v29, %v2887_v23 }
 0x25e   :  { %1129 = vst [vmem:[%s3155_s3 + $0x1f8] sm:$0xff] %v1065_v25  ;;  %v1488_v50 = vpack.c.bf16 %v1065_v25, %v1064_v3 }
 0x260   :  { %1520 = vst [vmem:[%s3156_s4 + $0xf8] sm:$0xff] %v1488_v50  }

// kernel: mincut_refinement_forward.3
= control target key start
LH: loop header
LB: loop body
LE: loop exit
PB: predicated region body
PF: predicated region fallthrough
CT: control target
= control target key end

     0   :  { %s3411_s23 = smov [#allocation3]   ;;  %s3412_s24 = smov [#allocation4]   ;;  %s4215_s0 = inlined_call_operand.vmem [shape: s32[4], index: 0, kind: input, shape index: {}]   ;;  %s4216_s3 = inlined_call_operand.vmem [shape: f32[512,32], index: 3, kind: input, shape index: {}, may-alias: {3,6}]   ;;  %s4217_s4 = inlined_call_operand.vmem [shape: f32[512,1], index: 4, kind: input, shape index: {}]   ;;  %s4218_s5 = inlined_call_operand.vmem [shape: bf16[512,128], index: 5, kind: input, shape index: {}, may-alias: {5,8}]   ;;  %s4219_s6 = inlined_call_operand.vmem [shape: f32[512,32], index: 6, kind: input, shape index: {}, may-alias: {3,6}]   ;;  %s4220_s7 = inlined_call_operand.vmem [shape: f32[1,512], index: 7, kind: input, shape index: {}]   ;;  %s4221_s8 = inlined_call_operand.vmem [shape: bf16[512,128], index: 8, kind: input, shape index: {}, may-alias: {5,8}]   ;;  %s4222_s9 = inlined_call_operand.vmem [shape: bf16[512,512], index: 9, kind: input, shape index: {}]   ;;  %s4223_s10 = inlined_call_operand.vmem [shape: f32[16,128], index: 10, kind: output, shape index: {0}]   ;;  %s4224_s11 = inlined_call_operand.vmem [shape: f32[16,128], index: 11, kind: output, shape index: {1}]   ;;  %s4225_s1 = inlined_call_operand.vmem [shape: s32[4], index: 1, kind: input, shape index: {}]   ;;  %s4226_s2 = inlined_call_operand.vmem [shape: s32[4], index: 2, kind: input, shape index: {}]  }
   0x1   :  { %4231 = sst [smem:[#allocation13_spill]] %s4216_s3  ;;  %s18_s19 = sshll.u32 %s4215_s0, 4  ;;  %s19_s19 = int_to_ptr.vmem [resolvable:$true] %s18_s19 }
   0x2   :  { %4232 = sst [smem:[#allocation14_spill]] %s4217_s4  ;;  %s23_s22 = sshll.u32 %s4225_s1, 4  ;;  %s24_s22 = int_to_ptr.vmem [resolvable:$true] %s23_s22 }
   0x3   :  { %4233 = sst [smem:[#allocation15_spill]] %s4218_s5  ;;  %s28_s27 = sshll.u32 %s4226_s2, 4  ;;  %s29_s27 = int_to_ptr.vmem [resolvable:$true] %s28_s27 }
   0x4   :  { %4234 = sst [smem:[#allocation16_spill]] %s4222_s9  ;;  %s3413_s28 = smov [#allocation5]  }
   0x5   :  { %4235 = sst [smem:[#allocation17_spill]] %s4223_s10 }
   0x6   :  { %21 = dma.vmem_to_smem %s19_s19, 16, %s3411_s23, [#allocation2] }
   0x7   :  { %26 = dma.vmem_to_smem %s24_s22, 16, %s3412_s24, [#allocation2] }
   0x8   :  { %31 = dma.vmem_to_smem %s29_s27, 16, %s3413_s28, [#allocation2] }
   0x9   :  { %3381 = dma.done.wait [#allocation2], 48 }
   0xa   :  { %3382 = vsyncadd [#allocation2], 4294967248 }
   0xb   :  { %34 = sfence }
   0xc   :  { %s3485_s0 = smov 0   ;;  %s3487_s29 = smov 0  }
   0xd   :  { %s3489_s1 = smov 0   ;;  %s3491_s30 = smov 0  }
   0xe   :  { %s3493_s12 = smov 0   ;;  %s3495_s13 = smov 0  }
   0xf   :  { %s3497_s14 = smov 0  }
  0x10 LB: > { %4236 = sst [smem:[#allocation8_spill]] %s3401_s12  ;;  %s49_s2 = sadd.s32 1, %s3401_s12  ;;  %s3409_s14 = sphi %s3497_s14, %s40_s14   ;;  %s3405_s13 = sphi %s3495_s13, %s4251_s13   ;;  %s3401_s12 = sphi %s3493_s12, %s4250_s12   ;;  %s3397_s30 = sphi %s3491_s30, %s4249_s30   ;;  %s3393_s1 = sphi %s3489_s1, %s4248_s1   ;;  %s3389_s29 = sphi %s3487_s29, %s4253_s29   ;;  %s3385_s0 = sphi %s3485_s0, %s4252_s0  }
  0x11   : > { %4237 = sst [smem:[#allocation9_spill]] %s3405_s13  ;;  %p50_p0 = scmp.ge.s32.totalorder %s49_s2, 2 }
  0x12   : > { %s52_s15 = sadd.s32 1, %s3405_s13  ;;  %s2836_s16 = sshll.u32 %s3405_s13, 1 }
  0x13   : > { %s4255_s2 = smov (%p50_p0, %s49_s2), 0  ;;  %s4257_s15 = smov (!%p50_p0, %s52_s15), %s3405_s13 }
  0x14   : > { %4238 = sst [smem:[#allocation10_spill]] %s4255_s2  ;;  %p250_p1 = scmp.ne.s32.totalorder %s3389_s29, %s3385_s0 }
  0x15   : > { %p54_p2 = scmp.ge.s32.totalorder %s4257_s15, 2  ;;  %s231_s17 = sadd.s32 %s3401_s12, %s2836_s16 }
  0x16   : > { %p251_p3 = scmp.eq.s32.totalorder %s3409_s14, 0  ;;  %s232_s19 = sld [smem:[#allocation4 + %s231_s17]] }
  0x17   : > { %s4259_s15 = smov (%p54_p2, %s4257_s15), 0  ;;  %s233_s21 = sld [smem:[#allocation5 + %s231_s17]] }
  0x18   : > { %4239 = sst [smem:[#allocation11_spill]] %s4259_s15  ;;  %p3532_p4 = por %p251_p3, %p250_p1 }
  0x19   : > { %s2837_s20 = sshll.u32 %s4259_s15, 1  ;;  %s243_s28 = sadd.s32 1, %s3389_s29 }
  0x1a   : > { %s235_s22 = sadd.s32 %s2837_s20, %s4255_s2  ;;  %p2839_p6 = scmp.ge.s32.totalorder %s3409_s14, 4 }
  0x1b   : > { %s236_s23 = sld [smem:[#allocation4 + %s235_s22]] }
  0x1c   : > { %s237_s24 = sld [smem:[#allocation5 + %s235_s22]] }
  0x21   : > { %s238_s25 = ssub.s32 %s232_s19, %s236_s23 }
  0x22   : > { %s239_s26 = ssub.s32 %s233_s21, %s237_s24 }
  0x23   : > { %s240_s27 = sor.u32 %s239_s26, %s238_s25 }
  0x24   : > { %p241_p5 = scmp.eq.s32.totalorder %s240_s27, 0  ;;  %328 = sbr.rel (%p2839_p6) target bundleno = 85 (0x55), region = 16 }
  0x26   : > { %s3540_s16 = scalar_select %p241_p5, %s3389_s29, %s243_s28  }
  0x28   : > { %4241 = sst [smem:[#allocation12_spill]] %s3540_s16 }
  0x29   : > { %402 = sbr.rel (!%p3532_p4) target bundleno = 85 (0x55), region = 44  ;;  %s409_s13 = sld [smem:[#allocation4 + %s231_s17]] (%p3532_p4) }
  0x2a   : > { %s410_s15 = sld [smem:[#allocation5 + %s231_s17]] (%p3532_p4)  ;;  %s404_s12 = sand.u32 (%p3532_p4), 1, %s3389_s29  }
  0x2b   : > { %s2840_s20 = sshll.u32 (%p3532_p4), %s404_s12, 8  ;;  %s4242_s9 = sld [smem:[#allocation16_spill]] (%p3532_p4) }
  0x2c   : > { %s3554_s12 = scalar_lea.vmem (%p3532_p4), [#allocation6], %s2840_s20 }
  0x2f   : > { %s3029_s2 = sshll.u32 %s409_s13, 7 }
  0x30   : > { %s2843_s22 = sshll.u32 %s410_s15, 1 }
  0x31   : > { %s414_s19 = sadd.s32 %s3029_s2, %s2843_s22 }
  0x32   : > { %s2845_s21 = sshll.u32 %s414_s19, 2 }
  0x33   : > { %s3549_s25 = scalar_lea.vmem %s4242_s9, %s2845_s21 }
  0x34   : > { %v507_v0 = vld [vmem:[%s3549_s25] sm:$0xff]  ;;  %v509_v1 = vld [vmem:[%s3549_s25 + $0x10] sm:$0xff] }
  0x35   : > { %v511_v2 = vld [vmem:[%s3549_s25 + $0x20] sm:$0xff]  ;;  %508 = vst [vmem:[%s3554_s12] sm:$0xff] %v507_v0  ;;  %v513_v3 = vld [vmem:[%s3549_s25 + $0x30] sm:$0xff] }
  0x36   : > { %510 = vst [vmem:[%s3554_s12 + $0x8] sm:$0xff] %v509_v1  ;;  %v515_v4 = vld [vmem:[%s3549_s25 + $0x40] sm:$0xff]  ;;  %v517_v5 = vld [vmem:[%s3549_s25 + $0x50] sm:$0xff] }
  0x37   : > { %512 = vst [vmem:[%s3554_s12 + $0x10] sm:$0xff] %v511_v2  ;;  %v519_v6 = vld [vmem:[%s3549_s25 + $0x60] sm:$0xff]  ;;  %v521_v7 = vld [vmem:[%s3549_s25 + $0x70] sm:$0xff] }
  0x38   : > { %514 = vst [vmem:[%s3554_s12 + $0x18] sm:$0xff] %v513_v3  ;;  %v523_v8 = vld [vmem:[%s3549_s25 + $0x80] sm:$0xff]  ;;  %v525_v9 = vld [vmem:[%s3549_s25 + $0x90] sm:$0xff] }
  0x39   : > { %516 = vst [vmem:[%s3554_s12 + $0x20] sm:$0xff] %v515_v4  ;;  %v527_v10 = vld [vmem:[%s3549_s25 + $0xa0] sm:$0xff]  ;;  %v529_v11 = vld [vmem:[%s3549_s25 + $0xb0] sm:$0xff] }
  0x3a   : > { %518 = vst [vmem:[%s3554_s12 + $0x28] sm:$0xff] %v517_v5  ;;  %v531_v12 = vld [vmem:[%s3549_s25 + $0xc0] sm:$0xff]  ;;  %v533_v13 = vld [vmem:[%s3549_s25 + $0xd0] sm:$0xff] }
  0x3b   : > { %520 = vst [vmem:[%s3554_s12 + $0x30] sm:$0xff] %v519_v6  ;;  %v535_v14 = vld [vmem:[%s3549_s25 + $0xe0] sm:$0xff]  ;;  %v537_v15 = vld [vmem:[%s3549_s25 + $0xf0] sm:$0xff] }
  0x3c   : > { %522 = vst [vmem:[%s3554_s12 + $0x38] sm:$0xff] %v521_v7  ;;  %v539_v16 = vld [vmem:[%s3549_s25 + $0x100] sm:$0xff]  ;;  %v541_v17 = vld [vmem:[%s3549_s25 + $0x110] sm:$0xff] }
  0x3d   : > { %524 = vst [vmem:[%s3554_s12 + $0x40] sm:$0xff] %v523_v8  ;;  %v543_v18 = vld [vmem:[%s3549_s25 + $0x120] sm:$0xff]  ;;  %v545_v19 = vld [vmem:[%s3549_s25 + $0x130] sm:$0xff] }
  0x3e   : > { %526 = vst [vmem:[%s3554_s12 + $0x48] sm:$0xff] %v525_v9  ;;  %v547_v20 = vld [vmem:[%s3549_s25 + $0x140] sm:$0xff]  ;;  %v549_v21 = vld [vmem:[%s3549_s25 + $0x150] sm:$0xff] }
  0x3f   : > { %528 = vst [vmem:[%s3554_s12 + $0x50] sm:$0xff] %v527_v10  ;;  %v551_v22 = vld [vmem:[%s3549_s25 + $0x160] sm:$0xff]  ;;  %v553_v23 = vld [vmem:[%s3549_s25 + $0x170] sm:$0xff] }
  0x40   : > { %530 = vst [vmem:[%s3554_s12 + $0x58] sm:$0xff] %v529_v11  ;;  %v555_v24 = vld [vmem:[%s3549_s25 + $0x180] sm:$0xff]  ;;  %v557_v25 = vld [vmem:[%s3549_s25 + $0x190] sm:$0xff] }
  0x41   : > { %532 = vst [vmem:[%s3554_s12 + $0x60] sm:$0xff] %v531_v12  ;;  %v559_v26 = vld [vmem:[%s3549_s25 + $0x1a0] sm:$0xff]  ;;  %v561_v27 = vld [vmem:[%s3549_s25 + $0x1b0] sm:$0xff] }
  0x42   : > { %534 = vst [vmem:[%s3554_s12 + $0x68] sm:$0xff] %v533_v13  ;;  %v563_v28 = vld [vmem:[%s3549_s25 + $0x1c0] sm:$0xff]  ;;  %v565_v29 = vld [vmem:[%s3549_s25 + $0x1d0] sm:$0xff] }
  0x43   : > { %536 = vst [vmem:[%s3554_s12 + $0x70] sm:$0xff] %v535_v14  ;;  %v567_v30 = vld [vmem:[%s3549_s25 + $0x1e0] sm:$0xff]  ;;  %v569_v31 = vld [vmem:[%s3549_s25 + $0x1f0] sm:$0xff] }
  0x44   : > { %538 = vst [vmem:[%s3554_s12 + $0x78] sm:$0xff] %v537_v15 }
  0x45   : > { %540 = vst [vmem:[%s3554_s12 + $0x80] sm:$0xff] %v539_v16 }
  0x46   : > { %542 = vst [vmem:[%s3554_s12 + $0x88] sm:$0xff] %v541_v17 }
  0x47   : > { %544 = vst [vmem:[%s3554_s12 + $0x90] sm:$0xff] %v543_v18 }
  0x48   : > { %546 = vst [vmem:[%s3554_s12 + $0x98] sm:$0xff] %v545_v19 }
  0x49   : > { %548 = vst [vmem:[%s3554_s12 + $0xa0] sm:$0xff] %v547_v20 }
  0x4a   : > { %550 = vst [vmem:[%s3554_s12 + $0xa8] sm:$0xff] %v549_v21 }
  0x4b   : > { %552 = vst [vmem:[%s3554_s12 + $0xb0] sm:$0xff] %v551_v22 }
  0x4c   : > { %554 = vst [vmem:[%s3554_s12 + $0xb8] sm:$0xff] %v553_v23 }
  0x4d   : > { %556 = vst [vmem:[%s3554_s12 + $0xc0] sm:$0xff] %v555_v24 }
  0x4e   : > { %558 = vst [vmem:[%s3554_s12 + $0xc8] sm:$0xff] %v557_v25 }
  0x4f   : > { %560 = vst [vmem:[%s3554_s12 + $0xd0] sm:$0xff] %v559_v26 }
  0x50   : > { %562 = vst [vmem:[%s3554_s12 + $0xd8] sm:$0xff] %v561_v27 }
  0x51   : > { %564 = vst [vmem:[%s3554_s12 + $0xe0] sm:$0xff] %v563_v28 }
  0x52   : > { %566 = vst [vmem:[%s3554_s12 + $0xe8] sm:$0xff] %v565_v29 }
  0x53   : > { %568 = vst [vmem:[%s3554_s12 + $0xf0] sm:$0xff] %v567_v30 }
  0x54   : > { %570 = vst [vmem:[%s3554_s12 + $0xf8] sm:$0xff] %v569_v31 }
  0x55 PF: > { %p2846_p7 = scmp.ge.s32.totalorder %s3409_s14, 1  ;;  %p575_p8 = scmp.lt.s32.totalorder %s3409_s14, 5 }
  0x57   : > { %p576_p9 = pnand %p2846_p7, %p575_p8 }
  0x58   : > { %s582_s13 = sand.u32 (!%p576_p9), 1, %s3385_s0   ;;  %s2848_s2 = sshll.u32 (!%p576_p9), %s3397_s30, 5 }
  0x59   : > { %579 = sbr.rel (%p576_p9) target bundleno = 741 (0x2e5), region = 82  ;;  %s3621_s15 = sshll.u32 (!%p576_p9), %s582_s13, 8 }
  0x5a   : > { %p657_p10 = scmp.lt.s32.totalorder (!%p576_p9), %s2848_s2, 63  ;;  %s2854_s17 = sshll.u32 (!%p576_p9), %s3397_s30, 1 }
  0x5b   : > { %s3625_s18 = sadd.s32 (!%p576_p9), %s3393_s1, %s2854_s17  ;;  %p715_p11 = scmp.lt.s32.totalorder (!%p576_p9), %s3397_s30, 1 }
  0x5c   : > { %s4243_s3 = sld [smem:[#allocation13_spill]] (!%p576_p9)  ;;  %p2865_p1 = scmp.ne.s32.totalorder (!%p576_p9), %s3393_s1, 0 }
  0x5d   : > { %s4244_s4 = sld [smem:[#allocation14_spill]] (!%p576_p9) }
  0x5e   : > { %s4261_s2 = smov (!%p657_p10, %s2848_s2), 63  ;;  %s4245_s5 = sld [smem:[#allocation15_spill]] }
  0x5f   : > { %s2849_s26 = sshll.u32 %s4261_s2, 3  ;;  %s2853_s27 = sshll.u32 %s4261_s2, 2 }
  0x60   : > { %s676_s12 = sld [smem:[#allocation5 + %s3625_s18]]  ;;  %s4263_s30 = smov (!%p715_p11, %s3397_s30), 1 }
  0x61   : > { %s688_s13 = sld [smem:[#allocation5 + %s3625_s18]]  ;;  %s2862_s2 = sshll.u32 %s4263_s30, 3 }
  0x62   : > { %s3631_s22 = scalar_lea.vmem %s4243_s3, %s2849_s26  ;;  %s699_s17 = sld [smem:[#allocation5 + %s3625_s18]] }
  0x63   : > { %s3636_s21 = scalar_lea.vmem %s4244_s4, %s2849_s26  ;;  %s4246_s10 = sld [smem:[#allocation17_spill]] }
  0x64   : > { %s3641_s25 = scalar_lea.vmem %s4245_s5, %s2853_s27 }
  0x66   : > { %s2855_s9 = sshll.u32 %s676_s12, 5 }
  0x67   : > { %p678_p12 = scmp.lt.s32.totalorder %s2855_s9, 63  ;;  %s2858_s26 = sshll.u32 %s688_s13, 1 }
  0x68   : > { %p690_p13 = scmp.lt.s32.totalorder %s2858_s26, 3  ;;  %s2860_s0 = sshll.u32 %s699_s17, 5 }
  0x69   : > { %s3650_s20 = scalar_lea.vmem %s4246_s10, %s2862_s2  ;;  %s4265_s9 = smov (!%p678_p12, %s2855_s9), 63 }
  0x6a   : > { %s4267_s26 = smov (!%p690_p13, %s2858_s26), 3  ;;  %s2856_s27 = sshll.u32 %s4265_s9, 3 }
  0x6b   : > { %p701_p0 = scmp.lt.s32.totalorder %s2860_s0, 63  ;;  %s3657_s30 = scalar_lea.vmem %s4219_s6, %s2856_s27 }
  0x6c   : > { %s692_s12 = scalar_lea.vmem %s4220_s7, %s4267_s26  ;;  %s3666_s17 = scalar_lea.vmem %s4224_s11, %s2862_s2 }
  0x6d   : > { %s4269_s0 = smov (!%p701_p0, %s2860_s0), 63  ;;  %s3674_s10 = scalar_lea.vmem [#allocation6], %s3621_s15 }
  0x6e   : > { %s2861_s3 = sshll.u32 %s4269_s0, 2  ;;  %728 = sbr.rel (%p2865_p1) target bundleno = 118 (0x76), region = 90 }
  0x6f   : > { %s3671_s9 = scalar_lea.vmem %s4221_s8, %s2861_s3 }
  0x73   : > { %v3414_v32 = vmov 0.0  }
  0x74   : > { %729 = vst [vmem:[%s3650_s20] sm:$0xff] %v3414_v32 }
  0x75   : > { %730 = vst [vmem:[%s3666_s17] sm:$0xff] %v3414_v32 }
  0x76 PF: > { %s731_s2 = sld [smem:[#allocation3 + %s3625_s18]] }
  0x7c   : > { %p2866_p2 = scmp.le.s32.totalorder %s731_s2, 0 }
  0x7e   : > { %735 = sbr.rel (%p2866_p2) target bundleno = 741 (0x2e5), region = 94 }
  0x83   : > { %v783_v33 = vld [vmem:[%s3657_s30 + $0x78] sm:$0xff]  ;;  %vm992_vm0 = vcmask 261120   ;;  %v1411_v35 = vld [vmem:[%s3636_s21] sm:$0xff]  ;;  %v3415_v36 = vmov 0   ;;  %v782_v37 = vld [vmem:[%s3657_s30 + $0x70] sm:$0xff] }
  0x84   : > { %v799_v34 = vld [vmem:[%s3657_s30 + $0xf8] sm:$0xff]  ;;  %3186 = vset.pattern.permute.xlu0 %v3415_v36  ;;  %2867 = vmatpush.xpose.msk.msra.mxu0 %vm992_vm0, %v783_v33  ;;  %v1413_v38 = vld [vmem:[%s3636_s21 + $0x10] sm:$0xff]  ;;  %v781_v40 = vld [vmem:[%s3657_s30 + $0x68] sm:$0xff] }
  0x85   : > { %2915 = vmatpush.xpose.msk.msra.mxu1 %vm992_vm0, %v799_v34  ;;  %1446 = vperm.xlu0 %3186, %v1411_v35   ;;  %v798_v39 = vld [vmem:[%s3657_s30 + $0xf0] sm:$0xff]  ;;  %v797_v41 = vld [vmem:[%s3657_s30 + $0xe8] sm:$0xff]  ;;  %v1414_v43 = vld [vmem:[%s3636_s21 + $0x18] sm:$0xff] }
  0x86   : > { %3187 = vset.pattern.permute.xlu1 %v3415_v36  ;;  %3188 = vset.pattern.permute.xlu2 %v3415_v36  ;;  %v1412_v42 = vld [vmem:[%s3636_s21 + $0x8] sm:$0xff]  ;;  %v780_v44 = vld [vmem:[%s3657_s30 + $0x60] sm:$0xff]  ;;  %v779_v46 = vld [vmem:[%s3657_s30 + $0x58] sm:$0xff] }
  0x87   : > { %1456 = vperm.xlu1 %3187, %v1413_v38   ;;  %v796_v45 = vld [vmem:[%s3657_s30 + $0xe0] sm:$0xff]  ;;  %v795_v47 = vld [vmem:[%s3657_s30 + $0xd8] sm:$0xff]  ;;  %v1417_v48 = vld [vmem:[%s3636_s21 + $0x30] sm:$0xff] }
  0x88   : > { %2868 = vmatpush.xpose.msk.msra.mxu0 %vm992_vm0, %v782_v37  ;;  %v1418_v49 = vld [vmem:[%s3636_s21 + $0x38] sm:$0xff]  ;;  %v778_v50 = vld [vmem:[%s3657_s30 + $0x50] sm:$0xff]  ;;  %v777_v52 = vld [vmem:[%s3657_s30 + $0x48] sm:$0xff] }
  0x89   : > { %2916 = vmatpush.xpose.msk.msra.mxu1 %vm992_vm0, %v798_v39  ;;  %v794_v51 = vld [vmem:[%s3657_s30 + $0xd0] sm:$0xff]  ;;  %v793_v53 = vld [vmem:[%s3657_s30 + $0xc8] sm:$0xff]  ;;  %v776_v56 = vld [vmem:[%s3657_s30 + $0x40] sm:$0xff] }
  0x8a   : > { %v1420_v54 = vld [vmem:[%s3636_s21 + $0x48] sm:$0xff]  ;;  %v1421_v55 = vld [vmem:[%s3636_s21 + $0x50] sm:$0xff]  ;;  %v1415_v57 = vld [vmem:[%s3636_s21 + $0x20] sm:$0xff] }
  0x8b   : > { %v792_v58 = vld [vmem:[%s3657_s30 + $0xc0] sm:$0xff]  ;;  %1466 = vperm.xlu2 %3188, %v1415_v57   ;;  %v775_v59 = vld [vmem:[%s3657_s30 + $0x38] sm:$0xff]  ;;  %v1424_v62 = vld [vmem:[%s3636_s21 + $0x68] sm:$0xff] }
  0x8c   : > { %2869 = vmatpush.xpose.msk.msra.mxu0 %vm992_vm0, %v781_v40  ;;  %v791_v60 = vld [vmem:[%s3657_s30 + $0xb8] sm:$0xff]  ;;  %v1423_v61 = vld [vmem:[%s3636_s21 + $0x60] sm:$0xff]  ;;  %v774_v63 = vld [vmem:[%s3657_s30 + $0x30] sm:$0xff] }
  0x8d   : > { %2917 = vmatpush.xpose.msk.msra.mxu1 %vm992_vm0, %v797_v41  ;;  %1451 = vperm.xlu0 %3186, %v1412_v42   ;;  %v1416_v0 = vld [vmem:[%s3636_s21 + $0x28] sm:$0xff]  ;;  %v790_v1 = vld [vmem:[%s3657_s30 + $0xb0] sm:$0xff]  ;;  %v1426_v4 = vld [vmem:[%s3636_s21 + $0x78] sm:$0xff] }
  0x8e   : > { %v773_v2 = vld [vmem:[%s3657_s30 + $0x28] sm:$0xff]  ;;  %v1427_v5 = vld [vmem:[%s3636_s21 + $0x80] sm:$0xff]  ;;  %v771_v9 = vld [vmem:[%s3657_s30 + $0x18] sm:$0xff] }
  0x8f   : > { %1461 = vperm.xlu1 %3187, %v1414_v43   ;;  %v789_v3 = vld [vmem:[%s3657_s30 + $0xa8] sm:$0xff]  ;;  %v772_v6 = vld [vmem:[%s3657_s30 + $0x20] sm:$0xff]  ;;  %v787_v10 = vld [vmem:[%s3657_s30 + $0x98] sm:$0xff] }
  0x90   : > { %2870 = vmatpush.xpose.msk.msra.mxu0 %vm992_vm0, %v780_v44  ;;  %v1419_v7 = vld [vmem:[%s3636_s21 + $0x40] sm:$0xff]  ;;  %v1429_v11 = vld [vmem:[%s3636_s21 + $0x90] sm:$0xff]  ;;  %v1430_v12 = vld [vmem:[%s3636_s21 + $0x98] sm:$0xff] }
  0x91   : > { %2918 = vmatpush.xpose.msk.msra.mxu1 %vm992_vm0, %v796_v45  ;;  %v788_v8 = vld [vmem:[%s3657_s30 + $0xa0] sm:$0xff]  ;;  %v770_v13 = vld [vmem:[%s3657_s30 + $0x10] sm:$0xff]  ;;  %v1422_v14 = vld [vmem:[%s3636_s21 + $0x58] sm:$0xff] }
  0x92   : > { %v786_v15 = vld [vmem:[%s3657_s30 + $0x90] sm:$0xff]  ;;  %v769_v16 = vld [vmem:[%s3657_s30 + $0x8] sm:$0xff]  ;;  %v768_v21 = vld [vmem:[%s3657_s30] sm:$0xff] }
  0x93   : > { %1471 = vperm.xlu2 %3188, %v1416_v0   ;;  %v785_v17 = vld [vmem:[%s3657_s30 + $0x88] sm:$0xff]  ;;  %v1433_v19 = vld [vmem:[%s3636_s21 + $0xb0] sm:$0xff]  ;;  %v784_v22 = vld [vmem:[%s3657_s30 + $0x80] sm:$0xff] }
  0x94   : > { %2871 = vmatpush.xpose.msk.msra.mxu0 %vm992_vm0, %v779_v46  ;;  %v1432_v18 = vld [vmem:[%s3636_s21 + $0xa8] sm:$0xff]  ;;  %v1425_v20 = vld [vmem:[%s3636_s21 + $0x70] sm:$0xff]  ;;  %v736_v23 = vld [vmem:[%s3631_s22] sm:$0xff] }
  0x95   : > { %2919 = vmatpush.xpose.msk.msra.mxu1 %vm992_vm0, %v795_v47  ;;  %1476 = vperm.xlu0 %3186, %v1417_v48   ;;  %v1435_v24 = vld [vmem:[%s3636_s21 + $0xc0] sm:$0xff]  ;;  %v1436_v25 = vld [vmem:[%s3636_s21 + $0xc8] sm:$0xff]  ;;  %v1438_v28 = vld [vmem:[%s3636_s21 + $0xd8] sm:$0xff] }
  0x96   : > { %v1428_v26 = vld [vmem:[%s3636_s21 + $0x88] sm:$0xff]  ;;  %v1439_v29 = vld [vmem:[%s3636_s21 + $0xe0] sm:$0xff]  ;;  %v738_v31 = vld [vmem:[%s3631_s22 + $0x10] sm:$0xff] }
  0x97   : > { %1481 = vperm.xlu1 %3187, %v1418_v49   ;;  %v737_v27 = vld [vmem:[%s3631_s22 + $0x8] sm:$0xff]  ;;  %v1431_v30 = vld [vmem:[%s3636_s21 + $0xa0] sm:$0xff]  ;;  %v1441_v32 = vld [vmem:[%s3636_s21 + $0xf0] sm:$0xff] }
  0x98   : > { %2872 = vmatpush.xpose.msk.msra.mxu0 %vm992_vm0, %v778_v50  ;;  %v1442_v33 = vld [vmem:[%s3636_s21 + $0xf8] sm:$0xff]  ;;  %v1437_v36 = vld [vmem:[%s3636_s21 + $0xd0] sm:$0xff]  ;;  %v740_v37 = vld [vmem:[%s3631_s22 + $0x20] sm:$0xff] }
  0x99   : > { %2920 = vmatpush.xpose.msk.msra.mxu1 %vm992_vm0, %v794_v51  ;;  %v1434_v34 = vld [vmem:[%s3636_s21 + $0xb8] sm:$0xff]  ;;  %v1440_v38 = vld [vmem:[%s3636_s21 + $0xe8] sm:$0xff]  ;;  %v742_v40 = vld [vmem:[%s3631_s22 + $0x30] sm:$0xff] }
  0x9a   : > { %v739_v35 = vld [vmem:[%s3631_s22 + $0x18] sm:$0xff]  ;;  %v741_v39 = vld [vmem:[%s3631_s22 + $0x28] sm:$0xff]  ;;  %v744_v42 = vld [vmem:[%s3631_s22 + $0x40] sm:$0xff] }
  0x9b   : > { %1486 = vperm.xlu2 %3188, %v1419_v7   ;;  %v743_v41 = vld [vmem:[%s3631_s22 + $0x38] sm:$0xff]  ;;  %v745_v43 = vld [vmem:[%s3631_s22 + $0x48] sm:$0xff]  ;;  %v746_v44 = vld [vmem:[%s3631_s22 + $0x50] sm:$0xff] }
  0x9c   : > { %2873 = vmatpush.xpose.msk.msra.mxu0 %vm992_vm0, %v777_v52  ;;  %v747_v45 = vld [vmem:[%s3631_s22 + $0x58] sm:$0xff]  ;;  %v748_v48 = vld [vmem:[%s3631_s22 + $0x60] sm:$0xff]  ;;  %v3036_v49 = vld [vmem:[%s3671_s9 + $0x30] sm:$0xff] }
  0x9d   : > { %2921 = vmatpush.xpose.msk.msra.mxu1 %vm992_vm0, %v793_v53  ;;  %1491 = vperm.xlu0 %3186, %v1420_v54   ;;  %v3037_v46 = vld [vmem:[%s3671_s9 + $0x38] sm:$0xff]  ;;  %v3044_v50 = vld [vmem:[%s3671_s9 + $0x70] sm:$0xff]  ;;  %v3035_v51 = vld [vmem:[%s3671_s9 + $0x28] sm:$0xff] }
  0x9e   : > { %v3045_v47 = vld [vmem:[%s3671_s9 + $0x78] sm:$0xff]  ;;  %2345 = vmatpush.bf16.msra.mxu2 %v3037_v46  ;;  %v3043_v52 = vld [vmem:[%s3671_s9 + $0x68] sm:$0xff]  ;;  %v3034_v54 = vld [vmem:[%s3671_s9 + $0x20] sm:$0xff] }
  0x9f   : > { %1496 = vperm.xlu1 %3187, %v1421_v55   ;;  %2434 = vmatpush.bf16.msra.mxu3 %v3045_v47  ;;  %v749_v53 = vld [vmem:[%s3631_s22 + $0x68] sm:$0xff]  ;;  %v3042_v55 = vld [vmem:[%s3671_s9 + $0x60] sm:$0xff]  ;;  %v3041_v57 = vld [vmem:[%s3671_s9 + $0x58] sm:$0xff] }
  0xa0   : > { %2874 = vmatpush.xpose.msk.msra.mxu0 %vm992_vm0, %v776_v56  ;;  %v3033_v56 = vld [vmem:[%s3671_s9 + $0x18] sm:$0xff] }
  0xa1   : > { %2922 = vmatpush.xpose.msk.msra.mxu1 %vm992_vm0, %v792_v58  ;;  %v750_v58 = vld [vmem:[%s3631_s22 + $0x70] sm:$0xff]  ;;  %v751_v0 = vld [vmem:[%s3631_s22 + $0x78] sm:$0xff] }
  0xa2   : > { %2346 = vmatpush.bf16.msra.mxu2 %v3036_v49 }
  0xa3   : > { %1501 = vperm.xlu2 %3188, %v1422_v14   ;;  %2435 = vmatpush.bf16.msra.mxu3 %v3044_v50 }
  0xa4   : > { %2875 = vmatpush.xpose.msk.msra.mxu0 %vm992_vm0, %v775_v59  ;;  %v3032_v59 = vld [vmem:[%s3671_s9 + $0x10] sm:$0xff] }
  0xa5   : > { %2923 = vmatpush.xpose.msk.msra.mxu1 %vm992_vm0, %v791_v60  ;;  %1506 = vperm.xlu0 %3186, %v1423_v61   ;;  %v3040_v60 = vld [vmem:[%s3671_s9 + $0x50] sm:$0xff]  ;;  %v3031_v61 = vld [vmem:[%s3671_s9 + $0x8] sm:$0xff] }
  0xa6   : > { %2347 = vmatpush.bf16.msra.mxu2 %v3035_v51 }
  0xa7   : > { %1511 = vperm.xlu1 %3187, %v1424_v62   ;;  %2436 = vmatpush.bf16.msra.mxu3 %v3043_v52  ;;  %v3039_v62 = vld [vmem:[%s3671_s9 + $0x48] sm:$0xff] }
  0xa8   : > { %2876 = vmatpush.xpose.msk.msra.mxu0 %vm992_vm0, %v774_v63  ;;  %v1443_v63 = vld [vmem:[%s692_s12] sm:$0x3] }
  0xa9   : > { %2924 = vmatpush.xpose.msk.msra.mxu1 %vm992_vm0, %v790_v1  ;;  %v3030_v1 = vld [vmem:[%s3671_s9] sm:$0xff] }
  0xaa   : > { %2348 = vmatpush.bf16.msra.mxu2 %v3034_v54 }
  0xab   : > { %1516 = vperm.xlu2 %3188, %v1425_v20   ;;  %2437 = vmatpush.bf16.msra.mxu3 %v3042_v55 }
  0xac   : > { %2877 = vmatpush.xpose.msk.msra.mxu0 %vm992_vm0, %v773_v2  ;;  %v3038_v2 = vld [vmem:[%s3671_s9 + $0x40] sm:$0xff] }
  0xad   : > { %2925 = vmatpush.xpose.msk.msra.mxu1 %vm992_vm0, %v789_v3  ;;  %1521 = vperm.xlu0 %3186, %v1426_v4   ;;  %v3843_v3 = vperm.slane %v1443_v63, 0  ;;  %v3846_v4 = vperm.slane %v1443_v63, 1 }
  0xae   : > { %2349 = vmatpush.bf16.msra.mxu2 %v3033_v56 }
  0xaf   : > { %1526 = vperm.xlu1 %3187, %v1427_v5   ;;  %2438 = vmatpush.bf16.msra.mxu3 %v3041_v57 }
  0xb0   : > { %2878 = vmatpush.xpose.msk.msra.mxu0 %vm992_vm0, %v772_v6 }
  0xb1   : > { %2926 = vmatpush.xpose.msk.msra.mxu1 %vm992_vm0, %v788_v8 }
  0xb2   : > { %2350 = vmatpush.bf16.msra.mxu2 %v3032_v59 }
  0xb3   : > { %1531 = vperm.xlu2 %3188, %v1428_v26   ;;  %2439 = vmatpush.bf16.msra.mxu3 %v3040_v60 }
  0xb4   : > { %2879 = vmatpush.xpose.msk.msra.mxu0 %vm992_vm0, %v771_v9  ;;  %v752_v9 = vld [vmem:[%s3631_s22 + $0x80] sm:$0xff] }
  0xb5   : > { %2927 = vmatpush.xpose.msk.msra.mxu1 %vm992_vm0, %v787_v10  ;;  %1536 = vperm.xlu0 %3186, %v1429_v11  }
  0xb6   : > { %2351 = vmatpush.bf16.msra.mxu2 %v3031_v61 }
  0xb7   : > { %1541 = vperm.xlu1 %3187, %v1430_v12   ;;  %2440 = vmatpush.bf16.msra.mxu3 %v3039_v62 }
  0xb8   : > { %2880 = vmatpush.xpose.msk.msra.mxu0 %vm992_vm0, %v770_v13 }
  0xb9   : > { %2928 = vmatpush.xpose.msk.msra.mxu1 %vm992_vm0, %v786_v15 }
  0xba   : > { %2352 = vmatpush.bf16.msra.mxu2 %v3030_v1 }
  0xbb   : > { %1546 = vperm.xlu2 %3188, %v1431_v30   ;;  %2441 = vmatpush.bf16.msra.mxu3 %v3038_v2  ;;  %v896_v30 = vld [vmem:[%s3674_s10] sm:$0xff] }
  0xbc   : > { %2881 = vmatpush.xpose.msk.msra.mxu0 %vm992_vm0, %v769_v16 }
  0xbd   : > { %2929 = vmatpush.xpose.msk.msra.mxu1 %vm992_vm0, %v785_v17  ;;  %1551 = vperm.xlu0 %3186, %v1432_v18  }
  0xbf   : > { %1556 = vperm.xlu1 %3187, %v1433_v19  }
  0xc0   : > { %2882 = vmatpush.xpose.msk.msra.mxu0 %vm992_vm0, %v768_v21  ;;  %v753_v21 = vld [vmem:[%s3631_s22 + $0x88] sm:$0xff] }
  0xc1   : > { %2930 = vmatpush.xpose.msk.msra.mxu1 %vm992_vm0, %v784_v22 }
  0xc3   : > { %2883 = vmatmul.msk.f32.vlgmr.msra.gmra.mxu0 %vm992_vm0, %v736_v23  ;;  %1561 = vperm.xlu2 %3188, %v1434_v34  }
  0xc4   : > { %2931 = vmatmul.msk.f32.vlgmr.msra.gmra.mxu1 %vm992_vm0, %v736_v23 }
  0xc5   : > { %1566 = vperm.xlu0 %3186, %v1435_v24  }
  0xc7   : > { %1571 = vperm.xlu1 %3187, %v1436_v25  }
  0xcb   : > { %2884 = vmatmul.msk.f32.gmra.mxu0 %vm992_vm0, %v737_v27  ;;  %1576 = vperm.xlu2 %3188, %v1437_v36  }
  0xcc   : > { %2932 = vmatmul.msk.f32.gmra.mxu1 %vm992_vm0, %v737_v27 }
  0xcd   : > { %1581 = vperm.xlu0 %3186, %v1438_v28  }
  0xcf   : > { %1586 = vperm.xlu1 %3187, %v1439_v29  }
  0xd3   : > { %2885 = vmatmul.msk.f32.gmra.mxu0 %vm992_vm0, %v738_v31  ;;  %1591 = vperm.xlu2 %3188, %v1440_v38   ;;  %v929_v38 = vunpack.c.h.bf16 %v896_v30 }
  0xd4   : > { %2933 = vmatmul.msk.f32.gmra.mxu1 %vm992_vm0, %v738_v31 }
  0xd5   : > { %1596 = vperm.xlu0 %3186, %v1441_v32  }
  0xd7   : > { %1601 = vperm.xlu1 %3187, %v1442_v33  }
  0xdb   : > { %2886 = vmatmul.msk.f32.gmra.mxu0 %vm992_vm0, %v739_v35 }
  0xdc   : > { %2934 = vmatmul.msk.f32.gmra.mxu1 %vm992_vm0, %v739_v35  ;;  %v928_v35 = vunpack.c.l.bf16 %v896_v30  ;;  %v756_v30 = vld [vmem:[%s3631_s22 + $0xa0] sm:$0xff] }
  0xe3   : > { %2887 = vmatmul.msk.f32.gmra.mxu0 %vm992_vm0, %v740_v37 }
  0xe4   : > { %2935 = vmatmul.msk.f32.gmra.mxu1 %vm992_vm0, %v740_v37 }
  0xeb   : > { %2888 = vmatmul.msk.f32.gmra.mxu0 %vm992_vm0, %v741_v39 }
  0xec   : > { %2936 = vmatmul.msk.f32.gmra.mxu1 %vm992_vm0, %v741_v39 }
  0xf3   : > { %2889 = vmatmul.msk.f32.gmra.mxu0 %vm992_vm0, %v742_v40 }
  0xf4   : > { %2937 = vmatmul.msk.f32.gmra.mxu1 %vm992_vm0, %v742_v40 }
  0xf7   : > { %v1447_v5 = vpop.permute.xlu0 %1446 }
  0xf8   : > { %v1609_v6 = vadd.f32 %v3843_v3, %v1447_v5  ;;  %v1610_v7 = vadd.f32 %v3846_v4, %v1447_v5 }
  0xf9   : > { %v1457_v33 = vpop.permute.xlu1 %1456 }
  0xfa   : > { %v1613_v36 = vadd.f32 %v3843_v3, %v1457_v33  ;;  %v1614_v39 = vadd.f32 %v3846_v4, %v1457_v33 }
  0xfb   : > { %2890 = vmatmul.msk.f32.gmra.mxu0 %vm992_vm0, %v743_v41 }
  0xfc   : > { %2938 = vmatmul.msk.f32.gmra.mxu1 %vm992_vm0, %v743_v41 }
  0xff   : > { %v1452_v18 = vpop.permute.xlu0 %1451 }
 0x100   : > { %v1611_v22 = vadd.f32 %v3843_v3, %v1452_v18  ;;  %v1612_v26 = vadd.f32 %v3846_v4, %v1452_v18 }
 0x101   : > { %v1462_v61 = vpop.permute.xlu1 %1461 }
 0x102   : > { %v1615_v2 = vadd.f32 %v3843_v3, %v1462_v61 }
 0x103   : > { %2891 = vmatmul.msk.f32.gmra.mxu0 %vm992_vm0, %v744_v42 }
 0x104   : > { %2939 = vmatmul.msk.f32.gmra.mxu1 %vm992_vm0, %v744_v42  ;;  %v754_v42 = vld [vmem:[%s3631_s22 + $0x90] sm:$0xff] }
 0x10b   : > { %2892 = vmatmul.msk.f32.gmra.mxu0 %vm992_vm0, %v745_v43 }
 0x10c   : > { %2940 = vmatmul.msk.f32.gmra.mxu1 %vm992_vm0, %v745_v43 }
 0x113   : > { %2893 = vmatmul.msk.f32.gmra.mxu0 %vm992_vm0, %v746_v44 }
 0x114   : > { %2941 = vmatmul.msk.f32.gmra.mxu1 %vm992_vm0, %v746_v44 }
 0x11b   : > { %2894 = vmatmul.msk.f32.gmra.mxu0 %vm992_vm0, %v747_v45 }
 0x11c   : > { %2942 = vmatmul.msk.f32.gmra.mxu1 %vm992_vm0, %v747_v45 }
 0x123   : > { %2895 = vmatmul.msk.f32.gmra.mxu0 %vm992_vm0, %v748_v48 }
 0x124   : > { %2943 = vmatmul.msk.f32.gmra.mxu1 %vm992_vm0, %v748_v48 }
 0x12b   : > { %2896 = vmatmul.msk.f32.gmra.mxu0 %vm992_vm0, %v749_v53 }
 0x12c   : > { %2944 = vmatmul.msk.f32.gmra.mxu1 %vm992_vm0, %v749_v53  ;;  %v897_v53 = vld [vmem:[%s3674_s10 + $0x8] sm:$0xff] }
 0x12d   : > { %v931_v60 = vunpack.c.h.bf16 %v897_v53 }
 0x133   : > { %2897 = vmatmul.msk.f32.gmra.mxu0 %vm992_vm0, %v750_v58 }
 0x134   : > { %2945 = vmatmul.msk.f32.gmra.mxu1 %vm992_vm0, %v750_v58  ;;  %v930_v58 = vunpack.c.l.bf16 %v897_v53 }
 0x13b   : > { %2898 = vmatmul.msk.f32.gmra.mxu0 %vm992_vm0, %v751_v0 }
 0x13c   : > { %2946 = vmatmul.msk.f32.gmra.mxu1 %vm992_vm0, %v751_v0  ;;  %v755_v0 = vld [vmem:[%s3631_s22 + $0x98] sm:$0xff] }
 0x140   : > { %v1202_v8 = vpop.f32.mrf.mxu0 }
 0x141   : > { %v1673_v10 = vmul.f32 2.0, %v1202_v8  ;;  %v1315_v11 = vpop.f32.mrf.mxu1 }
 0x142   : > { %v1674_v12 = vmul.f32 2.0, %v1315_v11 }
 0x143   : > { %v1737_v13 = vsub.f32 %v1609_v6, %v1673_v10  ;;  %2899 = vmatmul.msk.f32.gmra.mxu0 %vm992_vm0, %v752_v9 }
 0x144   : > { %v1738_v14 = vsub.f32 %v1610_v7, %v1674_v12  ;;  %2947 = vmatmul.msk.f32.gmra.mxu1 %vm992_vm0, %v752_v9  ;;  %v1616_v9 = vadd.f32 %v3846_v4, %v1462_v61 }
 0x145   : > { %v1801_v15 = vmax.f32 %v1737_v13, 0.0 }
 0x146   : > { %v1802_v16 = vmax.f32 %v1738_v14, 0.0 }
 0x147   : > { %v1865_v17 = vmul.f32 -0.5, %v1801_v15  ;;  %v898_v15 = vld [vmem:[%s3674_s10 + $0x10] sm:$0xff] }
 0x148   : > { %v1866_v19 = vmul.f32 -0.5, %v1802_v16  ;;  %v1205_v20 = vpop.f32.mrf.mxu0 }
 0x149   : > { %v1929_v23 = vmul.f32 1.442695, %v1865_v17  ;;  %v1675_v24 = vmul.f32 2.0, %v1205_v20  ;;  %v1318_v25 = vpop.f32.mrf.mxu1 }
 0x14a   : > { %v1931_v27 = vmul.f32 1.442695, %v1866_v19  ;;  %v1676_v28 = vmul.f32 2.0, %v1318_v25 }
 0x14b   : > { %3189 = vpow2.f32 %v1929_v23  ;;  %v1739_v29 = vsub.f32 %v1611_v22, %v1675_v24  ;;  %2900 = vmatmul.msk.f32.gmra.mxu0 %vm992_vm0, %v753_v21  ;;  %v932_v23 = vunpack.c.l.bf16 %v898_v15 }
 0x14c   : > { %3191 = vpow2.f32 %v1931_v27  ;;  %v1740_v31 = vsub.f32 %v1612_v26, %v1676_v28  ;;  %2948 = vmatmul.msk.f32.gmra.mxu1 %vm992_vm0, %v753_v21  ;;  %v1467_v21 = vpop.permute.xlu2 %1466  ;;  %v933_v26 = vunpack.c.h.bf16 %v898_v15 }
 0x14d   : > { %v1803_v32 = vmax.f32 %v1739_v29, 0.0  ;;  %v1617_v24 = vadd.f32 %v3843_v3, %v1467_v21  ;;  %v1618_v27 = vadd.f32 %v3846_v4, %v1467_v21 }
 0x14e   : > { %v1804_v34 = vmax.f32 %v1740_v31, 0.0 }
 0x14f   : > { %v1867_v37 = vmul.f32 -0.5, %v1803_v32 }
 0x150   : > { %v1868_v40 = vmul.f32 -0.5, %v1804_v34  ;;  %v1208_v41 = vpop.f32.mrf.mxu0 }
 0x151   : > { %v3190_v43 = vpop.eup %3189  ;;  %v1933_v44 = vmul.f32 1.442695, %v1867_v37  ;;  %v1677_v45 = vmul.f32 2.0, %v1208_v41  ;;  %v1321_v46 = vpop.f32.mrf.mxu1  ;;  %v899_v41 = vld [vmem:[%s3674_s10 + $0x18] sm:$0xff] }
 0x152   : > { %v3192_v47 = vpop.eup %3191  ;;  %v1935_v48 = vmul.f32 1.442695, %v1868_v40  ;;  %v1678_v49 = vmul.f32 2.0, %v1321_v46  ;;  %v2057_v50 = vmul.f32 %v3190_v43, %v928_v35  ;;  %v934_v46 = vunpack.c.l.bf16 %v899_v41 }
 0x153   : > { %3193 = vpow2.f32 %v1933_v44  ;;  %v1741_v51 = vsub.f32 %v1613_v36, %v1677_v45  ;;  %2901 = vmatmul.msk.f32.gmra.mxu0 %vm992_vm0, %v754_v42  ;;  %v2058_v52 = vmul.f32 %v3192_v47, %v929_v38 }
 0x154   : > { %3195 = vpow2.f32 %v1935_v48  ;;  %v1742_v54 = vsub.f32 %v1614_v39, %v1678_v49  ;;  %2949 = vmatmul.msk.f32.gmra.mxu1 %vm992_vm0, %v754_v42  ;;  %v935_v48 = vunpack.c.h.bf16 %v899_v41  ;;  %v1472_v49 = vpop.permute.xlu2 %1471 }
 0x155   : > { %v1805_v55 = vmax.f32 %v1741_v51, 0.0  ;;  %v2121_v56 = vadd.f32 %v2058_v52, %v2057_v50 }
 0x156   : > { %v1806_v57 = vmax.f32 %v1742_v54, 0.0  ;;  %v1619_v54 = vadd.f32 %v3843_v3, %v1472_v49 }
 0x157   : > { %v1869_v59 = vmul.f32 -0.5, %v1805_v55  ;;  %2122 = vadd.xlane.f32.xlu2 %v2121_v56 }
 0x158   : > { %v1870_v62 = vmul.f32 -0.5, %v1806_v57  ;;  %v1211_v63 = vpop.f32.mrf.mxu0 }
 0x159   : > { %v3194_v1 = vpop.eup %3193  ;;  %v1937_v5 = vmul.f32 1.442695, %v1869_v59  ;;  %v1679_v6 = vmul.f32 2.0, %v1211_v63  ;;  %v1324_v7 = vpop.f32.mrf.mxu1  ;;  %v1620_v59 = vadd.f32 %v3846_v4, %v1472_v49 }
 0x15a   : > { %v3196_v8 = vpop.eup %3195  ;;  %v1939_v10 = vmul.f32 1.442695, %v1870_v62  ;;  %v1680_v11 = vmul.f32 2.0, %v1324_v7  ;;  %v2059_v12 = vmul.f32 %v3194_v1, %v930_v58  ;;  %v900_v1 = vld [vmem:[%s3674_s10 + $0x20] sm:$0xff] }
 0x15b   : > { %3197 = vpow2.f32 %v1937_v5  ;;  %v1743_v13 = vsub.f32 %v1615_v2, %v1679_v6  ;;  %2902 = vmatmul.msk.f32.gmra.mxu0 %vm992_vm0, %v755_v0  ;;  %v2060_v14 = vmul.f32 %v3196_v8, %v931_v60 }
 0x15c   : > { %3199 = vpow2.f32 %v1939_v10  ;;  %v1744_v16 = vsub.f32 %v1616_v9, %v1680_v11  ;;  %2950 = vmatmul.msk.f32.gmra.mxu1 %vm992_vm0, %v755_v0  ;;  %v2217_v17 = vpack.c.bf16 %v2059_v12, %v2057_v50  ;;  %v936_v10 = vunpack.c.l.bf16 %v900_v1 }
 0x15d   : > { %v1807_v18 = vmax.f32 %v1743_v13, 0.0  ;;  %v2218_v19 = vpack.c.bf16 %v2060_v14, %v2058_v52  ;;  %v2124_v20 = vadd.f32 %v2060_v14, %v2059_v12  ;;  %v757_v52 = vld [vmem:[%s3631_s22 + $0xa8] sm:$0xff]  ;;  %v937_v12 = vunpack.c.h.bf16 %v900_v1  ;;  %v1477_v13 = vpop.permute.xlu0 %1476 }
 0x15e   : > { %v1808_v22 = vmax.f32 %v1744_v16, 0.0  ;;  %2353 = vmatmul.bf16.vlgmr.msra.gmra.mxu2 %v2217_v17  ;;  %v758_v16 = vld [vmem:[%s3631_s22 + $0xb0] sm:$0xff] }
 0x15f   : > { %v1871_v25 = vmul.f32 -0.5, %v1807_v18  ;;  %2442 = vmatmul.bf16.vlgmr.msra.gmra.mxu3 %v2218_v19  ;;  %2125 = vadd.xlane.f32.xlu0 %v2124_v20  ;;  %v1621_v18 = vadd.f32 %v3843_v3, %v1477_v13 }
 0x160   : > { %v1872_v28 = vmul.f32 -0.5, %v1808_v22  ;;  %v1214_v29 = vpop.f32.mrf.mxu0 }
 0x161   : > { %v3198_v31 = vpop.eup %3197  ;;  %v1941_v32 = vmul.f32 1.442695, %v1871_v25  ;;  %v1681_v33 = vmul.f32 2.0, %v1214_v29  ;;  %v1327_v34 = vpop.f32.mrf.mxu1  ;;  %v901_v29 = vld [vmem:[%s3674_s10 + $0x28] sm:$0xff] }
 0x162   : > { %v3200_v35 = vpop.eup %3199  ;;  %v1943_v36 = vmul.f32 1.442695, %v1872_v28  ;;  %v1682_v37 = vmul.f32 2.0, %v1327_v34  ;;  %v2061_v38 = vmul.f32 %v3198_v31, %v932_v23  ;;  %v1622_v23 = vadd.f32 %v3846_v4, %v1477_v13 }
 0x163   : > { %3201 = vpow2.f32 %v1941_v32  ;;  %v1745_v39 = vsub.f32 %v1617_v24, %v1681_v33  ;;  %2903 = vmatmul.msk.f32.gmra.mxu0 %vm992_vm0, %v756_v30  ;;  %v2062_v40 = vmul.f32 %v3200_v35, %v933_v26  ;;  %v938_v34 = vunpack.c.l.bf16 %v901_v29 }
 0x164   : > { %3203 = vpow2.f32 %v1943_v36  ;;  %v1746_v42 = vsub.f32 %v1618_v27, %v1682_v37  ;;  %2951 = vmatmul.msk.f32.gmra.mxu1 %vm992_vm0, %v756_v30  ;;  %v939_v36 = vunpack.c.h.bf16 %v901_v29  ;;  %v1482_v37 = vpop.permute.xlu1 %1481 }
 0x165   : > { %v1809_v43 = vmax.f32 %v1745_v39, 0.0  ;;  %v2127_v44 = vadd.f32 %v2062_v40, %v2061_v38 }
 0x166   : > { %v1810_v45 = vmax.f32 %v1746_v42, 0.0  ;;  %v1623_v42 = vadd.f32 %v3843_v3, %v1482_v37 }
 0x167   : > { %v1873_v47 = vmul.f32 -0.5, %v1809_v43  ;;  %2128 = vadd.xlane.f32.xlu1 %v2127_v44 }
 0x168   : > { %v1874_v50 = vmul.f32 -0.5, %v1810_v45  ;;  %v1217_v51 = vpop.f32.mrf.mxu0 }
 0x169   : > { %v3202_v53 = vpop.eup %3201  ;;  %v1945_v55 = vmul.f32 1.442695, %v1873_v47  ;;  %v1683_v56 = vmul.f32 2.0, %v1217_v51  ;;  %v1330_v57 = vpop.f32.mrf.mxu1  ;;  %v1624_v47 = vadd.f32 %v3846_v4, %v1482_v37 }
 0x16a   : > { %v3204_v58 = vpop.eup %3203  ;;  %v1947_v60 = vmul.f32 1.442695, %v1874_v50  ;;  %v1684_v61 = vmul.f32 2.0, %v1330_v57  ;;  %v2063_v62 = vmul.f32 %v3202_v53, %v934_v46  ;;  %v902_v53 = vld [vmem:[%s3674_s10 + $0x30] sm:$0xff] }
 0x16b   : > { %3205 = vpow2.f32 %v1945_v55  ;;  %v1747_v63 = vsub.f32 %v1619_v54, %v1683_v56  ;;  %2904 = vmatmul.msk.f32.gmra.mxu0 %vm992_vm0, %v757_v52  ;;  %v2064_v0 = vmul.f32 %v3204_v58, %v935_v48 }
 0x16c   : > { %3207 = vpow2.f32 %v1947_v60  ;;  %v1748_v2 = vsub.f32 %v1620_v59, %v1684_v61  ;;  %2952 = vmatmul.msk.f32.gmra.mxu1 %vm992_vm0, %v757_v52  ;;  %v2219_v5 = vpack.c.bf16 %v2063_v62, %v2061_v38  ;;  %v940_v60 = vunpack.c.l.bf16 %v902_v53 }
 0x16d   : > { %v1811_v6 = vmax.f32 %v1747_v63, 0.0  ;;  %v2220_v7 = vpack.c.bf16 %v2064_v0, %v2062_v40  ;;  %v2130_v8 = vadd.f32 %v2064_v0, %v2063_v62  ;;  %v759_v40 = vld [vmem:[%s3631_s22 + $0xb8] sm:$0xff]  ;;  %v941_v62 = vunpack.c.h.bf16 %v902_v53  ;;  %v1487_v63 = vpop.permute.xlu2 %1486 }
 0x16e   : > { %v1812_v9 = vmax.f32 %v1748_v2, 0.0  ;;  %2358 = vmatmul.bf16.gmra.mxu2 %v2219_v5  ;;  %v760_v2 = vld [vmem:[%s3631_s22 + $0xc0] sm:$0xff] }
 0x16f   : > { %v1875_v11 = vmul.f32 -0.5, %v1811_v6  ;;  %2447 = vmatmul.bf16.gmra.mxu3 %v2220_v7  ;;  %2131 = vadd.xlane.f32.xlu2 %v2130_v8  ;;  %v1625_v6 = vadd.f32 %v3843_v3, %v1487_v63 }
 0x170   : > { %v1876_v14 = vmul.f32 -0.5, %v1812_v9  ;;  %v1220_v15 = vpop.f32.mrf.mxu0 }
 0x171   : > { %v3206_v17 = vpop.eup %3205  ;;  %v1949_v19 = vmul.f32 1.442695, %v1875_v11  ;;  %v1685_v20 = vmul.f32 2.0, %v1220_v15  ;;  %v1333_v21 = vpop.f32.mrf.mxu1  ;;  %v1626_v11 = vadd.f32 %v3846_v4, %v1487_v63 }
 0x172   : > { %v3208_v22 = vpop.eup %3207  ;;  %v1951_v24 = vmul.f32 1.442695, %v1876_v14  ;;  %v1686_v25 = vmul.f32 2.0, %v1333_v21  ;;  %v2065_v26 = vmul.f32 %v3206_v17, %v936_v10  ;;  %v903_v17 = vld [vmem:[%s3674_s10 + $0x38] sm:$0xff] }
 0x173   : > { %3209 = vpow2.f32 %v1949_v19  ;;  %v1749_v27 = vsub.f32 %v1621_v18, %v1685_v20  ;;  %2905 = vmatmul.msk.f32.gmra.mxu0 %vm992_vm0, %v758_v16  ;;  %v2066_v28 = vmul.f32 %v3208_v22, %v937_v12  ;;  %v942_v22 = vunpack.c.l.bf16 %v903_v17 }
 0x174   : > { %3211 = vpow2.f32 %v1951_v24  ;;  %v1750_v30 = vsub.f32 %v1622_v23, %v1686_v25  ;;  %2953 = vmatmul.msk.f32.gmra.mxu1 %vm992_vm0, %v758_v16  ;;  %v943_v24 = vunpack.c.h.bf16 %v903_v17  ;;  %v1492_v25 = vpop.permute.xlu0 %1491 }
 0x175   : > { %v1813_v31 = vmax.f32 %v1749_v27, 0.0  ;;  %v2133_v32 = vadd.f32 %v2066_v28, %v2065_v26 }
 0x176   : > { %v1814_v33 = vmax.f32 %v1750_v30, 0.0  ;;  %v1627_v30 = vadd.f32 %v3843_v3, %v1492_v25 }
 0x177   : > { %v1877_v35 = vmul.f32 -0.5, %v1813_v31  ;;  %2134 = vadd.xlane.f32.xlu2 %v2133_v32 }
 0x178   : > { %v1878_v38 = vmul.f32 -0.5, %v1814_v33  ;;  %v1223_v39 = vpop.f32.mrf.mxu0 }
 0x179   : > { %v3210_v41 = vpop.eup %3209  ;;  %v1953_v43 = vmul.f32 1.442695, %v1877_v35  ;;  %v1687_v44 = vmul.f32 2.0, %v1223_v39  ;;  %v1336_v45 = vpop.f32.mrf.mxu1  ;;  %v1628_v35 = vadd.f32 %v3846_v4, %v1492_v25 }
 0x17a   : > { %v3212_v46 = vpop.eup %3211  ;;  %v1955_v48 = vmul.f32 1.442695, %v1878_v38  ;;  %v1688_v49 = vmul.f32 2.0, %v1336_v45  ;;  %v2067_v50 = vmul.f32 %v3210_v41, %v938_v34  ;;  %v904_v41 = vld [vmem:[%s3674_s10 + $0x40] sm:$0xff] }
 0x17b   : > { %3213 = vpow2.f32 %v1953_v43  ;;  %v1751_v51 = vsub.f32 %v1623_v42, %v1687_v44  ;;  %2906 = vmatmul.msk.f32.gmra.mxu0 %vm992_vm0, %v759_v40  ;;  %v2068_v52 = vmul.f32 %v3212_v46, %v939_v36 }
 0x17c   : > { %3215 = vpow2.f32 %v1955_v48  ;;  %v1752_v54 = vsub.f32 %v1624_v47, %v1688_v49  ;;  %2954 = vmatmul.msk.f32.gmra.mxu1 %vm992_vm0, %v759_v40  ;;  %v2221_v55 = vpack.c.bf16 %v2067_v50, %v2065_v26  ;;  %v944_v48 = vunpack.c.l.bf16 %v904_v41 }
 0x17d   : > { %v1815_v56 = vmax.f32 %v1751_v51, 0.0  ;;  %v2222_v57 = vpack.c.bf16 %v2068_v52, %v2066_v28  ;;  %v2136_v58 = vadd.f32 %v2068_v52, %v2067_v50  ;;  %v761_v28 = vld [vmem:[%s3631_s22 + $0xc8] sm:$0xff]  ;;  %v945_v50 = vunpack.c.h.bf16 %v904_v41  ;;  %v1497_v51 = vpop.permute.xlu1 %1496 }
 0x17e   : > { %v1816_v59 = vmax.f32 %v1752_v54, 0.0  ;;  %2363 = vmatmul.bf16.gmra.mxu2 %v2221_v55  ;;  %v762_v54 = vld [vmem:[%s3631_s22 + $0xd0] sm:$0xff] }
 0x17f   : > { %v1879_v61 = vmul.f32 -0.5, %v1815_v56  ;;  %2452 = vmatmul.bf16.gmra.mxu3 %v2222_v57  ;;  %2137 = vadd.xlane.f32.xlu0 %v2136_v58  ;;  %v1629_v56 = vadd.f32 %v3843_v3, %v1497_v51 }
 0x180   : > { %v1880_v0 = vmul.f32 -0.5, %v1816_v59  ;;  %v1226_v1 = vpop.f32.mrf.mxu0 }
 0x181   : > { %v3214_v5 = vpop.eup %3213  ;;  %v1957_v7 = vmul.f32 1.442695, %v1879_v61  ;;  %v1689_v8 = vmul.f32 2.0, %v1226_v1  ;;  %v1339_v9 = vpop.f32.mrf.mxu1  ;;  %v1630_v61 = vadd.f32 %v3846_v4, %v1497_v51 }
 0x182   : > { %v3216_v10 = vpop.eup %3215  ;;  %v1959_v12 = vmul.f32 1.442695, %v1880_v0  ;;  %v1690_v13 = vmul.f32 2.0, %v1339_v9  ;;  %v2069_v14 = vmul.f32 %v3214_v5, %v940_v60  ;;  %v905_v5 = vld [vmem:[%s3674_s10 + $0x48] sm:$0xff] }
 0x183   : > { %3217 = vpow2.f32 %v1957_v7  ;;  %v1753_v15 = vsub.f32 %v1625_v6, %v1689_v8  ;;  %2907 = vmatmul.msk.f32.gmra.mxu0 %vm992_vm0, %v760_v2  ;;  %v2070_v16 = vmul.f32 %v3216_v10, %v941_v62  ;;  %v946_v10 = vunpack.c.l.bf16 %v905_v5 }
 0x184   : > { %3219 = vpow2.f32 %v1959_v12  ;;  %v1754_v18 = vsub.f32 %v1626_v11, %v1690_v13  ;;  %2955 = vmatmul.msk.f32.gmra.mxu1 %vm992_vm0, %v760_v2  ;;  %v947_v12 = vunpack.c.h.bf16 %v905_v5  ;;  %v1502_v13 = vpop.permute.xlu2 %1501 }
 0x185   : > { %v1817_v19 = vmax.f32 %v1753_v15, 0.0  ;;  %v2139_v20 = vadd.f32 %v2070_v16, %v2069_v14 }
 0x186   : > { %v1818_v21 = vmax.f32 %v1754_v18, 0.0  ;;  %v1631_v18 = vadd.f32 %v3843_v3, %v1502_v13 }
 0x187   : > { %v1881_v23 = vmul.f32 -0.5, %v1817_v19  ;;  %2140 = vadd.xlane.f32.xlu1 %v2139_v20 }
 0x188   : > { %v1882_v26 = vmul.f32 -0.5, %v1818_v21  ;;  %v1229_v27 = vpop.f32.mrf.mxu0 }
 0x189   : > { %v3218_v29 = vpop.eup %3217  ;;  %v1961_v31 = vmul.f32 1.442695, %v1881_v23  ;;  %v1691_v32 = vmul.f32 2.0, %v1229_v27  ;;  %v1342_v33 = vpop.f32.mrf.mxu1  ;;  %v1632_v23 = vadd.f32 %v3846_v4, %v1502_v13 }
 0x18a   : > { %v3220_v34 = vpop.eup %3219  ;;  %v1963_v36 = vmul.f32 1.442695, %v1882_v26  ;;  %v1692_v37 = vmul.f32 2.0, %v1342_v33  ;;  %v2071_v38 = vmul.f32 %v3218_v29, %v942_v22  ;;  %v906_v29 = vld [vmem:[%s3674_s10 + $0x50] sm:$0xff] }
 0x18b   : > { %3221 = vpow2.f32 %v1961_v31  ;;  %v1755_v39 = vsub.f32 %v1627_v30, %v1691_v32  ;;  %2908 = vmatmul.msk.f32.gmra.mxu0 %vm992_vm0, %v761_v28  ;;  %v2072_v40 = vmul.f32 %v3220_v34, %v943_v24 }
 0x18c   : > { %3223 = vpow2.f32 %v1963_v36  ;;  %v1756_v42 = vsub.f32 %v1628_v35, %v1692_v37  ;;  %2956 = vmatmul.msk.f32.gmra.mxu1 %vm992_vm0, %v761_v28  ;;  %v2223_v43 = vpack.c.bf16 %v2071_v38, %v2069_v14  ;;  %v948_v36 = vunpack.c.l.bf16 %v906_v29 }
 0x18d   : > { %v1819_v44 = vmax.f32 %v1755_v39, 0.0  ;;  %v2224_v45 = vpack.c.bf16 %v2072_v40, %v2070_v16  ;;  %v2142_v46 = vadd.f32 %v2072_v40, %v2071_v38  ;;  %v763_v16 = vld [vmem:[%s3631_s22 + $0xd8] sm:$0xff]  ;;  %v949_v38 = vunpack.c.h.bf16 %v906_v29  ;;  %v1507_v39 = vpop.permute.xlu0 %1506 }
 0x18e   : > { %v1820_v47 = vmax.f32 %v1756_v42, 0.0  ;;  %2368 = vmatmul.bf16.gmra.mxu2 %v2223_v43  ;;  %v764_v42 = vld [vmem:[%s3631_s22 + $0xe0] sm:$0xff] }
 0x18f   : > { %v1883_v49 = vmul.f32 -0.5, %v1819_v44  ;;  %2457 = vmatmul.bf16.gmra.mxu3 %v2224_v45  ;;  %2143 = vadd.xlane.f32.xlu2 %v2142_v46  ;;  %v1633_v44 = vadd.f32 %v3843_v3, %v1507_v39 }
 0x190   : > { %v1884_v52 = vmul.f32 -0.5, %v1820_v47  ;;  %v1232_v53 = vpop.f32.mrf.mxu0 }
 0x191   : > { %v3222_v55 = vpop.eup %3221  ;;  %v1965_v57 = vmul.f32 1.442695, %v1883_v49  ;;  %v1693_v58 = vmul.f32 2.0, %v1232_v53  ;;  %v1345_v59 = vpop.f32.mrf.mxu1  ;;  %v1634_v49 = vadd.f32 %v3846_v4, %v1507_v39 }
 0x192   : > { %v3224_v60 = vpop.eup %3223  ;;  %v1967_v62 = vmul.f32 1.442695, %v1884_v52  ;;  %v1694_v63 = vmul.f32 2.0, %v1345_v59  ;;  %v2073_v0 = vmul.f32 %v3222_v55, %v944_v48  ;;  %v907_v55 = vld [vmem:[%s3674_s10 + $0x58] sm:$0xff] }
 0x193   : > { %3225 = vpow2.f32 %v1965_v57  ;;  %v1757_v1 = vsub.f32 %v1629_v56, %v1693_v58  ;;  %2909 = vmatmul.msk.f32.gmra.mxu0 %vm992_vm0, %v762_v54  ;;  %v2074_v2 = vmul.f32 %v3224_v60, %v945_v50  ;;  %v950_v60 = vunpack.c.l.bf16 %v907_v55 }
 0x194   : > { %3227 = vpow2.f32 %v1967_v62  ;;  %v1758_v6 = vsub.f32 %v1630_v61, %v1694_v63  ;;  %2957 = vmatmul.msk.f32.gmra.mxu1 %vm992_vm0, %v762_v54  ;;  %v951_v62 = vunpack.c.h.bf16 %v907_v55  ;;  %v1512_v63 = vpop.permute.xlu1 %1511 }
 0x195   : > { %v1821_v7 = vmax.f32 %v1757_v1, 0.0  ;;  %v2145_v8 = vadd.f32 %v2074_v2, %v2073_v0 }
 0x196   : > { %v1822_v9 = vmax.f32 %v1758_v6, 0.0  ;;  %v1635_v6 = vadd.f32 %v3843_v3, %v1512_v63 }
 0x197   : > { %v1885_v11 = vmul.f32 -0.5, %v1821_v7  ;;  %2146 = vadd.xlane.f32.xlu0 %v2145_v8 }
 0x198   : > { %v1886_v14 = vmul.f32 -0.5, %v1822_v9  ;;  %v1235_v15 = vpop.f32.mrf.mxu0 }
 0x199   : > { %v3226_v17 = vpop.eup %3225  ;;  %v1969_v19 = vmul.f32 1.442695, %v1885_v11  ;;  %v1695_v20 = vmul.f32 2.0, %v1235_v15  ;;  %v1348_v21 = vpop.f32.mrf.mxu1  ;;  %v1636_v11 = vadd.f32 %v3846_v4, %v1512_v63 }
 0x19a   : > { %v3228_v22 = vpop.eup %3227  ;;  %v1971_v24 = vmul.f32 1.442695, %v1886_v14  ;;  %v1696_v25 = vmul.f32 2.0, %v1348_v21  ;;  %v2075_v26 = vmul.f32 %v3226_v17, %v946_v10  ;;  %v908_v17 = vld [vmem:[%s3674_s10 + $0x60] sm:$0xff] }
 0x19b   : > { %3229 = vpow2.f32 %v1969_v19  ;;  %v1759_v27 = vsub.f32 %v1631_v18, %v1695_v20  ;;  %2910 = vmatmul.msk.f32.gmra.mxu0 %vm992_vm0, %v763_v16  ;;  %v2076_v28 = vmul.f32 %v3228_v22, %v947_v12 }
 0x19c   : > { %3231 = vpow2.f32 %v1971_v24  ;;  %v1760_v30 = vsub.f32 %v1632_v23, %v1696_v25  ;;  %2958 = vmatmul.msk.f32.gmra.mxu1 %vm992_vm0, %v763_v16  ;;  %v2225_v31 = vpack.c.bf16 %v2075_v26, %v2073_v0  ;;  %v952_v24 = vunpack.c.l.bf16 %v908_v17 }
 0x19d   : > { %v1823_v32 = vmax.f32 %v1759_v27, 0.0  ;;  %v2226_v33 = vpack.c.bf16 %v2076_v28, %v2074_v2  ;;  %v2148_v34 = vadd.f32 %v2076_v28, %v2075_v26  ;;  %v765_v2 = vld [vmem:[%s3631_s22 + $0xe8] sm:$0xff]  ;;  %v953_v26 = vunpack.c.h.bf16 %v908_v17  ;;  %v1517_v27 = vpop.permute.xlu2 %1516 }
 0x19e   : > { %v1824_v35 = vmax.f32 %v1760_v30, 0.0  ;;  %2373 = vmatmul.bf16.gmra.mxu2 %v2225_v31  ;;  %v766_v30 = vld [vmem:[%s3631_s22 + $0xf0] sm:$0xff] }
 0x19f   : > { %v1887_v37 = vmul.f32 -0.5, %v1823_v32  ;;  %2462 = vmatmul.bf16.gmra.mxu3 %v2226_v33  ;;  %2149 = vadd.xlane.f32.xlu1 %v2148_v34  ;;  %v1637_v32 = vadd.f32 %v3843_v3, %v1517_v27 }
 0x1a0   : > { %v1888_v40 = vmul.f32 -0.5, %v1824_v35  ;;  %v1238_v41 = vpop.f32.mrf.mxu0 }
 0x1a1   : > { %v3230_v43 = vpop.eup %3229  ;;  %v1973_v45 = vmul.f32 1.442695, %v1887_v37  ;;  %v1697_v46 = vmul.f32 2.0, %v1238_v41  ;;  %v1351_v47 = vpop.f32.mrf.mxu1  ;;  %v1638_v37 = vadd.f32 %v3846_v4, %v1517_v27 }
 0x1a2   : > { %v3232_v48 = vpop.eup %3231  ;;  %v1975_v50 = vmul.f32 1.442695, %v1888_v40  ;;  %v1698_v51 = vmul.f32 2.0, %v1351_v47  ;;  %v2077_v52 = vmul.f32 %v3230_v43, %v948_v36  ;;  %v909_v43 = vld [vmem:[%s3674_s10 + $0x68] sm:$0xff] }
 0x1a3   : > { %3233 = vpow2.f32 %v1973_v45  ;;  %v1761_v53 = vsub.f32 %v1633_v44, %v1697_v46  ;;  %2911 = vmatmul.msk.f32.gmra.mxu0 %vm992_vm0, %v764_v42  ;;  %v2078_v54 = vmul.f32 %v3232_v48, %v949_v38  ;;  %v954_v48 = vunpack.c.l.bf16 %v909_v43 }
 0x1a4   : > { %3235 = vpow2.f32 %v1975_v50  ;;  %v1762_v56 = vsub.f32 %v1634_v49, %v1698_v51  ;;  %2959 = vmatmul.msk.f32.gmra.mxu1 %vm992_vm0, %v764_v42  ;;  %v955_v50 = vunpack.c.h.bf16 %v909_v43  ;;  %v1522_v51 = vpop.permute.xlu0 %1521 }
 0x1a5   : > { %v1825_v57 = vmax.f32 %v1761_v53, 0.0  ;;  %v2151_v58 = vadd.f32 %v2078_v54, %v2077_v52 }
 0x1a6   : > { %v1826_v59 = vmax.f32 %v1762_v56, 0.0  ;;  %v1639_v56 = vadd.f32 %v3843_v3, %v1522_v51 }
 0x1a7   : > { %v1889_v61 = vmul.f32 -0.5, %v1825_v57  ;;  %2152 = vadd.xlane.f32.xlu2 %v2151_v58 }
 0x1a8   : > { %v1890_v0 = vmul.f32 -0.5, %v1826_v59  ;;  %v1241_v1 = vpop.f32.mrf.mxu0 }
 0x1a9   : > { %v3234_v5 = vpop.eup %3233  ;;  %v1977_v7 = vmul.f32 1.442695, %v1889_v61  ;;  %v1699_v8 = vmul.f32 2.0, %v1241_v1  ;;  %v1354_v9 = vpop.f32.mrf.mxu1  ;;  %v1640_v61 = vadd.f32 %v3846_v4, %v1522_v51 }
 0x1aa   : > { %v3236_v10 = vpop.eup %3235  ;;  %v1979_v12 = vmul.f32 1.442695, %v1890_v0  ;;  %v1700_v13 = vmul.f32 2.0, %v1354_v9  ;;  %v2079_v14 = vmul.f32 %v3234_v5, %v950_v60  ;;  %v910_v5 = vld [vmem:[%s3674_s10 + $0x70] sm:$0xff] }
 0x1ab   : > { %3237 = vpow2.f32 %v1977_v7  ;;  %v1763_v15 = vsub.f32 %v1635_v6, %v1699_v8  ;;  %2912 = vmatmul.msk.f32.gmra.mxu0 %vm992_vm0, %v765_v2  ;;  %v2080_v16 = vmul.f32 %v3236_v10, %v951_v62 }
 0x1ac   : > { %3239 = vpow2.f32 %v1979_v12  ;;  %v1764_v18 = vsub.f32 %v1636_v11, %v1700_v13  ;;  %2960 = vmatmul.msk.f32.gmra.mxu1 %vm992_vm0, %v765_v2  ;;  %v2227_v19 = vpack.c.bf16 %v2079_v14, %v2077_v52  ;;  %v956_v12 = vunpack.c.l.bf16 %v910_v5 }
 0x1ad   : > { %v1827_v20 = vmax.f32 %v1763_v15, 0.0  ;;  %v2228_v21 = vpack.c.bf16 %v2080_v16, %v2078_v54  ;;  %v2154_v22 = vadd.f32 %v2080_v16, %v2079_v14  ;;  %v767_v54 = vld [vmem:[%s3631_s22 + $0xf8] sm:$0xff]  ;;  %v957_v14 = vunpack.c.h.bf16 %v910_v5  ;;  %v1527_v15 = vpop.permute.xlu1 %1526 }
 0x1ae   : > { %v1828_v23 = vmax.f32 %v1764_v18, 0.0  ;;  %2378 = vmatmul.bf16.gmra.mxu2 %v2227_v19  ;;  %v1641_v19 = vadd.f32 %v3843_v3, %v1527_v15 }
 0x1af   : > { %v1891_v25 = vmul.f32 -0.5, %v1827_v20  ;;  %2467 = vmatmul.bf16.gmra.mxu3 %v2228_v21  ;;  %2155 = vadd.xlane.f32.xlu0 %v2154_v22 }
 0x1b0   : > { %v1892_v28 = vmul.f32 -0.5, %v1828_v23  ;;  %v1244_v29 = vpop.f32.mrf.mxu0 }
 0x1b1   : > { %v3238_v31 = vpop.eup %3237  ;;  %v1981_v33 = vmul.f32 1.442695, %v1891_v25  ;;  %v1701_v34 = vmul.f32 2.0, %v1244_v29  ;;  %v1357_v35 = vpop.f32.mrf.mxu1 }
 0x1b2   : > { %v3240_v36 = vpop.eup %3239  ;;  %v1983_v38 = vmul.f32 1.442695, %v1892_v28  ;;  %v1702_v39 = vmul.f32 2.0, %v1357_v35  ;;  %v2081_v40 = vmul.f32 %v3238_v31, %v952_v24  ;;  %v1642_v24 = vadd.f32 %v3846_v4, %v1527_v15 }
 0x1b3   : > { %3241 = vpow2.f32 %v1981_v33  ;;  %v1765_v41 = vsub.f32 %v1637_v32, %v1701_v34  ;;  %2913 = vmatmul.msk.f32.gmra.mxu0 %vm992_vm0, %v766_v30  ;;  %v2082_v42 = vmul.f32 %v3240_v36, %v953_v26 }
 0x1b4   : > { %3243 = vpow2.f32 %v1983_v38  ;;  %v1766_v44 = vsub.f32 %v1638_v37, %v1702_v39  ;;  %2961 = vmatmul.msk.f32.gmra.mxu1 %vm992_vm0, %v766_v30  ;;  %v911_v30 = vld [vmem:[%s3674_s10 + $0x78] sm:$0xff]  ;;  %v1532_v38 = vpop.permute.xlu2 %1531 }
 0x1b5   : > { %v1829_v45 = vmax.f32 %v1765_v41, 0.0  ;;  %v2157_v46 = vadd.f32 %v2082_v42, %v2081_v40  ;;  %v958_v35 = vunpack.c.l.bf16 %v911_v30  ;;  %v959_v37 = vunpack.c.h.bf16 %v911_v30 }
 0x1b6   : > { %v1830_v47 = vmax.f32 %v1766_v44, 0.0 }
 0x1b7   : > { %v1893_v49 = vmul.f32 -0.5, %v1829_v45  ;;  %2158 = vadd.xlane.f32.xlu1 %v2157_v46 }
 0x1b8   : > { %v1894_v52 = vmul.f32 -0.5, %v1830_v47  ;;  %v1247_v53 = vpop.f32.mrf.mxu0  ;;  %v1644_v47 = vadd.f32 %v3846_v4, %v1532_v38 }
 0x1b9   : > { %v3242_v55 = vpop.eup %3241  ;;  %v1985_v57 = vmul.f32 1.442695, %v1893_v49  ;;  %v1703_v58 = vmul.f32 2.0, %v1247_v53  ;;  %v1360_v59 = vpop.f32.mrf.mxu1  ;;  %v912_v53 = vld [vmem:[%s3674_s10 + $0x80] sm:$0xff] }
 0x1ba   : > { %v3244_v60 = vpop.eup %3243  ;;  %v1987_v62 = vmul.f32 1.442695, %v1894_v52  ;;  %v1704_v63 = vmul.f32 2.0, %v1360_v59  ;;  %v2083_v0 = vmul.f32 %v3242_v55, %v954_v48 }
 0x1bb   : > { %3245 = vpow2.f32 %v1985_v57  ;;  %v1767_v1 = vsub.f32 %v1639_v56, %v1703_v58  ;;  %2914 = vmatmul.msk.f32.gmra.mxu0 %vm992_vm0, %v767_v54  ;;  %v2084_v2 = vmul.f32 %v3244_v60, %v955_v50  ;;  %v960_v60 = vunpack.c.l.bf16 %v912_v53 }
 0x1bc   : > { %3247 = vpow2.f32 %v1987_v62  ;;  %v1768_v6 = vsub.f32 %v1640_v61, %v1704_v63  ;;  %2962 = vmatmul.msk.f32.gmra.mxu1 %vm992_vm0, %v767_v54  ;;  %v2229_v7 = vpack.c.bf16 %v2083_v0, %v2081_v40  ;;  %v961_v62 = vunpack.c.h.bf16 %v912_v53  ;;  %v1537_v63 = vpop.permute.xlu0 %1536 }
 0x1bd   : > { %v1831_v8 = vmax.f32 %v1767_v1, 0.0  ;;  %v2230_v9 = vpack.c.bf16 %v2084_v2, %v2082_v42  ;;  %v2160_v10 = vadd.f32 %v2084_v2, %v2083_v0  ;;  %v1643_v42 = vadd.f32 %v3843_v3, %v1532_v38 }
 0x1be   : > { %v1832_v11 = vmax.f32 %v1768_v6, 0.0  ;;  %2383 = vmatmul.bf16.gmra.mxu2 %v2229_v7  ;;  %v1645_v5 = vadd.f32 %v3843_v3, %v1537_v63 }
 0x1bf   : > { %v1895_v13 = vmul.f32 -0.5, %v1831_v8  ;;  %2472 = vmatmul.bf16.gmra.mxu3 %v2230_v9  ;;  %2161 = vadd.xlane.f32.xlu2 %v2160_v10  ;;  %v1646_v10 = vadd.f32 %v3846_v4, %v1537_v63 }
 0x1c0   : > { %v1896_v16 = vmul.f32 -0.5, %v1832_v11  ;;  %v1250_v17 = vpop.f32.mrf.mxu0 }
 0x1c1   : > { %v3246_v18 = vpop.eup %3245  ;;  %v1989_v20 = vmul.f32 1.442695, %v1895_v13  ;;  %v1705_v21 = vmul.f32 2.0, %v1250_v17  ;;  %v1363_v22 = vpop.f32.mrf.mxu1 }
 0x1c2   : > { %v3248_v23 = vpop.eup %3247  ;;  %v1991_v25 = vmul.f32 1.442695, %v1896_v16  ;;  %v1706_v26 = vmul.f32 2.0, %v1363_v22  ;;  %v2085_v27 = vmul.f32 %v3246_v18, %v956_v12  ;;  %v913_v16 = vld [vmem:[%s3674_s10 + $0x88] sm:$0xff] }
 0x1c3   : > { %3249 = vpow2.f32 %v1989_v20  ;;  %v1769_v28 = vsub.f32 %v1641_v19, %v1705_v21  ;;  %v2086_v29 = vmul.f32 %v3248_v23, %v957_v14  ;;  %v962_v21 = vunpack.c.l.bf16 %v913_v16 }
 0x1c4   : > { %3251 = vpow2.f32 %v1991_v25  ;;  %v1770_v31 = vsub.f32 %v1642_v24, %v1706_v26  ;;  %v963_v23 = vunpack.c.h.bf16 %v913_v16  ;;  %v1542_v24 = vpop.permute.xlu1 %1541 }
 0x1c5   : > { %v1833_v32 = vmax.f32 %v1769_v28, 0.0  ;;  %v2163_v33 = vadd.f32 %v2086_v29, %v2085_v27  ;;  %v1647_v28 = vadd.f32 %v3843_v3, %v1542_v24 }
 0x1c6   : > { %v1834_v34 = vmax.f32 %v1770_v31, 0.0 }
 0x1c7   : > { %v1897_v36 = vmul.f32 -0.5, %v1833_v32  ;;  %2164 = vadd.xlane.f32.xlu0 %v2163_v33  ;;  %v1648_v33 = vadd.f32 %v3846_v4, %v1542_v24 }
 0x1c8   : > { %v1898_v39 = vmul.f32 -0.5, %v1834_v34  ;;  %v1253_v40 = vpop.f32.mrf.mxu0 }
 0x1c9   : > { %v3250_v41 = vpop.eup %3249  ;;  %v1993_v43 = vmul.f32 1.442695, %v1897_v36  ;;  %v1707_v44 = vmul.f32 2.0, %v1253_v40  ;;  %v1366_v45 = vpop.f32.mrf.mxu1 }
 0x1ca   : > { %v3252_v46 = vpop.eup %3251  ;;  %v1995_v48 = vmul.f32 1.442695, %v1898_v39  ;;  %v1708_v49 = vmul.f32 2.0, %v1366_v45  ;;  %v2087_v50 = vmul.f32 %v3250_v41, %v958_v35  ;;  %v914_v39 = vld [vmem:[%s3674_s10 + $0x90] sm:$0xff] }
 0x1cb   : > { %3253 = vpow2.f32 %v1993_v43  ;;  %v1771_v51 = vsub.f32 %v1643_v42, %v1707_v44  ;;  %v2088_v52 = vmul.f32 %v3252_v46, %v959_v37  ;;  %v964_v46 = vunpack.c.l.bf16 %v914_v39 }
 0x1cc   : > { %3255 = vpow2.f32 %v1995_v48  ;;  %v1772_v54 = vsub.f32 %v1644_v47, %v1708_v49  ;;  %v2231_v55 = vpack.c.bf16 %v2087_v50, %v2085_v27  ;;  %v1547_v48 = vpop.permute.xlu2 %1546 }
 0x1cd   : > { %v1835_v56 = vmax.f32 %v1771_v51, 0.0  ;;  %v2232_v57 = vpack.c.bf16 %v2088_v52, %v2086_v29  ;;  %v2166_v58 = vadd.f32 %v2088_v52, %v2087_v50  ;;  %v965_v51 = vunpack.c.h.bf16 %v914_v39 }
 0x1ce   : > { %v1836_v59 = vmax.f32 %v1772_v54, 0.0  ;;  %2388 = vmatmul.bf16.gmra.mxu2 %v2231_v55  ;;  %v1649_v53 = vadd.f32 %v3843_v3, %v1547_v48 }
 0x1cf   : > { %v1899_v61 = vmul.f32 -0.5, %v1835_v56  ;;  %2477 = vmatmul.bf16.gmra.mxu3 %v2232_v57  ;;  %2167 = vadd.xlane.f32.xlu1 %v2166_v58 }
 0x1d0   : > { %v1900_v0 = vmul.f32 -0.5, %v1836_v59  ;;  %v1256_v1 = vpop.f32.mrf.mxu0  ;;  %v1650_v59 = vadd.f32 %v3846_v4, %v1547_v48 }
 0x1d1   : > { %v3254_v2 = vpop.eup %3253  ;;  %v1997_v6 = vmul.f32 1.442695, %v1899_v61  ;;  %v1709_v7 = vmul.f32 2.0, %v1256_v1  ;;  %v1369_v8 = vpop.f32.mrf.mxu1 }
 0x1d2   : > { %v3256_v9 = vpop.eup %3255  ;;  %v1999_v11 = vmul.f32 1.442695, %v1900_v0  ;;  %v1710_v12 = vmul.f32 2.0, %v1369_v8  ;;  %v2089_v13 = vmul.f32 %v3254_v2, %v960_v60  ;;  %v915_v2 = vld [vmem:[%s3674_s10 + $0x98] sm:$0xff] }
 0x1d3   : > { %3257 = vpow2.f32 %v1997_v6  ;;  %v1773_v14 = vsub.f32 %v1645_v5, %v1709_v7  ;;  %v2090_v15 = vmul.f32 %v3256_v9, %v961_v62  ;;  %v967_v16 = vunpack.c.h.bf16 %v915_v2 }
 0x1d4   : > { %3259 = vpow2.f32 %v1999_v11  ;;  %v1774_v17 = vsub.f32 %v1646_v10, %v1710_v12  ;;  %v966_v10 = vunpack.c.l.bf16 %v915_v2  ;;  %v3960_v11 = vld [vmem:[%s3641_s25] sm:$0xff]   ;;  %v917_v2 = vld [vmem:[%s3674_s10 + $0xa8] sm:$0xff] }
 0x1d5   : > { %v1837_v18 = vmax.f32 %v1773_v14, 0.0  ;;  %v2169_v19 = vadd.f32 %v2090_v15, %v2089_v13 }
 0x1d6   : > { %v1838_v20 = vmax.f32 %v1774_v17, 0.0 }
 0x1d7   : > { %v1901_v22 = vmul.f32 -0.5, %v1837_v18  ;;  %2170 = vadd.xlane.f32.xlu2 %v2169_v19 }
 0x1d8   : > { %v1902_v25 = vmul.f32 -0.5, %v1838_v20  ;;  %v1259_v26 = vpop.f32.mrf.mxu0 }
 0x1d9   : > { %v3258_v27 = vpop.eup %3257  ;;  %v2001_v29 = vmul.f32 1.442695, %v1901_v22  ;;  %v1711_v30 = vmul.f32 2.0, %v1259_v26  ;;  %v1372_v31 = vpop.f32.mrf.mxu1 }
 0x1da   : > { %v3260_v32 = vpop.eup %3259  ;;  %v2003_v34 = vmul.f32 1.442695, %v1902_v25  ;;  %v1712_v35 = vmul.f32 2.0, %v1372_v31  ;;  %v2091_v36 = vmul.f32 %v3258_v27, %v962_v21  ;;  %v3048_v25 = vunpack.c.l.bf16 %v3960_v11 }
 0x1db   : > { %3261 = vpow2.f32 %v2001_v29  ;;  %v1775_v37 = vsub.f32 %v1647_v28, %v1711_v30  ;;  %v2092_v38 = vmul.f32 %v3260_v32, %v963_v23  ;;  %v3049_v30 = vunpack.c.h.bf16 %v3960_v11 }
 0x1dc   : > { %3263 = vpow2.f32 %v2003_v34  ;;  %v1776_v40 = vsub.f32 %v1648_v33, %v1712_v35  ;;  %v2233_v41 = vpack.c.bf16 %v2091_v36, %v2089_v13  ;;  %v1552_v13 = vpop.permute.xlu0 %1551  ;;  %v916_v33 = vld [vmem:[%s3674_s10 + $0xa0] sm:$0xff] }
 0x1dd   : > { %v1839_v42 = vmax.f32 %v1775_v37, 0.0  ;;  %v2234_v43 = vpack.c.bf16 %v2092_v38, %v2090_v15  ;;  %v2172_v44 = vadd.f32 %v2092_v38, %v2091_v36  ;;  %v1651_v18 = vadd.f32 %v3843_v3, %v1552_v13 }
 0x1de   : > { %v1840_v45 = vmax.f32 %v1776_v40, 0.0  ;;  %2393 = vmatmul.bf16.gmra.mxu2 %v2233_v41  ;;  %v1652_v19 = vadd.f32 %v3846_v4, %v1552_v13 }
 0x1df   : > { %v1903_v47 = vmul.f32 -0.5, %v1839_v42  ;;  %2482 = vmatmul.bf16.gmra.mxu3 %v2234_v43  ;;  %2173 = vadd.xlane.f32.xlu0 %v2172_v44  ;;  %v968_v43 = vunpack.c.l.bf16 %v916_v33 }
 0x1e0   : > { %v1904_v49 = vmul.f32 -0.5, %v1840_v45  ;;  %v1262_v50 = vpop.f32.mrf.mxu0 }
 0x1e1   : > { %v3262_v52 = vpop.eup %3261  ;;  %v2005_v54 = vmul.f32 1.442695, %v1903_v47  ;;  %v1713_v55 = vmul.f32 2.0, %v1262_v50  ;;  %v1375_v56 = vpop.f32.mrf.mxu1  ;;  %v3972_v47 = vld [vmem:[%s3641_s25 + $0x8] sm:$0xff]   ;;  %v969_v50 = vunpack.c.h.bf16 %v916_v33 }
 0x1e2   : > { %v2354_v57 = vpop.f32.mrf.mxu2  ;;  %v3264_v58 = vpop.eup %3263  ;;  %v2007_v60 = vmul.f32 1.442695, %v1904_v49  ;;  %v1714_v61 = vmul.f32 2.0, %v1375_v56  ;;  %v2093_v63 = vmul.f32 %v3262_v52, %v964_v46  ;;  %v3053_v33 = vunpack.c.h.bf16 %v3972_v47 }
 0x1e3   : > { %v2443_v62 = vpop.f32.mrf.mxu3  ;;  %3265 = vpow2.f32 %v2005_v54  ;;  %v1777_v0 = vsub.f32 %v1649_v53, %v1713_v55  ;;  %v2094_v6 = vmul.f32 %v3264_v58, %v965_v51  ;;  %v1557_v46 = vpop.permute.xlu1 %1556 }
 0x1e4   : > { %v2444_v1 = vadd.f32 %v2443_v62, %v2354_v57  ;;  %3267 = vpow2.f32 %v2007_v60  ;;  %v1778_v5 = vsub.f32 %v1650_v59, %v1714_v61  ;;  %v1653_v52 = vadd.f32 %v3843_v3, %v1557_v46 }
 0x1e5   : > { %v1841_v7 = vmax.f32 %v1777_v0, 0.0  ;;  %v2175_v9 = vadd.f32 %v2094_v6, %v2093_v63  ;;  %v1654_v58 = vadd.f32 %v3846_v4, %v1557_v46 }
 0x1e6   : > { %v1842_v8 = vmax.f32 %v1778_v5, 0.0  ;;  %v2586_v37 = vmul.f32 %v3048_v25, %v2444_v1 }
 0x1e7   : > { %v1905_v12 = vmul.f32 -0.5, %v1841_v7  ;;  %2176 = vadd.xlane.f32.xlu1 %v2175_v9 }
 0x1e8   : > { %v1906_v14 = vmul.f32 -0.5, %v1842_v8  ;;  %v1265_v15 = vpop.f32.mrf.mxu0 }
 0x1e9   : > { %v3266_v17 = vpop.eup %3265  ;;  %v2009_v20 = vmul.f32 1.442695, %v1905_v12  ;;  %v1715_v21 = vmul.f32 2.0, %v1265_v15  ;;  %v1378_v22 = vpop.f32.mrf.mxu1  ;;  %v970_v12 = vunpack.c.l.bf16 %v917_v2 }
 0x1ea   : > { %v2356_v23 = vpop.f32.mrf.mxu2  ;;  %v3268_v24 = vpop.eup %3267  ;;  %v2011_v26 = vmul.f32 1.442695, %v1906_v14  ;;  %v1716_v27 = vmul.f32 2.0, %v1378_v22  ;;  %v2095_v29 = vmul.f32 %v3266_v17, %v966_v10 }
 0x1eb   : > { %v2445_v28 = vpop.f32.mrf.mxu3  ;;  %3269 = vpow2.f32 %v2009_v20  ;;  %v1779_v31 = vsub.f32 %v1651_v18, %v1715_v21  ;;  %v2096_v36 = vmul.f32 %v3268_v24, %v967_v16  ;;  %v1562_v15 = vpop.permute.xlu2 %1561  ;;  %v971_v18 = vunpack.c.h.bf16 %v917_v2 }
 0x1ec   : > { %v2446_v32 = vadd.f32 %v2445_v28, %v2356_v23  ;;  %3271 = vpow2.f32 %v2011_v26  ;;  %v1780_v34 = vsub.f32 %v1652_v19, %v1716_v27  ;;  %v2235_v35 = vpack.c.bf16 %v2095_v29, %v2093_v63 }
 0x1ed   : > { %v1843_v38 = vmax.f32 %v1779_v31, 0.0  ;;  %v2236_v41 = vpack.c.bf16 %v2096_v36, %v2094_v6  ;;  %v2178_v42 = vadd.f32 %v2096_v36, %v2095_v29  ;;  %v3052_v63 = vunpack.c.l.bf16 %v3972_v47  ;;  %v918_v36 = vld [vmem:[%s3674_s10 + $0xb0] sm:$0xff] }
 0x1ee   : > { %v2587_v39 = vmul.f32 %v3049_v30, %v2446_v32  ;;  %v1844_v40 = vmax.f32 %v1780_v34, 0.0  ;;  %2398 = vmatmul.bf16.gmra.mxu2 %v2235_v35  ;;  %v1655_v20 = vadd.f32 %v3843_v3, %v1562_v15  ;;  %v1656_v27 = vadd.f32 %v3846_v4, %v1562_v15 }
 0x1ef   : > { %v1907_v44 = vmul.f32 -0.5, %v1843_v38  ;;  %2487 = vmatmul.bf16.gmra.mxu3 %v2236_v41  ;;  %2179 = vadd.xlane.f32.xlu2 %v2178_v42 }
 0x1f0   : > { %v2618_v45 = vadd.f32 %v2587_v39, %v2586_v37  ;;  %v1908_v48 = vmul.f32 -0.5, %v1844_v40  ;;  %v1268_v49 = vpop.f32.mrf.mxu0 }
 0x1f1   : > { %v3270_v51 = vpop.eup %3269  ;;  %v2013_v53 = vmul.f32 1.442695, %v1907_v44  ;;  %v1717_v54 = vmul.f32 2.0, %v1268_v49  ;;  %v1381_v55 = vpop.f32.mrf.mxu1 }
 0x1f2   : > { %v2359_v56 = vpop.f32.mrf.mxu2  ;;  %v3272_v57 = vpop.eup %3271  ;;  %v2015_v59 = vmul.f32 1.442695, %v1908_v48  ;;  %v1718_v60 = vmul.f32 2.0, %v1381_v55  ;;  %v2097_v62 = vmul.f32 %v3270_v51, %v968_v43 }
 0x1f3   : > { %v2448_v61 = vpop.f32.mrf.mxu3  ;;  %3273 = vpow2.f32 %v2013_v53  ;;  %v1781_v0 = vsub.f32 %v1653_v52, %v1717_v54  ;;  %v2098_v6 = vmul.f32 %v3272_v57, %v969_v50  ;;  %v1567_v49 = vpop.permute.xlu0 %1566  ;;  %v3987_v50 = vld [vmem:[%s3641_s25 + $0x10] sm:$0xff]   ;;  %v973_v53 = vunpack.c.h.bf16 %v918_v36 }
 0x1f4   : > { %v2449_v1 = vadd.f32 %v2448_v61, %v2359_v56  ;;  %3275 = vpow2.f32 %v2015_v59  ;;  %v1782_v5 = vsub.f32 %v1654_v58, %v1718_v60  ;;  %v1657_v55 = vadd.f32 %v3843_v3, %v1567_v49 }
 0x1f5   : > { %v1845_v7 = vmax.f32 %v1781_v0, 0.0  ;;  %v2181_v10 = vadd.f32 %v2098_v6, %v2097_v62  ;;  %v1658_v61 = vadd.f32 %v3846_v4, %v1567_v49 }
 0x1f6   : > { %v2588_v8 = vmul.f32 %v3052_v63, %v2449_v1  ;;  %v1846_v9 = vmax.f32 %v1782_v5, 0.0  ;;  %v3056_v5 = vunpack.c.l.bf16 %v3987_v50 }
 0x1f7   : > { %v1909_v13 = vmul.f32 -0.5, %v1845_v7  ;;  %2182 = vadd.xlane.f32.xlu0 %v2181_v10 }
 0x1f8   : > { %v2619_v14 = vadd.f32 %v2618_v45, %v2588_v8  ;;  %v1910_v16 = vmul.f32 -0.5, %v1846_v9  ;;  %v1271_v17 = vpop.f32.mrf.mxu0  ;;  %v972_v45 = vunpack.c.l.bf16 %v918_v36  ;;  %v919_v8 = vld [vmem:[%s3674_s10 + $0xb8] sm:$0xff] }
 0x1f9   : > { %v3274_v19 = vpop.eup %3273  ;;  %v2017_v21 = vmul.f32 1.442695, %v1909_v13  ;;  %v1719_v22 = vmul.f32 2.0, %v1271_v17  ;;  %v1384_v23 = vpop.f32.mrf.mxu1 }
 0x1fa   : > { %v2361_v24 = vpop.f32.mrf.mxu2  ;;  %v3276_v26 = vpop.eup %3275  ;;  %v2019_v28 = vmul.f32 1.442695, %v1910_v16  ;;  %v1720_v29 = vmul.f32 2.0, %v1384_v23  ;;  %v2099_v32 = vmul.f32 %v3274_v19, %v970_v12  ;;  %v974_v16 = vunpack.c.l.bf16 %v919_v8 }
 0x1fb   : > { %v2450_v31 = vpop.f32.mrf.mxu3  ;;  %3277 = vpow2.f32 %v2017_v21  ;;  %v1783_v34 = vsub.f32 %v1655_v20, %v1719_v22  ;;  %v2100_v39 = vmul.f32 %v3276_v26, %v971_v18  ;;  %v1572_v19 = vpop.permute.xlu1 %1571  ;;  %v975_v22 = vunpack.c.h.bf16 %v919_v8 }
 0x1fc   : > { %v2451_v35 = vadd.f32 %v2450_v31, %v2361_v24  ;;  %3279 = vpow2.f32 %v2019_v28  ;;  %v1784_v37 = vsub.f32 %v1656_v27, %v1720_v29  ;;  %v2237_v38 = vpack.c.bf16 %v2099_v32, %v2097_v62 }
 0x1fd   : > { %v1847_v40 = vmax.f32 %v1783_v34, 0.0  ;;  %v2238_v43 = vpack.c.bf16 %v2100_v39, %v2098_v6  ;;  %v2184_v44 = vadd.f32 %v2100_v39, %v2099_v32  ;;  %v1659_v24 = vadd.f32 %v3843_v3, %v1572_v19 }
 0x1fe   : > { %v2589_v41 = vmul.f32 %v3053_v33, %v2451_v35  ;;  %v1848_v42 = vmax.f32 %v1784_v37, 0.0  ;;  %2403 = vmatmul.bf16.gmra.mxu2 %v2237_v38  ;;  %v1660_v32 = vadd.f32 %v3846_v4, %v1572_v19  ;;  %v3057_v38 = vunpack.c.h.bf16 %v3987_v50 }
 0x1ff   : > { %v1911_v46 = vmul.f32 -0.5, %v1847_v40  ;;  %2492 = vmatmul.bf16.gmra.mxu3 %v2238_v43  ;;  %2185 = vadd.xlane.f32.xlu1 %v2184_v44 }
 0x200   : > { %v2620_v48 = vadd.f32 %v2619_v14, %v2589_v41  ;;  %v1912_v51 = vmul.f32 -0.5, %v1848_v42  ;;  %v1274_v52 = vpop.f32.mrf.mxu0  ;;  %v920_v41 = vld [vmem:[%s3674_s10 + $0xc0] sm:$0xff] }
 0x201   : > { %v3278_v54 = vpop.eup %3277  ;;  %v2021_v56 = vmul.f32 1.442695, %v1911_v46  ;;  %v1721_v57 = vmul.f32 2.0, %v1274_v52  ;;  %v1387_v58 = vpop.f32.mrf.mxu1  ;;  %v976_v52 = vunpack.c.l.bf16 %v920_v41 }
 0x202   : > { %v2364_v59 = vpop.f32.mrf.mxu2  ;;  %v3280_v60 = vpop.eup %3279  ;;  %v2023_v62 = vmul.f32 1.442695, %v1912_v51  ;;  %v1722_v0 = vmul.f32 2.0, %v1387_v58  ;;  %v2101_v2 = vmul.f32 %v3278_v54, %v972_v45 }
 0x203   : > { %v2453_v1 = vpop.f32.mrf.mxu3  ;;  %3281 = vpow2.f32 %v2021_v56  ;;  %v1785_v6 = vsub.f32 %v1657_v55, %v1721_v57  ;;  %v2102_v10 = vmul.f32 %v3280_v60, %v973_v53  ;;  %v1577_v55 = vpop.permute.xlu2 %1576  ;;  %v4002_v56 = vld [vmem:[%s3641_s25 + $0x18] sm:$0xff]  }
 0x204   : > { %v2454_v7 = vadd.f32 %v2453_v1, %v2364_v59  ;;  %3283 = vpow2.f32 %v2023_v62  ;;  %v1786_v9 = vsub.f32 %v1658_v61, %v1722_v0  ;;  %v977_v59 = vunpack.c.h.bf16 %v920_v41 }
 0x205   : > { %v1849_v12 = vmax.f32 %v1785_v6, 0.0  ;;  %v2187_v15 = vadd.f32 %v2102_v10, %v2101_v2  ;;  %v1661_v61 = vadd.f32 %v3843_v3, %v1577_v55 }
 0x206   : > { %v2590_v13 = vmul.f32 %v3056_v5, %v2454_v7  ;;  %v1850_v14 = vmax.f32 %v1786_v9, 0.0  ;;  %v1662_v7 = vadd.f32 %v3846_v4, %v1577_v55 }
 0x207   : > { %v1913_v17 = vmul.f32 -0.5, %v1849_v12  ;;  %2188 = vadd.xlane.f32.xlu2 %v2187_v15 }
 0x208   : > { %v2621_v18 = vadd.f32 %v2620_v48, %v2590_v13  ;;  %v1914_v20 = vmul.f32 -0.5, %v1850_v14  ;;  %v1277_v21 = vpop.f32.mrf.mxu0  ;;  %v3060_v13 = vunpack.c.l.bf16 %v4002_v56 }
 0x209   : > { %v3282_v23 = vpop.eup %3281  ;;  %v2025_v26 = vmul.f32 1.442695, %v1913_v17  ;;  %v1723_v27 = vmul.f32 2.0, %v1277_v21  ;;  %v1390_v28 = vpop.f32.mrf.mxu1 }
 0x20a   : > { %v2366_v29 = vpop.f32.mrf.mxu2  ;;  %v3284_v31 = vpop.eup %3283  ;;  %v2027_v34 = vmul.f32 1.442695, %v1914_v20  ;;  %v1724_v35 = vmul.f32 2.0, %v1390_v28  ;;  %v2103_v37 = vmul.f32 %v3282_v23, %v974_v16  ;;  %v921_v16 = vld [vmem:[%s3674_s10 + $0xc8] sm:$0xff] }
 0x20b   : > { %v2455_v36 = vpop.f32.mrf.mxu3  ;;  %3285 = vpow2.f32 %v2025_v26  ;;  %v1787_v39 = vsub.f32 %v1659_v24, %v1723_v27  ;;  %v2104_v44 = vmul.f32 %v3284_v31, %v975_v22  ;;  %v1582_v21 = vpop.permute.xlu0 %1581  ;;  %v978_v24 = vunpack.c.l.bf16 %v921_v16 }
 0x20c   : > { %v2456_v40 = vadd.f32 %v2455_v36, %v2366_v29  ;;  %3287 = vpow2.f32 %v2027_v34  ;;  %v1788_v42 = vsub.f32 %v1660_v32, %v1724_v35  ;;  %v2239_v43 = vpack.c.bf16 %v2103_v37, %v2101_v2 }
 0x20d   : > { %v1851_v45 = vmax.f32 %v1787_v39, 0.0  ;;  %v2240_v49 = vpack.c.bf16 %v2104_v44, %v2102_v10  ;;  %v2190_v51 = vadd.f32 %v2104_v44, %v2103_v37  ;;  %v979_v31 = vunpack.c.h.bf16 %v921_v16 }
 0x20e   : > { %v2591_v46 = vmul.f32 %v3057_v38, %v2456_v40  ;;  %v1852_v48 = vmax.f32 %v1788_v42, 0.0  ;;  %2408 = vmatmul.bf16.gmra.mxu2 %v2239_v43  ;;  %v1663_v34 = vadd.f32 %v3843_v3, %v1582_v21  ;;  %v1664_v41 = vadd.f32 %v3846_v4, %v1582_v21 }
 0x20f   : > { %v1915_v53 = vmul.f32 -0.5, %v1851_v45  ;;  %2497 = vmatmul.bf16.gmra.mxu3 %v2240_v49  ;;  %2191 = vadd.xlane.f32.xlu0 %v2190_v51  ;;  %v922_v51 = vld [vmem:[%s3674_s10 + $0xd0] sm:$0xff] }
 0x210   : > { %v2622_v54 = vadd.f32 %v2621_v18, %v2591_v46  ;;  %v1916_v57 = vmul.f32 -0.5, %v1852_v48  ;;  %v1280_v58 = vpop.f32.mrf.mxu0  ;;  %v3061_v46 = vunpack.c.h.bf16 %v4002_v56 }
 0x211   : > { %v3286_v60 = vpop.eup %3285  ;;  %v2029_v62 = vmul.f32 1.442695, %v1915_v53  ;;  %v1725_v0 = vmul.f32 2.0, %v1280_v58  ;;  %v1393_v1 = vpop.f32.mrf.mxu1 }
 0x212   : > { %v2369_v2 = vpop.f32.mrf.mxu2  ;;  %v3288_v6 = vpop.eup %3287  ;;  %v2031_v8 = vmul.f32 1.442695, %v1916_v57  ;;  %v1726_v9 = vmul.f32 2.0, %v1393_v1  ;;  %v2105_v12 = vmul.f32 %v3286_v60, %v976_v52 }
 0x213   : > { %v2458_v10 = vpop.f32.mrf.mxu3  ;;  %3289 = vpow2.f32 %v2029_v62  ;;  %v1789_v14 = vsub.f32 %v1661_v61, %v1725_v0  ;;  %v2106_v18 = vmul.f32 %v3288_v6, %v977_v59  ;;  %v980_v61 = vunpack.c.l.bf16 %v922_v51  ;;  %v1587_v1 = vpop.permute.xlu1 %1586 }
 0x214   : > { %v2459_v15 = vadd.f32 %v2458_v10, %v2369_v2  ;;  %3291 = vpow2.f32 %v2031_v8  ;;  %v1790_v17 = vsub.f32 %v1662_v7, %v1726_v9  ;;  %v4017_v2 = vld [vmem:[%s3641_s25 + $0x20] sm:$0xff]   ;;  %v981_v8 = vunpack.c.h.bf16 %v922_v51 }
 0x215   : > { %v1853_v19 = vmax.f32 %v1789_v14, 0.0  ;;  %v2193_v23 = vadd.f32 %v2106_v18, %v2105_v12  ;;  %v1665_v10 = vadd.f32 %v3843_v3, %v1587_v1 }
 0x216   : > { %v2592_v20 = vmul.f32 %v3060_v13, %v2459_v15  ;;  %v1854_v22 = vmax.f32 %v1790_v17, 0.0 }
 0x217   : > { %v1917_v26 = vmul.f32 -0.5, %v1853_v19  ;;  %2194 = vadd.xlane.f32.xlu1 %v2193_v23  ;;  %v3064_v23 = vunpack.c.l.bf16 %v4017_v2 }
 0x218   : > { %v2623_v27 = vadd.f32 %v2622_v54, %v2592_v20  ;;  %v1918_v28 = vmul.f32 -0.5, %v1854_v22  ;;  %v1283_v29 = vpop.f32.mrf.mxu0 }
 0x219   : > { %v3290_v32 = vpop.eup %3289  ;;  %v2033_v35 = vmul.f32 1.442695, %v1917_v26  ;;  %v1727_v36 = vmul.f32 2.0, %v1283_v29  ;;  %v1396_v37 = vpop.f32.mrf.mxu1 }
 0x21a   : > { %v2371_v39 = vpop.f32.mrf.mxu2  ;;  %v3292_v40 = vpop.eup %3291  ;;  %v2035_v42 = vmul.f32 1.442695, %v1918_v28  ;;  %v1728_v43 = vmul.f32 2.0, %v1396_v37  ;;  %v2107_v45 = vmul.f32 %v3290_v32, %v978_v24 }
 0x21b   : > { %v2460_v44 = vpop.f32.mrf.mxu3  ;;  %3293 = vpow2.f32 %v2033_v35  ;;  %v1791_v48 = vsub.f32 %v1663_v34, %v1727_v36  ;;  %v2108_v54 = vmul.f32 %v3292_v40, %v979_v31  ;;  %v1592_v34 = vpop.permute.xlu2 %1591 }
 0x21c   : > { %v2461_v49 = vadd.f32 %v2460_v44, %v2371_v39  ;;  %3295 = vpow2.f32 %v2035_v42  ;;  %v1792_v52 = vsub.f32 %v1664_v41, %v1728_v43  ;;  %v2241_v53 = vpack.c.bf16 %v2107_v45, %v2105_v12 }
 0x21d   : > { %v1855_v55 = vmax.f32 %v1791_v48, 0.0  ;;  %v2242_v59 = vpack.c.bf16 %v2108_v54, %v2106_v18  ;;  %v2196_v60 = vadd.f32 %v2108_v54, %v2107_v45  ;;  %v1666_v18 = vadd.f32 %v3846_v4, %v1587_v1 }
 0x21e   : > { %v2593_v57 = vmul.f32 %v3061_v46, %v2461_v49  ;;  %v1856_v58 = vmax.f32 %v1792_v52, 0.0  ;;  %2413 = vmatmul.bf16.gmra.mxu2 %v2241_v53  ;;  %v1667_v45 = vadd.f32 %v3843_v3, %v1592_v34  ;;  %v1668_v54 = vadd.f32 %v3846_v4, %v1592_v34 }
 0x21f   : > { %v1919_v62 = vmul.f32 -0.5, %v1855_v55  ;;  %2502 = vmatmul.bf16.gmra.mxu3 %v2242_v59  ;;  %2197 = vadd.xlane.f32.xlu2 %v2196_v60  ;;  %v3065_v60 = vunpack.c.h.bf16 %v4017_v2 }
 0x220   : > { %v2624_v0 = vadd.f32 %v2623_v27, %v2593_v57  ;;  %v1920_v6 = vmul.f32 -0.5, %v1856_v58  ;;  %v1286_v7 = vpop.f32.mrf.mxu0  ;;  %v923_v27 = vld [vmem:[%s3674_s10 + $0xd8] sm:$0xff] }
 0x221   : > { %v3294_v9 = vpop.eup %3293  ;;  %v2037_v12 = vmul.f32 1.442695, %v1919_v62  ;;  %v1729_v14 = vmul.f32 2.0, %v1286_v7  ;;  %v1399_v15 = vpop.f32.mrf.mxu1  ;;  %v982_v37 = vunpack.c.l.bf16 %v923_v27  ;;  %v983_v43 = vunpack.c.h.bf16 %v923_v27 }
 0x222   : > { %v2374_v16 = vpop.f32.mrf.mxu2  ;;  %v3296_v17 = vpop.eup %3295  ;;  %v2039_v19 = vmul.f32 1.442695, %v1920_v6  ;;  %v1730_v20 = vmul.f32 2.0, %v1399_v15  ;;  %v2109_v22 = vmul.f32 %v3294_v9, %v980_v61 }
 0x223   : > { %v2463_v21 = vpop.f32.mrf.mxu3  ;;  %3297 = vpow2.f32 %v2037_v12  ;;  %v1793_v24 = vsub.f32 %v1665_v10, %v1729_v14  ;;  %v2110_v29 = vmul.f32 %v3296_v17, %v981_v8  ;;  %v1597_v10 = vpop.permute.xlu0 %1596 }
 0x224   : > { %v2464_v26 = vadd.f32 %v2463_v21, %v2374_v16  ;;  %3299 = vpow2.f32 %v2039_v19  ;;  %v1794_v28 = vsub.f32 %v1666_v18, %v1730_v20  ;;  %v4032_v19 = vld [vmem:[%s3641_s25 + $0x28] sm:$0xff]   ;;  %v1670_v34 = vadd.f32 %v3846_v4, %v1597_v10 }
 0x225   : > { %v1857_v31 = vmax.f32 %v1793_v24, 0.0  ;;  %v2199_v36 = vadd.f32 %v2110_v29, %v2109_v22 }
 0x226   : > { %v2594_v32 = vmul.f32 %v3064_v23, %v2464_v26  ;;  %v1858_v35 = vmax.f32 %v1794_v28, 0.0  ;;  %v1669_v26 = vadd.f32 %v3843_v3, %v1597_v10 }
 0x227   : > { %v1921_v39 = vmul.f32 -0.5, %v1857_v31  ;;  %2200 = vadd.xlane.f32.xlu0 %v2199_v36 }
 0x228   : > { %v2625_v40 = vadd.f32 %v2624_v0, %v2594_v32  ;;  %v1922_v41 = vmul.f32 -0.5, %v1858_v35  ;;  %v1289_v42 = vpop.f32.mrf.mxu0  ;;  %v924_v0 = vld [vmem:[%s3674_s10 + $0xe0] sm:$0xff] }
 0x229   : > { %v3298_v44 = vpop.eup %3297  ;;  %v2041_v48 = vmul.f32 1.442695, %v1921_v39  ;;  %v1731_v49 = vmul.f32 2.0, %v1289_v42  ;;  %v1402_v51 = vpop.f32.mrf.mxu1  ;;  %v984_v16 = vunpack.c.l.bf16 %v924_v0 }
 0x22a   : > { %v2376_v52 = vpop.f32.mrf.mxu2  ;;  %v3300_v53 = vpop.eup %3299  ;;  %v2043_v55 = vmul.f32 1.442695, %v1922_v41  ;;  %v1732_v57 = vmul.f32 2.0, %v1402_v51  ;;  %v2111_v59 = vmul.f32 %v3298_v44, %v982_v37 }
 0x22b   : > { %v2465_v58 = vpop.f32.mrf.mxu3  ;;  %3301 = vpow2.f32 %v2041_v48  ;;  %v1795_v61 = vsub.f32 %v1667_v45, %v1731_v49  ;;  %v2112_v7 = vmul.f32 %v3300_v53, %v983_v43  ;;  %v925_v43 = vld [vmem:[%s3674_s10 + $0xe8] sm:$0xff]  ;;  %v1602_v51 = vpop.permute.xlu1 %1601 }
 0x22c   : > { %v2466_v62 = vadd.f32 %v2465_v58, %v2376_v52  ;;  %3303 = vpow2.f32 %v2043_v55  ;;  %v1796_v1 = vsub.f32 %v1668_v54, %v1732_v57  ;;  %v2243_v6 = vpack.c.bf16 %v2111_v59, %v2109_v22 }
 0x22d   : > { %v1859_v8 = vmax.f32 %v1795_v61, 0.0  ;;  %v2244_v14 = vpack.c.bf16 %v2112_v7, %v2110_v29  ;;  %v2202_v15 = vadd.f32 %v2112_v7, %v2111_v59  ;;  %v985_v22 = vunpack.c.h.bf16 %v924_v0 }
 0x22e   : > { %v2595_v9 = vmul.f32 %v3065_v60, %v2466_v62  ;;  %v1860_v12 = vmax.f32 %v1796_v1, 0.0  ;;  %2418 = vmatmul.bf16.gmra.mxu2 %v2243_v6  ;;  %v986_v54 = vunpack.c.l.bf16 %v925_v43  ;;  %v987_v61 = vunpack.c.h.bf16 %v925_v43 }
 0x22f   : > { %v1923_v17 = vmul.f32 -0.5, %v1859_v8  ;;  %2507 = vmatmul.bf16.gmra.mxu3 %v2244_v14  ;;  %2203 = vadd.xlane.f32.xlu1 %v2202_v15  ;;  %v1671_v0 = vadd.f32 %v3843_v3, %v1602_v51  ;;  %v1672_v10 = vadd.f32 %v3846_v4, %v1602_v51 }
 0x230   : > { %v2626_v18 = vadd.f32 %v2625_v40, %v2595_v9  ;;  %v1924_v20 = vmul.f32 -0.5, %v1860_v12  ;;  %v1292_v21 = vpop.f32.mrf.mxu0  ;;  %v3068_v40 = vunpack.c.l.bf16 %v4032_v19 }
 0x231   : > { %v3302_v24 = vpop.eup %3301  ;;  %v2045_v27 = vmul.f32 1.442695, %v1923_v17  ;;  %v1733_v28 = vmul.f32 2.0, %v1292_v21  ;;  %v1405_v31 = vpop.f32.mrf.mxu1  ;;  %v3069_v17 = vunpack.c.h.bf16 %v4032_v19  ;;  %v926_v21 = vld [vmem:[%s3674_s10 + $0xf0] sm:$0xff] }
 0x232   : > { %v2379_v32 = vpop.f32.mrf.mxu2  ;;  %v3304_v29 = vpop.eup %3303  ;;  %v2047_v35 = vmul.f32 1.442695, %v1924_v20  ;;  %v1734_v36 = vmul.f32 2.0, %v1405_v31  ;;  %v2113_v39 = vmul.f32 %v3302_v24, %v984_v16 }
 0x233   : > { %v2468_v37 = vpop.f32.mrf.mxu3  ;;  %3305 = vpow2.f32 %v2045_v27  ;;  %v1797_v41 = vsub.f32 %v1669_v26, %v1733_v28  ;;  %v2114_v45 = vmul.f32 %v3304_v29, %v985_v22 }
 0x234   : > { %v2469_v42 = vadd.f32 %v2468_v37, %v2379_v32  ;;  %3307 = vpow2.f32 %v2047_v35  ;;  %v1798_v44 = vsub.f32 %v1670_v34, %v1734_v36  ;;  %v988_v32 = vunpack.c.l.bf16 %v926_v21  ;;  %v4047_v36 = vld [vmem:[%s3641_s25 + $0x30] sm:$0xff]  }
 0x235   : > { %v1861_v48 = vmax.f32 %v1797_v41, 0.0  ;;  %v2205_v53 = vadd.f32 %v2114_v45, %v2113_v39  ;;  %v989_v35 = vunpack.c.h.bf16 %v926_v21 }
 0x236   : > { %v2596_v49 = vmul.f32 %v3068_v40, %v2469_v42  ;;  %v1862_v52 = vmax.f32 %v1798_v44, 0.0 }
 0x237   : > { %v1925_v55 = vmul.f32 -0.5, %v1861_v48  ;;  %2206 = vadd.xlane.f32.xlu2 %v2205_v53  ;;  %v927_v53 = vld [vmem:[%s3674_s10 + $0xf8] sm:$0xff] }
 0x238   : > { %v2627_v57 = vadd.f32 %v2626_v18, %v2596_v49  ;;  %v1926_v58 = vmul.f32 -0.5, %v1862_v52  ;;  %v1295_v59 = vpop.f32.mrf.mxu0 }
 0x239   : > { %v3306_v62 = vpop.eup %3305  ;;  %v2049_v1 = vmul.f32 1.442695, %v1925_v55  ;;  %v1735_v6 = vmul.f32 2.0, %v1295_v59  ;;  %v1408_v7 = vpop.f32.mrf.mxu1  ;;  %v991_v59 = vunpack.c.h.bf16 %v927_v53 }
 0x23a   : > { %v2381_v8 = vpop.f32.mrf.mxu2  ;;  %v3308_v9 = vpop.eup %3307  ;;  %v2051_v12 = vmul.f32 1.442695, %v1926_v58  ;;  %v1736_v14 = vmul.f32 2.0, %v1408_v7  ;;  %v2115_v16 = vmul.f32 %v3306_v62, %v986_v54  ;;  %v3073_v7 = vunpack.c.h.bf16 %v4047_v36 }
 0x23b   : > { %v2470_v15 = vpop.f32.mrf.mxu3  ;;  %3309 = vpow2.f32 %v2049_v1  ;;  %v1799_v18 = vsub.f32 %v1671_v0, %v1735_v6  ;;  %v2116_v24 = vmul.f32 %v3308_v9, %v987_v61 }
 0x23c   : > { %v2471_v20 = vadd.f32 %v2470_v15, %v2381_v8  ;;  %3311 = vpow2.f32 %v2051_v12  ;;  %v1800_v3 = vsub.f32 %v1672_v10, %v1736_v14  ;;  %v2245_v22 = vpack.c.bf16 %v2115_v16, %v2113_v39 }
 0x23d   : > { %v1863_v26 = vmax.f32 %v1799_v18, 0.0  ;;  %v2246_v28 = vpack.c.bf16 %v2116_v24, %v2114_v45  ;;  %v2208_v31 = vadd.f32 %v2116_v24, %v2115_v16  ;;  %v3072_v45 = vunpack.c.l.bf16 %v4047_v36  ;;  %v4057_v18 = vld [vmem:[%s3641_s25 + $0x38] sm:$0xff]  }
 0x23e   : > { %v2597_v27 = vmul.f32 %v3069_v17, %v2471_v20  ;;  %v1864_v4 = vmax.f32 %v1800_v3, 0.0  ;;  %2423 = vmatmul.bf16.gmra.mxu2 %v2245_v22  ;;  %v3076_v3 = vunpack.c.l.bf16 %v4057_v18 }
 0x23f   : > { %v1927_v29 = vmul.f32 -0.5, %v1863_v26  ;;  %2512 = vmatmul.bf16.gmra.mxu3 %v2246_v28  ;;  %2209 = vadd.xlane.f32.xlu0 %v2208_v31  ;;  %v3077_v28 = vunpack.c.h.bf16 %v4057_v18 }
 0x240   : > { %v2628_v34 = vadd.f32 %v2627_v57, %v2597_v27  ;;  %v1928_v37 = vmul.f32 -0.5, %v1864_v4  ;;  %v990_v57 = vunpack.c.l.bf16 %v927_v53 }
 0x241   : > { %v3310_v39 = vpop.eup %3309  ;;  %v2053_v41 = vmul.f32 1.442695, %v1927_v29 }
 0x242   : > { %v2384_v42 = vpop.f32.mrf.mxu2  ;;  %v3312_v43 = vpop.eup %3311  ;;  %v2055_v44 = vmul.f32 1.442695, %v1928_v37  ;;  %v2117_v49 = vmul.f32 %v3310_v39, %v988_v32 }
 0x243   : > { %v2473_v48 = vpop.f32.mrf.mxu3  ;;  %3313 = vpow2.f32 %v2053_v41  ;;  %v2118_v52 = vmul.f32 %v3312_v43, %v989_v35  ;;  %v2123_v43 = vpop.xlane.xlu2 %2122 }
 0x244   : > { %v2474_v51 = vadd.f32 %v2473_v48, %v2384_v42  ;;  %3315 = vpow2.f32 %v2055_v44 }
 0x245   : > { %v2211_v55 = vadd.f32 %v2118_v52, %v2117_v49 }
 0x246   : > { %v2598_v54 = vmul.f32 %v3072_v45, %v2474_v51 }
 0x247   : > { %2212 = vadd.xlane.f32.xlu1 %v2211_v55 }
 0x248   : > { %v2629_v58 = vadd.f32 %v2628_v34, %v2598_v54  ;;  %v4066_v34 = vld [vmem:[%s3641_s25 + $0x40] sm:$0xff]  }
 0x249   : > { %v3314_v61 = vpop.eup %3313  ;;  %v3080_v39 = vunpack.c.l.bf16 %v4066_v34  ;;  %v3081_v51 = vunpack.c.h.bf16 %v4066_v34 }
 0x24a   : > { %v2386_v62 = vpop.f32.mrf.mxu2  ;;  %v3316_v0 = vpop.eup %3315  ;;  %v2119_v6 = vmul.f32 %v3314_v61, %v990_v57  ;;  %v4075_v57 = vld [vmem:[%s3641_s25 + $0x48] sm:$0xff]  }
 0x24b   : > { %v2475_v1 = vpop.f32.mrf.mxu3  ;;  %v2120_v9 = vmul.f32 %v3316_v0, %v991_v59  ;;  %v2132_v54 = vpop.xlane.xlu2 %2131  ;;  %v3084_v0 = vunpack.c.l.bf16 %v4075_v57 }
 0x24c   : > { %v2476_v8 = vadd.f32 %v2475_v1, %v2386_v62  ;;  %v2247_v10 = vpack.c.bf16 %v2119_v6, %v2117_v49  ;;  %v2126_v59 = vpop.xlane.xlu0 %2125  ;;  %v2129_v62 = vpop.xlane.xlu1 %2128 }
 0x24d   : > { %v2248_v14 = vpack.c.bf16 %v2120_v9, %v2118_v52  ;;  %v2214_v15 = vadd.f32 %v2120_v9, %v2119_v6 }
 0x24e   : > { %v2599_v12 = vmul.f32 %v3073_v7, %v2476_v8  ;;  %2428 = vmatmul.bf16.gmra.mxu2 %v2247_v10 }
 0x24f   : > { %2215 = vadd.xlane.f32.xlu2 %v2214_v15  ;;  %2517 = vmatmul.bf16.gmra.mxu3 %v2248_v14 }
 0x250   : > { %v2630_v16 = vadd.f32 %v2629_v58, %v2599_v12 }
 0x252   : > { %v2389_v20 = vpop.f32.mrf.mxu2 }
 0x253   : > { %v2478_v21 = vpop.f32.mrf.mxu3  ;;  %v2135_v8 = vpop.xlane.xlu2 %2134 }
 0x254   : > { %v2479_v22 = vadd.f32 %v2478_v21, %v2389_v20  ;;  %v2138_v12 = vpop.xlane.xlu0 %2137  ;;  %v2141_v15 = vpop.xlane.xlu1 %2140 }
 0x256   : > { %v2600_v24 = vmul.f32 %v3076_v3, %v2479_v22 }
 0x258   : > { %v2631_v26 = vadd.f32 %v2630_v16, %v2600_v24  ;;  %v3085_v16 = vunpack.c.h.bf16 %v4075_v57 }
 0x25a   : > { %v2391_v27 = vpop.f32.mrf.mxu2 }
 0x25b   : > { %v2480_v4 = vpop.f32.mrf.mxu3  ;;  %v2144_v22 = vpop.xlane.xlu2 %2143 }
 0x25c   : > { %v2481_v31 = vadd.f32 %v2480_v4, %v2391_v27  ;;  %v2147_v4 = vpop.xlane.xlu0 %2146 }
 0x25e   : > { %v2601_v32 = vmul.f32 %v3077_v28, %v2481_v31 }
 0x260   : > { %v2632_v29 = vadd.f32 %v2631_v26, %v2601_v32  ;;  %v4084_v26 = vld [vmem:[%s3641_s25 + $0x50] sm:$0xff]   ;;  %v2150_v32 = vpop.xlane.xlu1 %2149 }
 0x262   : > { %v2394_v35 = vpop.f32.mrf.mxu2 }
 0x263   : > { %v2483_v37 = vpop.f32.mrf.mxu3 }
 0x264   : > { %v2484_v41 = vadd.f32 %v2483_v37, %v2394_v35  ;;  %v2524_v37 = vmul.f32 %v3049_v30, %v2126_v59  ;;  %v2527_v59 = vmul.f32 %v3056_v5, %v2135_v8  ;;  %v2531_v8 = vmul.f32 %v3064_v23, %v2147_v4 }
 0x266   : > { %v2602_v42 = vmul.f32 %v3080_v39, %v2484_v41 }
 0x268   : > { %v2633_v44 = vadd.f32 %v2632_v29, %v2602_v42  ;;  %v3088_v29 = vunpack.c.l.bf16 %v4084_v26  ;;  %v2523_v42 = vmul.f32 %v3048_v25, %v2123_v43  ;;  %v2159_v11 = vpop.xlane.xlu1 %2158 }
 0x26a   : > { %v2396_v48 = vpop.f32.mrf.mxu2 }
 0x26b   : > { %v2485_v49 = vpop.f32.mrf.mxu3 }
 0x26c   : > { %v2486_v52 = vadd.f32 %v2485_v49, %v2396_v48  ;;  %v2153_v48 = vpop.xlane.xlu2 %2152 }
 0x26e   : > { %v2603_v53 = vmul.f32 %v3081_v51, %v2486_v52  ;;  %v2555_v52 = vadd.f32 %v2524_v37, %v2523_v42 }
 0x270   : > { %v2634_v55 = vadd.f32 %v2633_v44, %v2603_v53  ;;  %v2525_v44 = vmul.f32 %v3052_v63, %v2129_v62  ;;  %v2526_v53 = vmul.f32 %v3053_v33, %v2132_v54  ;;  %v2528_v63 = vmul.f32 %v3057_v38, %v2138_v12  ;;  %v2168_v50 = vpop.xlane.xlu1 %2167 }
 0x271   : > { %v2529_v62 = vmul.f32 %v3060_v13, %v2141_v15  ;;  %v2530_v54 = vmul.f32 %v3061_v46, %v2144_v22  ;;  %v2533_v12 = vmul.f32 %v3068_v40, %v2153_v48  ;;  %v2538_v4 = vmul.f32 %v3077_v28, %v2168_v50  ;;  %v4146_v28 = vld [vmem:[%s3641_s25 + $0x58] sm:$0xff]  }
 0x272   : > { %v2399_v58 = vpop.f32.mrf.mxu2  ;;  %v2556_v30 = vadd.f32 %v2555_v52, %v2525_v44 }
 0x273   : > { %v2488_v61 = vpop.f32.mrf.mxu3 }
 0x274   : > { %v2489_v1 = vadd.f32 %v2488_v61, %v2399_v58  ;;  %v2156_v58 = vpop.xlane.xlu0 %2155  ;;  %v2557_v25 = vadd.f32 %v2556_v30, %v2526_v53  ;;  %v2162_v47 = vpop.xlane.xlu2 %2161  ;;  %v4159_v30 = vld [vmem:[%s3641_s25 + $0x60] sm:$0xff]  }
 0x276   : > { %v2604_v6 = vmul.f32 %v3084_v0, %v2489_v1  ;;  %v2558_v43 = vadd.f32 %v2557_v25, %v2527_v59 }
 0x278   : > { %v2635_v9 = vadd.f32 %v2634_v55, %v2604_v6  ;;  %v2559_v33 = vadd.f32 %v2558_v43, %v2528_v63  ;;  %v2177_v2 = vpop.xlane.xlu1 %2176  ;;  %v3096_v43 = vunpack.c.l.bf16 %v4159_v30 }
 0x279   : > { %v2541_v18 = vmul.f32 %v3084_v0, %v2177_v2  ;;  %v4174_v2 = vld [vmem:[%s3641_s25 + $0x78] sm:$0xff]  }
 0x27a   : > { %v2401_v10 = vpop.f32.mrf.mxu2  ;;  %v2560_v5 = vadd.f32 %v2559_v33, %v2529_v62  ;;  %v3097_v33 = vunpack.c.h.bf16 %v4159_v30  ;;  %v2649_v30 = vld [vmem:[%s3650_s20] sm:$0xff] }
 0x27b   : > { %v2490_v14 = vpop.f32.mrf.mxu3 }
 0x27c   : > { %v2491_v20 = vadd.f32 %v2490_v14, %v2401_v10  ;;  %v2165_v6 = vpop.xlane.xlu0 %2164  ;;  %v2561_v38 = vadd.f32 %v2560_v5, %v2530_v54  ;;  %v2532_v10 = vmul.f32 %v3065_v60, %v2150_v32  ;;  %v2171_v56 = vpop.xlane.xlu2 %2170  ;;  %v2534_v14 = vmul.f32 %v3069_v17, %v2156_v58 }
 0x27d   : > { %v2537_v19 = vmul.f32 %v3076_v3, %v2165_v6 }
 0x27e   : > { %v2605_v21 = vmul.f32 %v3085_v16, %v2491_v20  ;;  %v2562_v13 = vadd.f32 %v2561_v38, %v2531_v8 }
 0x280   : > { %v2636_v24 = vadd.f32 %v2635_v9, %v2605_v21  ;;  %v2563_v46 = vadd.f32 %v2562_v13, %v2532_v10  ;;  %v2535_v21 = vmul.f32 %v3072_v45, %v2159_v11  ;;  %v2186_v36 = vpop.xlane.xlu1 %2185  ;;  %v4169_v13 = vld [vmem:[%s3641_s25 + $0x70] sm:$0xff]  }
 0x282   : > { %v2404_v27 = vpop.f32.mrf.mxu2  ;;  %v2564_v23 = vadd.f32 %v2563_v46, %v2533_v12 }
 0x283   : > { %v2493_v31 = vpop.f32.mrf.mxu3 }
 0x284   : > { %v2494_v35 = vadd.f32 %v2493_v31, %v2404_v27  ;;  %v2174_v20 = vpop.xlane.xlu0 %2173  ;;  %v2565_v60 = vadd.f32 %v2564_v23, %v2534_v14  ;;  %v2180_v17 = vpop.xlane.xlu2 %2179  ;;  %v3104_v23 = vunpack.c.l.bf16 %v4169_v13 }
 0x285   : > { %v2540_v3 = vmul.f32 %v3081_v51, %v2174_v20  ;;  %v2542_v48 = vmul.f32 %v3085_v16, %v2180_v17  ;;  %v3092_v51 = vunpack.c.l.bf16 %v4146_v28  ;;  %v3093_v16 = vunpack.c.h.bf16 %v4146_v28 }
 0x286   : > { %v2606_v41 = vmul.f32 %v3088_v29, %v2494_v35  ;;  %v2566_v40 = vadd.f32 %v2565_v60, %v2535_v21  ;;  %v2539_v35 = vmul.f32 %v3080_v39, %v2171_v56  ;;  %v3089_v39 = vunpack.c.h.bf16 %v4084_v26 }
 0x288   : > { %v4095_v49 = vadd.f32 %v2636_v24, %v2606_v41  ;;  %v2536_v24 = vmul.f32 %v3073_v7, %v2162_v47  ;;  %v2544_v57 = vmul.f32 %v3089_v39, %v2186_v36  ;;  %v4164_v47 = vld [vmem:[%s3641_s25 + $0x68] sm:$0xff]  }
 0x289   : > { %v3100_v50 = vunpack.c.l.bf16 %v4164_v47  ;;  %v3101_v46 = vunpack.c.h.bf16 %v4164_v47 }
 0x28a   : > { %v4099_v55 = vpop.f32.mrf.mxu2  ;;  %v2567_v27 = vadd.f32 %v2566_v40, %v2536_v24  ;;  %v2195_v59 = vpop.xlane.xlu1 %2194  ;;  %v3105_v40 = vunpack.c.h.bf16 %v4169_v13 }
 0x28b   : > { %v4103_v61 = vpop.f32.mrf.mxu3  ;;  %v2547_v8 = vmul.f32 %v3096_v43, %v2195_v59 }
 0x28c   : > { %v2183_v45 = vpop.xlane.xlu0 %2182  ;;  %v2568_v32 = vadd.f32 %v2567_v27, %v2537_v19  ;;  %v2189_v42 = vpop.xlane.xlu2 %2188 }
 0x28d   : > { %v2543_v34 = vmul.f32 %v3088_v29, %v2183_v45  ;;  %v2545_v63 = vmul.f32 %v3092_v51, %v2189_v42 }
 0x28e   : > { %v2569_v7 = vadd.f32 %v2568_v32, %v2538_v4  ;;  %v3108_v32 = vunpack.c.l.bf16 %v4174_v2 }
 0x290   : > { %v2570_v41 = vadd.f32 %v2569_v7, %v2539_v35 }
 0x292   : > { %v4111_v1 = vpop.f32.mrf.mxu2  ;;  %v2571_v44 = vadd.f32 %v2570_v41, %v2540_v3 }
 0x293   : > { %v4115_v9 = vpop.f32.mrf.mxu3 }
 0x294   : > { %v2192_v53 = vpop.xlane.xlu0 %2191  ;;  %v2572_v58 = vadd.f32 %v2571_v44, %v2541_v18  ;;  %v2198_v62 = vpop.xlane.xlu2 %2197  ;;  %v3109_v18 = vunpack.c.h.bf16 %v4174_v2 }
 0x295   : > { %v2546_v29 = vmul.f32 %v3093_v16, %v2192_v53  ;;  %v2548_v56 = vmul.f32 %v3097_v33, %v2198_v62 }
 0x296   : > { %v2573_v11 = vadd.f32 %v2572_v58, %v2542_v48 }
 0x298   : > { %v2574_v25 = vadd.f32 %v2573_v11, %v2543_v34  ;;  %v2496_v34 = vadd.f32 %v4103_v61, %v4099_v55  ;;  %v2499_v11 = vadd.f32 %v4115_v9, %v4111_v1 }
 0x29a   : > { %v4123_v15 = vpop.f32.mrf.mxu2  ;;  %v2575_v26 = vadd.f32 %v2574_v25, %v2544_v57  ;;  %v2607_v25 = vmul.f32 %v3089_v39, %v2496_v34  ;;  %v2608_v47 = vmul.f32 %v3092_v51, %v2499_v11 }
 0x29b   : > { %v4127_v22 = vpop.f32.mrf.mxu3 }
 0x29c   : > { %v2201_v6 = vpop.xlane.xlu0 %2200  ;;  %v2576_v5 = vadd.f32 %v2575_v26, %v2545_v63  ;;  %v2501_v63 = vadd.f32 %v4127_v22, %v4123_v15 }
 0x29d   : > { %v2549_v20 = vmul.f32 %v3100_v50, %v2201_v6  ;;  %v2638_v6 = vadd.f32 %v4095_v49, %v2607_v25 }
 0x29e   : > { %v2577_v12 = vadd.f32 %v2576_v5, %v2546_v29  ;;  %v2609_v55 = vmul.f32 %v3093_v16, %v2501_v63 }
 0x29f   : > { %v2639_v5 = vadd.f32 %v2638_v6, %v2608_v47 }
 0x2a0   : > { %v2578_v14 = vadd.f32 %v2577_v12, %v2547_v8 }
 0x2a1   : > { %v2640_v39 = vadd.f32 %v2639_v5, %v2609_v55 }
 0x2a2   : > { %v4135_v31 = vpop.f32.mrf.mxu2  ;;  %v2204_v10 = vpop.xlane.xlu1 %2203  ;;  %v2579_v60 = vadd.f32 %v2578_v14, %v2548_v56 }
 0x2a3   : > { %v4139_v37 = vpop.f32.mrf.mxu3  ;;  %v2550_v24 = vmul.f32 %v3101_v46, %v2204_v10 }
 0x2a4   : > { %v2580_v27 = vadd.f32 %v2579_v60, %v2549_v20  ;;  %v2504_v26 = vadd.f32 %v4139_v37, %v4135_v31  ;;  %v2652_v60 = vld [vmem:[%s3666_s17] sm:$0xff] }
 0x2a6   : > { %v2581_v36 = vadd.f32 %v2580_v27, %v2550_v24  ;;  %v2610_v1 = vmul.f32 %v3096_v43, %v2504_v26 }
 0x2a8   : > { %v2641_v22 = vadd.f32 %v2640_v39, %v2610_v1 }
 0x2aa   : > { %v4151_v52 = vpop.f32.mrf.mxu2  ;;  %v2207_v21 = vpop.xlane.xlu2 %2206 }
 0x2ab   : > { %v4156_v0 = vpop.f32.mrf.mxu3  ;;  %v2551_v4 = vmul.f32 %v3104_v23, %v2207_v21 }
 0x2ac   : > { %v2506_v61 = vadd.f32 %v4156_v0, %v4151_v52 }
 0x2ad   : > { %v2582_v3 = vadd.f32 %v2581_v36, %v2551_v4 }
 0x2ae   : > { %v2611_v8 = vmul.f32 %v3097_v33, %v2506_v61 }
 0x2b0   : > { %v2642_v56 = vadd.f32 %v2641_v22, %v2611_v8 }
 0x2b2   : > { %v2419_v54 = vpop.f32.mrf.mxu2  ;;  %v2210_v17 = vpop.xlane.xlu0 %2209 }
 0x2b3   : > { %v2508_v38 = vpop.f32.mrf.mxu3  ;;  %v2552_v7 = vmul.f32 %v3105_v40, %v2210_v17 }
 0x2b4   : > { %v2509_v9 = vadd.f32 %v2508_v38, %v2419_v54 }
 0x2b5   : > { %v2583_v28 = vadd.f32 %v2582_v3, %v2552_v7 }
 0x2b6   : > { %v2612_v13 = vmul.f32 %v3100_v50, %v2509_v9 }
 0x2b8   : > { %v2643_v49 = vadd.f32 %v2642_v56, %v2612_v13 }
 0x2ba   : > { %v2421_v19 = vpop.f32.mrf.mxu2  ;;  %v2213_v35 = vpop.xlane.xlu1 %2212 }
 0x2bb   : > { %v2510_v45 = vpop.f32.mrf.mxu3  ;;  %v2553_v41 = vmul.f32 %v3108_v32, %v2213_v35 }
 0x2bc   : > { %v2511_v10 = vadd.f32 %v2510_v45, %v2421_v19 }
 0x2bd   : > { %v2584_v48 = vadd.f32 %v2583_v28, %v2553_v41 }
 0x2be   : > { %v2613_v31 = vmul.f32 %v3101_v46, %v2511_v10 }
 0x2c0   : > { %v2644_v52 = vadd.f32 %v2643_v49, %v2613_v31 }
 0x2c2   : > { %v2424_v42 = vpop.f32.mrf.mxu2  ;;  %v2216_v44 = vpop.xlane.xlu2 %2215 }
 0x2c3   : > { %v2513_v53 = vpop.f32.mrf.mxu3  ;;  %v2554_v58 = vmul.f32 %v3109_v18, %v2216_v44 }
 0x2c4   : > { %v2514_v51 = vadd.f32 %v2513_v53, %v2424_v42 }
 0x2c5   : > { %v2585_v59 = vadd.f32 %v2584_v48, %v2554_v58 }
 0x2c6   : > { %v2614_v16 = vmul.f32 %v3104_v23, %v2514_v51 }
 0x2c7   : > { %v2650_v57 = vadd.f32 %v2649_v30, %v2585_v59 }
 0x2c8   : > { %v2645_v54 = vadd.f32 %v2644_v52, %v2614_v16 }
 0x2c9   : > { %2651 = vst [vmem:[%s3650_s20] sm:$0xff] %v2650_v57 }
 0x2ca   : > { %v2426_v62 = vpop.f32.mrf.mxu2 }
 0x2cb   : > { %v2515_v29 = vpop.f32.mrf.mxu3 }
 0x2cc   : > { %v2516_v37 = vadd.f32 %v2515_v29, %v2426_v62 }
 0x2ce   : > { %v2615_v0 = vmul.f32 %v3105_v40, %v2516_v37 }
 0x2d0   : > { %v2646_v20 = vadd.f32 %v2645_v54, %v2615_v0 }
 0x2d2   : > { %v2429_v15 = vpop.f32.mrf.mxu2 }
 0x2d3   : > { %v2518_v12 = vpop.f32.mrf.mxu3 }
 0x2d4   : > { %v2519_v14 = vadd.f32 %v2518_v12, %v2429_v15 }
 0x2d6   : > { %v2616_v38 = vmul.f32 %v3108_v32, %v2519_v14 }
 0x2d8   : > { %v2647_v2 = vadd.f32 %v2646_v20, %v2616_v38 }
 0x2da   : > { %v2431_v43 = vpop.f32.mrf.mxu2 }
 0x2db   : > { %v2520_v33 = vpop.f32.mrf.mxu3 }
 0x2dc   : > { %v2521_v21 = vadd.f32 %v2520_v33, %v2431_v43 }
 0x2de   : > { %v2617_v50 = vmul.f32 %v3109_v18, %v2521_v21 }
 0x2e0   : > { %v2648_v24 = vadd.f32 %v2647_v2, %v2617_v50 }
 0x2e2   : > { %v2653_v19 = vadd.f32 %v2652_v60, %v2648_v24 }
 0x2e4   : > { %2654 = vst [vmem:[%s3666_s17] sm:$0xff] %v2653_v19 }
 0x2e5 PF: > { %s40_s14 = sadd.s32 1, %s3409_s14   ;;  %s4247_s5 = sld [smem:[#allocation12_spill]] }
 0x2e6   : > { %p37_p3 = scmp.ge.s32.totalorder %s40_s14, 6   ;;  %s4248_s1 = sld [smem:[#allocation8_spill]] }
 0x2e7   : > { %s4249_s30 = sld [smem:[#allocation9_spill]]  ;;  %s4252_s0 = smov %s3389_s29 }
 0x2e8   : > { %s4250_s12 = sld [smem:[#allocation10_spill]]  ;;  %39 = sbr.rel (!%p37_p3) target bundleno = 16 (0x10), region = 159 }
 0x2e9   : > { %s4251_s13 = sld [smem:[#allocation11_spill]] }
 0x2eb   : > { %s4253_s29 = smov %s4247_s5 }

</bundles_post_ra>
